<compile_context>
chip_gen: v7x
topology: tpu7x:2x2x1
jax: 0.10.0
libtpu: 0.0.40
codegen_flags: <defaults>
</compile_context>

<pallas_src>
import functools

import jax
import jax.numpy as jnp
from jax.experimental import pallas as pl
from jax.experimental.pallas import tpu as pltpu

HYPER = {
    "input_dim": 28,
    "hidden_dim": 30,
    "hidden_nums": 3,
    "output_dim": 3,
    "block_layer_nums": 3,
}
LN_EPS = 1e-5
LANE = 128
# Cap chosen for v7x (64 MiB physical / 32 MiB default scoped VMEM); on
# v5e/v6e (128 MiB VMEM) this can be raised to 2048.
TILE_B_MAX = 1024


def _round_up(x, m):
    return ((x + m - 1) // m) * m


def _auto_tile_b(batch):
    """Pick a batch tile: single step for tiny batches (no padding/slice),
    otherwise >=2 grid steps so both v7x TensorCores get work, capped at
    TILE_B_MAX for VMEM."""
    b8 = _round_up(batch, 8)
    if b8 < 64:
        return b8
    half = _round_up((b8 + 1) // 2, 8)
    return min(TILE_B_MAX, half)


def _resnn_kernel(n_blocks, block_layers, hid, out_d, x_ref, w0_ref, w_ref, v_ref, o_ref):
    """One batch tile through the whole network.

    x_ref : [TB, in_d]      input tile at natural width (no 128-lane host pad).
    w0_ref: [in_d, 128]     input-layer weight (in, out), cols >= hid zero.
    w_ref : [NW, 128, 128]  block + final Linear weights (in, out), zero padded.
    v_ref : [NV, 128]       bias / LN gamma / LN beta rows, zero padded.
    o_ref : [TB, out_d]     compact output tile (no write amplification).
    """
    inv_hid = 1.0 / float(hid)
    lane = jax.lax.broadcasted_iota(jnp.int32, (1, LANE), 1)
    valid = lane < hid                                       # [1, 128] lane mask

    # --- input layer: Linear(input_dim, hidden_dim) + ReLU ------------------
    # Contracting dim is in_d (=28); Mosaic masks/pads the MXU operands, so no
    # explicit lane padding of x is needed.
    h = jnp.dot(x_ref[...], w0_ref[...], preferred_element_type=jnp.float32)
    h = jnp.maximum(h + v_ref[0:1, :], 0.0)

    wi, vi = 0, 1
    for _ in range(n_blocks):
        out = h
        for _ in range(block_layers - 1):
            w = w_ref[wi]
            b = v_ref[vi:vi + 1, :]
            g = v_ref[vi + 1:vi + 2, :]
            be = v_ref[vi + 2:vi + 3, :]
            wi += 1
            vi += 3

            y = jnp.dot(out, w, preferred_element_type=jnp.float32) + b
            # LayerNorm over the `hid` valid lanes: centered two-pass variance
            # with an explicit lane mask (matches the reference exactly and is
            # robust to non-zero garbage in padded lanes).
            y = jnp.where(valid, y, 0.0)
            mu = jnp.sum(y, axis=-1, keepdims=True) * inv_hid
            d = jnp.where(valid, y - mu, 0.0)
            var = jnp.sum(d * d, axis=-1, keepdims=True) * inv_hid
            scale = jax.lax.rsqrt(var + LN_EPS) * g          # gamma folded into rsqrt
            # Padded lanes: d = 0, beta = 0 -> output stays exactly zero.
            out = jnp.maximum(d * scale + be, 0.0)
        h = h + out

    # --- final Linear(hidden_dim, output_dim), compact store ----------------
    y = jnp.dot(h, w_ref[wi], preferred_element_type=jnp.float32) + v_ref[vi:vi + 1, :]
    o_ref[...] = y[:, :out_d].astype(o_ref.dtype)


def init_params(key, hyper):
    """Deterministic synthetic parameters. Linear weights stored as [in, out]."""
    in_d = hyper["input_dim"]
    hid = hyper["hidden_dim"]
    out_d = hyper["output_dim"]
    n_blocks = hyper["hidden_nums"] - 1
    block_layers = hyper["block_layer_nums"]

    params = []
    key, k1, k2 = jax.random.split(key, 3)
    params.append(jax.random.normal(k1, (in_d, hid), jnp.float32) * 0.1)   # w0
    params.append(jax.random.normal(k2, (1, hid), jnp.float32) * 0.1)      # b0

    for _ in range(n_blocks):
        for _ in range(block_layers - 1):
            key, kw, kb = jax.random.split(key, 3)
            params.append(jax.random.normal(kw, (hid, hid), jnp.float32) * 0.1)  # w
            params.append(jax.random.normal(kb, (1, hid), jnp.float32) * 0.1)    # b
            params.append(jnp.ones((1, hid), jnp.float32))                       # LN gamma
            params.append(jnp.zeros((1, hid), jnp.float32))                      # LN beta

    key, kw, kb = jax.random.split(key, 3)
    params.append(jax.random.normal(kw, (hid, out_d), jnp.float32) * 0.1)   # wf
    params.append(jax.random.normal(kb, (1, out_d), jnp.float32) * 0.1)     # bf
    return params


def pack_params(params, hyper):
    """Pack the per-layer parameter list into three zero-padded stacked arrays:
    w0_p [in_d,128], w_stack [NW,128,128], v_stack [NV,128]."""
    in_d = hyper["input_dim"]
    hid = hyper["hidden_dim"]
    out_d = hyper["output_dim"]
    n_blocks = hyper["hidden_nums"] - 1
    layers = hyper["block_layer_nums"] - 1

    n_w = n_blocks * layers + 1                     # block layers + final
    n_v = 1 + n_blocks * layers * 3 + 1             # b0 + (b,g,beta)*L + bf
    n_v_pad = _round_up(n_v, 8)

    it = iter(params)
    w0, b0 = next(it), next(it)
    w0_p = jnp.zeros((in_d, LANE), jnp.float32).at[:, :hid].set(w0)
    w_stack = jnp.zeros((n_w, LANE, LANE), jnp.float32)
    v_stack = jnp.zeros((n_v_pad, LANE), jnp.float32)
    v_stack = v_stack.at[0, :hid].set(b0.reshape(-1))

    wi, vi = 0, 1
    for _ in range(n_blocks):
        for _ in range(layers):
            w, b, g, be = next(it), next(it), next(it), next(it)
            w_stack = w_stack.at[wi, :hid, :hid].set(w)
            v_stack = v_stack.at[vi, :hid].set(b.reshape(-1))
            v_stack = v_stack.at[vi + 1, :hid].set(g.reshape(-1))
            v_stack = v_stack.at[vi + 2, :hid].set(be.reshape(-1))
            wi += 1
            vi += 3

    wf, bf = next(it), next(it)
    w_stack = w_stack.at[wi, :hid, :out_d].set(wf)
    v_stack = v_stack.at[vi, :out_d].set(bf.reshape(-1))
    return w0_p, w_stack, v_stack


def padding_invariant_holds(w0_p, w_stack, v_stack, hyper):
    """Cheap unit check of the zero-padding invariant of the packed params."""
    hid = hyper["hidden_dim"]
    ok = (jnp.all(w0_p[:, hid:] == 0)
          & jnp.all(w_stack[:, hid:, :] == 0)
          & jnp.all(w_stack[:, :, hid:] == 0)
          & jnp.all(v_stack[:, hid:] == 0))
    return bool(ok)


def custom_res_nn(x, w0_p, w_stack, v_stack, hyper, tile_b=None):
    n_blocks = hyper["hidden_nums"] - 1
    block_layers = hyper["block_layer_nums"]
    in_d = hyper["input_dim"]
    hid = hyper["hidden_dim"]
    out_d = hyper["output_dim"]

    batch = x.shape[0]
    if tile_b is None:
        tile_b = _auto_tile_b(batch)
    tile_b = max(8, min(_round_up(tile_b, 8), _round_up(batch, 8)))
    b_pad = _round_up(batch, tile_b)
    grid = (b_pad // tile_b,)

    x = x.astype(jnp.float32)
    if b_pad != batch:
        # Batch-dim padding only (the 128-lane pad was dropped): the last tile
        # must read deterministic zeros, not out-of-bounds garbage rows.
        x = jnp.pad(x, ((0, b_pad - batch), (0, 0)))

    kernel = functools.partial(_resnn_kernel, n_blocks, block_layers, hid, out_d)

    # VMEM budget: double-buffered x/out tiles + ~6-8 live (tile_b,128) f32
    # temporaries + (possibly double-buffered) parameter stacks.
    param_bytes = 4 * (w0_p.size + w_stack.size + v_stack.size)
    vmem_limit = int(min(64 * 1024 * 1024,
                         max(32 * 1024 * 1024,
                             12 * tile_b * LANE * 4 + 4 * param_bytes)))

    def resident_spec(shape, single_buffer):
        index_map = lambda i: (0,) * len(shape)
        if single_buffer:
            # Constant window -> a second pipeline buffer is pure VMEM waste.
            return pl.BlockSpec(shape, index_map, pipeline_mode=pl.Buffered(1))
        return pl.BlockSpec(shape, index_map)

    def run(single_buffer_params):
        return pl.pallas_call(
            kernel,
            out_shape=jax.ShapeDtypeStruct((b_pad, out_d), jnp.float32),
            grid=grid,
            in_specs=[
                pl.BlockSpec((tile_b, in_d), lambda i: (i, 0)),          # x tile
                resident_spec(w0_p.shape, single_buffer_params),         # w0
                resident_spec(w_stack.shape, single_buffer_params),      # weights
                resident_spec(v_stack.shape, single_buffer_params),      # vectors
            ],
            out_specs=pl.BlockSpec((tile_b, out_d), lambda i: (i, 0)),   # compact out
            compiler_params=pltpu.CompilerParams(
                dimension_semantics=("parallel",),
                vmem_limit_bytes=vmem_limit),
        )(x, w0_p, w_stack, v_stack)

    try:
        out = jax.block_until_ready(run(True))
    except Exception:
        # pipeline_mode=pl.Buffered(1) not supported by this Pallas build:
        # fall back to default double-buffered parameter windows.
        out = run(False)

    return out if b_pad == batch else out[:batch]


def _ref_forward(x, params, hyper):
    """Pure-JAX reference mirroring the PyTorch module."""
    n_blocks = hyper["hidden_nums"] - 1
    block_layers = hyper["block_layer_nums"]
    it = iter(params)
    h = jnp.maximum(x @ next(it) + next(it), 0.0)
    for _ in range(n_blocks):
        out = h
        for _ in range(block_layers - 1):
            w, b, g, be = next(it), next(it), next(it), next(it)
            out = out @ w + b
            mu = jnp.mean(out, axis=-1, keepdims=True)
            var = jnp.mean((out - mu) ** 2, axis=-1, keepdims=True)
            out = (out - mu) * jax.lax.rsqrt(var + LN_EPS) * g + be
            out = jnp.maximum(out, 0.0)
        h = h + out
    return h @ next(it) + next(it)


if __name__ == "__main__":
    key = jax.random.PRNGKey(0)
    key, kx, kp = jax.random.split(key, 3)

    batch = 40
    x = jax.random.normal(kx, (batch, HYPER["input_dim"]), jnp.float32)
    params = init_params(kp, HYPER)
    w0_p, w_stack, v_stack = pack_params(params, HYPER)
    assert padding_invariant_holds(w0_p, w_stack, v_stack, HYPER), "packing invariant broken"

    ref = _ref_forward(x, params, HYPER)

    # Auto-tiled path: tile covers the whole (small) batch -> no batch padding,
    # no trailing slice.
    out_auto = custom_res_nn(x, w0_p, w_stack, v_stack, HYPER)
    out_auto = jax.block_until_ready(out_auto)
    assert out_auto.shape == (batch, HYPER["output_dim"])
    assert jnp.allclose(out_auto, ref, atol=1e-5, rtol=1e-5), "auto-tile mismatch vs reference"

    # Forced small tile: exercises the multi-step parallel grid + the
    # batch-padding / trailing-slice path (b_pad = 48, grid = (3,)).
    out_tiled = custom_res_nn(x, w0_p, w_stack, v_stack, HYPER, tile_b=16)
    out_tiled = jax.block_until_ready(out_tiled)
    assert out_tiled.shape == (batch, HYPER["output_dim"])
    assert jnp.allclose(out_tiled, ref, atol=1e-5, rtol=1e-5), "tiled mismatch vs reference"

    print("KERNEL_OK")
</pallas_src>

<mosaic_0001>
module attributes {stable_mosaic.version = 11 : i64} {
  func.func @_resnn_kernel(%arg0: i32, %arg1: memref<40x28xf32, #tpu.memory_space<vmem>>, %arg2: memref<28x128xf32, #tpu.memory_space<vmem>>, %arg3: memref<5x128x128xf32, #tpu.memory_space<vmem>>, %arg4: memref<16x128xf32, #tpu.memory_space<vmem>>, %arg5: memref<40x3xf32, #tpu.memory_space<vmem>>) attributes {dimension_semantics = [#tpu.dimension_semantics<parallel>], iteration_bounds = array<i64: 1>, scalar_prefetch = 0 : i64, scratch_operands = 0 : i64, tpu.core_type = #tpu.core_type<tc>, window_params = [{transform_indices = @transform_0, window_bounds = array<i64: 40, 28>}, {pipeline_mode = #tpu.pipeline_mode<synchronous>, transform_indices = @transform_1, window_bounds = array<i64: 28, 128>}, {pipeline_mode = #tpu.pipeline_mode<synchronous>, transform_indices = @transform_2, window_bounds = array<i64: 5, 128, 128>}, {pipeline_mode = #tpu.pipeline_mode<synchronous>, transform_indices = @transform_3, window_bounds = array<i64: 16, 128>}, {transform_indices = @transform_4, window_bounds = array<i64: 40, 3>}]} {
    %0 = tpu.iota {dimensions = array<i32: 1>} : vector<1x128xi32>
    %c30_i32 = arith.constant 30 : i32
    %1 = vector.broadcast %c30_i32 : i32 to vector<1x128xi32>
    %2 = arith.cmpi slt, %0, %1 : vector<1x128xi32>
    %c0 = arith.constant 0 : index
    %c0_0 = arith.constant 0 : index
    %3 = vector.load %arg1[%c0, %c0_0] : memref<40x28xf32, #tpu.memory_space<vmem>>, vector<40x28xf32>
    %c0_1 = arith.constant 0 : index
    %c0_2 = arith.constant 0 : index
    %4 = vector.load %arg2[%c0_1, %c0_2] : memref<28x128xf32, #tpu.memory_space<vmem>>, vector<28x128xf32>
    %cst = arith.constant dense<0.000000e+00> : vector<40x128xf32>
    %5 = tpu.matmul %3, %4, %cst {dimension_numbers = #tpu.dot_dimension_numbers<[1], [0], [0], [1], [0, 0, 1, 1], [], []>} : vector<40x28xf32>, vector<28x128xf32>, vector<40x128xf32> -> vector<40x128xf32>
    %c0_3 = arith.constant 0 : index
    %c0_4 = arith.constant 0 : index
    %6 = vector.load %arg4[%c0_3, %c0_4] : memref<16x128xf32, #tpu.memory_space<vmem>>, vector<1x128xf32>
    %7 = vector.broadcast %6 : vector<1x128xf32> to vector<40x128xf32>
    %8 = arith.addf %5, %7 : vector<40x128xf32>
    %cst_5 = arith.constant 0.000000e+00 : f32
    %9 = vector.broadcast %cst_5 : f32 to vector<40x128xf32>
    %10 = arith.maximumf %8, %9 : vector<40x128xf32>
    %c0_6 = arith.constant 0 : index
    %c0_7 = arith.constant 0 : index
    %c0_8 = arith.constant 0 : index
    %11 = vector.load %arg3[%c0_6, %c0_7, %c0_8] : memref<5x128x128xf32, #tpu.memory_space<vmem>>, vector<1x128x128xf32>
    %12 = vector.shape_cast %11 : vector<1x128x128xf32> to vector<128x128xf32>
    %c1 = arith.constant 1 : index
    %c0_9 = arith.constant 0 : index
    %13 = vector.load %arg4[%c1, %c0_9] : memref<16x128xf32, #tpu.memory_space<vmem>>, vector<1x128xf32>
    %c2 = arith.constant 2 : index
    %c0_10 = arith.constant 0 : index
    %14 = vector.load %arg4[%c2, %c0_10] : memref<16x128xf32, #tpu.memory_space<vmem>>, vector<1x128xf32>
    %c3 = arith.constant 3 : index
    %c0_11 = arith.constant 0 : index
    %15 = vector.load %arg4[%c3, %c0_11] : memref<16x128xf32, #tpu.memory_space<vmem>>, vector<1x128xf32>
    %cst_12 = arith.constant dense<0.000000e+00> : vector<40x128xf32>
    %16 = tpu.matmul %10, %12, %cst_12 {dimension_numbers = #tpu.dot_dimension_numbers<[1], [0], [0], [1], [0, 0, 1, 1], [], []>} : vector<40x128xf32>, vector<128x128xf32>, vector<40x128xf32> -> vector<40x128xf32>
    %17 = vector.broadcast %13 : vector<1x128xf32> to vector<40x128xf32>
    %18 = arith.addf %16, %17 : vector<40x128xf32>
    %cst_13 = arith.constant 0.000000e+00 : f32
    %19 = vector.shape_cast %2 : vector<1x128xi1> to vector<1x128xi1>
    %20 = vector.broadcast %19 : vector<1x128xi1> to vector<40x128xi1>
    %21 = vector.broadcast %cst_13 : f32 to vector<40x128xf32>
    %22 = arith.select %20, %18, %21 : vector<40x128xi1>, vector<40x128xf32>
    %cst_14 = arith.constant dense<0.000000e+00> : vector<40xf32>
    %23 = vector.multi_reduction <add>, %22, %cst_14 [1] : vector<40x128xf32> to vector<40xf32>
    %24 = vector.shape_cast %23 : vector<40xf32> to vector<40x1xf32>
    %cst_15 = arith.constant 0.0333333351 : f32
    %25 = vector.broadcast %cst_15 : f32 to vector<40x1xf32>
    %26 = arith.mulf %24, %25 : vector<40x1xf32>
    %27 = vector.broadcast %26 : vector<40x1xf32> to vector<40x128xf32>
    %28 = arith.subf %22, %27 : vector<40x128xf32>
    %cst_16 = arith.constant 0.000000e+00 : f32
    %29 = vector.shape_cast %2 : vector<1x128xi1> to vector<1x128xi1>
    %30 = vector.broadcast %29 : vector<1x128xi1> to vector<40x128xi1>
    %31 = vector.broadcast %cst_16 : f32 to vector<40x128xf32>
    %32 = arith.select %30, %28, %31 : vector<40x128xi1>, vector<40x128xf32>
    %33 = arith.mulf %32, %32 : vector<40x128xf32>
    %cst_17 = arith.constant dense<0.000000e+00> : vector<40xf32>
    %34 = vector.multi_reduction <add>, %33, %cst_17 [1] : vector<40x128xf32> to vector<40xf32>
    %35 = vector.shape_cast %34 : vector<40xf32> to vector<40x1xf32>
    %cst_18 = arith.constant 0.0333333351 : f32
    %36 = vector.broadcast %cst_18 : f32 to vector<40x1xf32>
    %37 = arith.mulf %35, %36 : vector<40x1xf32>
    %cst_19 = arith.constant 9.99999974E-6 : f32
    %38 = vector.broadcast %cst_19 : f32 to vector<40x1xf32>
    %39 = arith.addf %37, %38 : vector<40x1xf32>
    %40 = math.rsqrt %39 : vector<40x1xf32>
    %41 = vector.broadcast %40 : vector<40x1xf32> to vector<40x128xf32>
    %42 = vector.broadcast %14 : vector<1x128xf32> to vector<40x128xf32>
    %43 = arith.mulf %41, %42 : vector<40x128xf32>
    %44 = arith.mulf %32, %43 : vector<40x128xf32>
    %45 = vector.broadcast %15 : vector<1x128xf32> to vector<40x128xf32>
    %46 = arith.addf %44, %45 : vector<40x128xf32>
    %cst_20 = arith.constant 0.000000e+00 : f32
    %47 = vector.broadcast %cst_20 : f32 to vector<40x128xf32>
    %48 = arith.maximumf %46, %47 : vector<40x128xf32>
    %c1_21 = arith.constant 1 : index
    %c0_22 = arith.constant 0 : index
    %c0_23 = arith.constant 0 : index
    %49 = vector.load %arg3[%c1_21, %c0_22, %c0_23] : memref<5x128x128xf32, #tpu.memory_space<vmem>>, vector<1x128x128xf32>
    %50 = vector.shape_cast %49 : vector<1x128x128xf32> to vector<128x128xf32>
    %c4 = arith.constant 4 : index
    %c0_24 = arith.constant 0 : index
    %51 = vector.load %arg4[%c4, %c0_24] : memref<16x128xf32, #tpu.memory_space<vmem>>, vector<1x128xf32>
    %c5 = arith.constant 5 : index
    %c0_25 = arith.constant 0 : index
    %52 = vector.load %arg4[%c5, %c0_25] : memref<16x128xf32, #tpu.memory_space<vmem>>, vector<1x128xf32>
    %c6 = arith.constant 6 : index
    %c0_26 = arith.constant 0 : index
    %53 = vector.load %arg4[%c6, %c0_26] : memref<16x128xf32, #tpu.memory_space<vmem>>, vector<1x128xf32>
    %cst_27 = arith.constant dense<0.000000e+00> : vector<40x128xf32>
    %54 = tpu.matmul %48, %50, %cst_27 {dimension_numbers = #tpu.dot_dimension_numbers<[1], [0], [0], [1], [0, 0, 1, 1], [], []>} : vector<40x128xf32>, vector<128x128xf32>, vector<40x128xf32> -> vector<40x128xf32>
    %55 = vector.broadcast %51 : vector<1x128xf32> to vector<40x128xf32>
    %56 = arith.addf %54, %55 : vector<40x128xf32>
    %cst_28 = arith.constant 0.000000e+00 : f32
    %57 = vector.shape_cast %2 : vector<1x128xi1> to vector<1x128xi1>
    %58 = vector.broadcast %57 : vector<1x128xi1> to vector<40x128xi1>
    %59 = vector.broadcast %cst_28 : f32 to vector<40x128xf32>
    %60 = arith.select %58, %56, %59 : vector<40x128xi1>, vector<40x128xf32>
    %cst_29 = arith.constant dense<0.000000e+00> : vector<40xf32>
    %61 = vector.multi_reduction <add>, %60, %cst_29 [1] : vector<40x128xf32> to vector<40xf32>
    %62 = vector.shape_cast %61 : vector<40xf32> to vector<40x1xf32>
    %cst_30 = arith.constant 0.0333333351 : f32
    %63 = vector.broadcast %cst_30 : f32 to vector<40x1xf32>
    %64 = arith.mulf %62, %63 : vector<40x1xf32>
    %65 = vector.broadcast %64 : vector<40x1xf32> to vector<40x128xf32>
    %66 = arith.subf %60, %65 : vector<40x128xf32>
    %cst_31 = arith.constant 0.000000e+00 : f32
    %67 = vector.shape_cast %2 : vector<1x128xi1> to vector<1x128xi1>
    %68 = vector.broadcast %67 : vector<1x128xi1> to vector<40x128xi1>
    %69 = vector.broadcast %cst_31 : f32 to vector<40x128xf32>
    %70 = arith.select %68, %66, %69 : vector<40x128xi1>, vector<40x128xf32>
    %71 = arith.mulf %70, %70 : vector<40x128xf32>
    %cst_32 = arith.constant dense<0.000000e+00> : vector<40xf32>
    %72 = vector.multi_reduction <add>, %71, %cst_32 [1] : vector<40x128xf32> to vector<40xf32>
    %73 = vector.shape_cast %72 : vector<40xf32> to vector<40x1xf32>
    %cst_33 = arith.constant 0.0333333351 : f32
    %74 = vector.broadcast %cst_33 : f32 to vector<40x1xf32>
    %75 = arith.mulf %73, %74 : vector<40x1xf32>
    %cst_34 = arith.constant 9.99999974E-6 : f32
    %76 = vector.broadcast %cst_34 : f32 to vector<40x1xf32>
    %77 = arith.addf %75, %76 : vector<40x1xf32>
    %78 = math.rsqrt %77 : vector<40x1xf32>
    %79 = vector.broadcast %78 : vector<40x1xf32> to vector<40x128xf32>
    %80 = vector.broadcast %52 : vector<1x128xf32> to vector<40x128xf32>
    %81 = arith.mulf %79, %80 : vector<40x128xf32>
    %82 = arith.mulf %70, %81 : vector<40x128xf32>
    %83 = vector.broadcast %53 : vector<1x128xf32> to vector<40x128xf32>
    %84 = arith.addf %82, %83 : vector<40x128xf32>
    %cst_35 = arith.constant 0.000000e+00 : f32
    %85 = vector.broadcast %cst_35 : f32 to vector<40x128xf32>
    %86 = arith.maximumf %84, %85 : vector<40x128xf32>
    %87 = arith.addf %10, %86 : vector<40x128xf32>
    %c2_36 = arith.constant 2 : index
    %c0_37 = arith.constant 0 : index
    %c0_38 = arith.constant 0 : index
    %88 = vector.load %arg3[%c2_36, %c0_37, %c0_38] : memref<5x128x128xf32, #tpu.memory_space<vmem>>, vector<1x128x128xf32>
    %89 = vector.shape_cast %88 : vector<1x128x128xf32> to vector<128x128xf32>
    %c7 = arith.constant 7 : index
    %c0_39 = arith.constant 0 : index
    %90 = vector.load %arg4[%c7, %c0_39] : memref<16x128xf32, #tpu.memory_space<vmem>>, vector<1x128xf32>
    %c8 = arith.constant 8 : index
    %c0_40 = arith.constant 0 : index
    %91 = vector.load %arg4[%c8, %c0_40] : memref<16x128xf32, #tpu.memory_space<vmem>>, vector<1x128xf32>
    %c9 = arith.constant 9 : index
    %c0_41 = arith.constant 0 : index
    %92 = vector.load %arg4[%c9, %c0_41] : memref<16x128xf32, #tpu.memory_space<vmem>>, vector<1x128xf32>
    %cst_42 = arith.constant dense<0.000000e+00> : vector<40x128xf32>
    %93 = tpu.matmul %87, %89, %cst_42 {dimension_numbers = #tpu.dot_dimension_numbers<[1], [0], [0], [1], [0, 0, 1, 1], [], []>} : vector<40x128xf32>, vector<128x128xf32>, vector<40x128xf32> -> vector<40x128xf32>
    %94 = vector.broadcast %90 : vector<1x128xf32> to vector<40x128xf32>
    %95 = arith.addf %93, %94 : vector<40x128xf32>
    %cst_43 = arith.constant 0.000000e+00 : f32
    %96 = vector.shape_cast %2 : vector<1x128xi1> to vector<1x128xi1>
    %97 = vector.broadcast %96 : vector<1x128xi1> to vector<40x128xi1>
    %98 = vector.broadcast %cst_43 : f32 to vector<40x128xf32>
    %99 = arith.select %97, %95, %98 : vector<40x128xi1>, vector<40x128xf32>
    %cst_44 = arith.constant dense<0.000000e+00> : vector<40xf32>
    %100 = vector.multi_reduction <add>, %99, %cst_44 [1] : vector<40x128xf32> to vector<40xf32>
    %101 = vector.shape_cast %100 : vector<40xf32> to vector<40x1xf32>
    %cst_45 = arith.constant 0.0333333351 : f32
    %102 = vector.broadcast %cst_45 : f32 to vector<40x1xf32>
    %103 = arith.mulf %101, %102 : vector<40x1xf32>
    %104 = vector.broadcast %103 : vector<40x1xf32> to vector<40x128xf32>
    %105 = arith.subf %99, %104 : vector<40x128xf32>
    %cst_46 = arith.constant 0.000000e+00 : f32
    %106 = vector.shape_cast %2 : vector<1x128xi1> to vector<1x128xi1>
    %107 = vector.broadcast %106 : vector<1x128xi1> to vector<40x128xi1>
    %108 = vector.broadcast %cst_46 : f32 to vector<40x128xf32>
    %109 = arith.select %107, %105, %108 : vector<40x128xi1>, vector<40x128xf32>
    %110 = arith.mulf %109, %109 : vector<40x128xf32>
    %cst_47 = arith.constant dense<0.000000e+00> : vector<40xf32>
    %111 = vector.multi_reduction <add>, %110, %cst_47 [1] : vector<40x128xf32> to vector<40xf32>
    %112 = vector.shape_cast %111 : vector<40xf32> to vector<40x1xf32>
    %cst_48 = arith.constant 0.0333333351 : f32
    %113 = vector.broadcast %cst_48 : f32 to vector<40x1xf32>
    %114 = arith.mulf %112, %113 : vector<40x1xf32>
    %cst_49 = arith.constant 9.99999974E-6 : f32
    %115 = vector.broadcast %cst_49 : f32 to vector<40x1xf32>
    %116 = arith.addf %114, %115 : vector<40x1xf32>
    %117 = math.rsqrt %116 : vector<40x1xf32>
    %118 = vector.broadcast %117 : vector<40x1xf32> to vector<40x128xf32>
    %119 = vector.broadcast %91 : vector<1x128xf32> to vector<40x128xf32>
    %120 = arith.mulf %118, %119 : vector<40x128xf32>
    %121 = arith.mulf %109, %120 : vector<40x128xf32>
    %122 = vector.broadcast %92 : vector<1x128xf32> to vector<40x128xf32>
    %123 = arith.addf %121, %122 : vector<40x128xf32>
    %cst_50 = arith.constant 0.000000e+00 : f32
    %124 = vector.broadcast %cst_50 : f32 to vector<40x128xf32>
    %125 = arith.maximumf %123, %124 : vector<40x128xf32>
    %c3_51 = arith.constant 3 : index
    %c0_52 = arith.constant 0 : index
    %c0_53 = arith.constant 0 : index
    %126 = vector.load %arg3[%c3_51, %c0_52, %c0_53] : memref<5x128x128xf32, #tpu.memory_space<vmem>>, vector<1x128x128xf32>
    %127 = vector.shape_cast %126 : vector<1x128x128xf32> to vector<128x128xf32>
    %c10 = arith.constant 10 : index
    %c0_54 = arith.constant 0 : index
    %128 = vector.load %arg4[%c10, %c0_54] : memref<16x128xf32, #tpu.memory_space<vmem>>, vector<1x128xf32>
    %c11 = arith.constant 11 : index
    %c0_55 = arith.constant 0 : index
    %129 = vector.load %arg4[%c11, %c0_55] : memref<16x128xf32, #tpu.memory_space<vmem>>, vector<1x128xf32>
    %c12 = arith.constant 12 : index
    %c0_56 = arith.constant 0 : index
    %130 = vector.load %arg4[%c12, %c0_56] : memref<16x128xf32, #tpu.memory_space<vmem>>, vector<1x128xf32>
    %cst_57 = arith.constant dense<0.000000e+00> : vector<40x128xf32>
    %131 = tpu.matmul %125, %127, %cst_57 {dimension_numbers = #tpu.dot_dimension_numbers<[1], [0], [0], [1], [0, 0, 1, 1], [], []>} : vector<40x128xf32>, vector<128x128xf32>, vector<40x128xf32> -> vector<40x128xf32>
    %132 = vector.broadcast %128 : vector<1x128xf32> to vector<40x128xf32>
    %133 = arith.addf %131, %132 : vector<40x128xf32>
    %cst_58 = arith.constant 0.000000e+00 : f32
    %134 = vector.shape_cast %2 : vector<1x128xi1> to vector<1x128xi1>
    %135 = vector.broadcast %134 : vector<1x128xi1> to vector<40x128xi1>
    %136 = vector.broadcast %cst_58 : f32 to vector<40x128xf32>
    %137 = arith.select %135, %133, %136 : vector<40x128xi1>, vector<40x128xf32>
    %cst_59 = arith.constant dense<0.000000e+00> : vector<40xf32>
    %138 = vector.multi_reduction <add>, %137, %cst_59 [1] : vector<40x128xf32> to vector<40xf32>
    %139 = vector.shape_cast %138 : vector<40xf32> to vector<40x1xf32>
    %cst_60 = arith.constant 0.0333333351 : f32
    %140 = vector.broadcast %cst_60 : f32 to vector<40x1xf32>
    %141 = arith.mulf %139, %140 : vector<40x1xf32>
    %142 = vector.broadcast %141 : vector<40x1xf32> to vector<40x128xf32>
    %143 = arith.subf %137, %142 : vector<40x128xf32>
    %cst_61 = arith.constant 0.000000e+00 : f32
    %144 = vector.shape_cast %2 : vector<1x128xi1> to vector<1x128xi1>
    %145 = vector.broadcast %144 : vector<1x128xi1> to vector<40x128xi1>
    %146 = vector.broadcast %cst_61 : f32 to vector<40x128xf32>
    %147 = arith.select %145, %143, %146 : vector<40x128xi1>, vector<40x128xf32>
    %148 = arith.mulf %147, %147 : vector<40x128xf32>
    %cst_62 = arith.constant dense<0.000000e+00> : vector<40xf32>
    %149 = vector.multi_reduction <add>, %148, %cst_62 [1] : vector<40x128xf32> to vector<40xf32>
    %150 = vector.shape_cast %149 : vector<40xf32> to vector<40x1xf32>
    %cst_63 = arith.constant 0.0333333351 : f32
    %151 = vector.broadcast %cst_63 : f32 to vector<40x1xf32>
    %152 = arith.mulf %150, %151 : vector<40x1xf32>
    %cst_64 = arith.constant 9.99999974E-6 : f32
    %153 = vector.broadcast %cst_64 : f32 to vector<40x1xf32>
    %154 = arith.addf %152, %153 : vector<40x1xf32>
    %155 = math.rsqrt %154 : vector<40x1xf32>
    %156 = vector.broadcast %155 : vector<40x1xf32> to vector<40x128xf32>
    %157 = vector.broadcast %129 : vector<1x128xf32> to vector<40x128xf32>
    %158 = arith.mulf %156, %157 : vector<40x128xf32>
    %159 = arith.mulf %147, %158 : vector<40x128xf32>
    %160 = vector.broadcast %130 : vector<1x128xf32> to vector<40x128xf32>
    %161 = arith.addf %159, %160 : vector<40x128xf32>
    %cst_65 = arith.constant 0.000000e+00 : f32
    %162 = vector.broadcast %cst_65 : f32 to vector<40x128xf32>
    %163 = arith.maximumf %161, %162 : vector<40x128xf32>
    %164 = arith.addf %87, %163 : vector<40x128xf32>
    %c4_66 = arith.constant 4 : index
    %c0_67 = arith.constant 0 : index
    %c0_68 = arith.constant 0 : index
    %165 = vector.load %arg3[%c4_66, %c0_67, %c0_68] : memref<5x128x128xf32, #tpu.memory_space<vmem>>, vector<1x128x128xf32>
    %166 = vector.shape_cast %165 : vector<1x128x128xf32> to vector<128x128xf32>
    %cst_69 = arith.constant dense<0.000000e+00> : vector<40x128xf32>
    %167 = tpu.matmul %164, %166, %cst_69 {dimension_numbers = #tpu.dot_dimension_numbers<[1], [0], [0], [1], [0, 0, 1, 1], [], []>} : vector<40x128xf32>, vector<128x128xf32>, vector<40x128xf32> -> vector<40x128xf32>
    %c13 = arith.constant 13 : index
    %c0_70 = arith.constant 0 : index
    %168 = vector.load %arg4[%c13, %c0_70] : memref<16x128xf32, #tpu.memory_space<vmem>>, vector<1x128xf32>
    %169 = vector.broadcast %168 : vector<1x128xf32> to vector<40x128xf32>
    %170 = arith.addf %167, %169 : vector<40x128xf32>
    %171 = vector.extract_strided_slice %170 {offsets = [0, 0], sizes = [40, 3], strides = [1, 1]} : vector<40x128xf32> to vector<40x3xf32>
    %c0_71 = arith.constant 0 : index
    %c0_72 = arith.constant 0 : index
    %172 = vector.load %arg5[%c0_71, %c0_72] : memref<40x3xf32, #tpu.memory_space<vmem>>, vector<40x3xf32>
    tpu.vector_store %arg5[%c0_71, %c0_72], %171 {strides = array<i32>} : memref<40x3xf32, #tpu.memory_space<vmem>>, vector<40x3xf32>,
    return
  }
  func.func @transform_0(%arg0: i32) -> (i32, i32) {
    %c0_i32 = arith.constant 0 : i32
    %c0_i32_0 = arith.constant 0 : i32
    return %arg0, %c0_i32 : i32, i32
  }
  func.func @transform_1(%arg0: i32) -> (i32, i32) {
    %c0_i32 = arith.constant 0 : i32
    %c0_i32_0 = arith.constant 0 : i32
    %c0_i32_1 = arith.constant 0 : i32
    return %c0_i32, %c0_i32_0 : i32, i32
  }
  func.func @transform_2(%arg0: i32) -> (i32, i32, i32) {
    %c0_i32 = arith.constant 0 : i32
    %c0_i32_0 = arith.constant 0 : i32
    %c0_i32_1 = arith.constant 0 : i32
    %c0_i32_2 = arith.constant 0 : i32
    return %c0_i32, %c0_i32_0, %c0_i32_1 : i32, i32, i32
  }
  func.func @transform_3(%arg0: i32) -> (i32, i32) {
    %c0_i32 = arith.constant 0 : i32
    %c0_i32_0 = arith.constant 0 : i32
    %c0_i32_1 = arith.constant 0 : i32
    return %c0_i32, %c0_i32_0 : i32, i32
  }
  func.func @transform_4(%arg0: i32) -> (i32, i32) {
    %c0_i32 = arith.constant 0 : i32
    %c0_i32_0 = arith.constant 0 : i32
    return %arg0, %c0_i32 : i32, i32
  }
}

module attributes {stable_mosaic.version = 11 : i64} {
  func.func @_resnn_kernel(%arg0: i32, %arg1: memref<40x28xf32, #tpu.memory_space<vmem>>, %arg2: memref<28x128xf32, #tpu.memory_space<vmem>>, %arg3: memref<5x128x128xf32, #tpu.memory_space<vmem>>, %arg4: memref<16x128xf32, #tpu.memory_space<vmem>>, %arg5: memref<40x3xf32, #tpu.memory_space<vmem>>) attributes {dimension_semantics = [#tpu.dimension_semantics<parallel>], iteration_bounds = array<i64: 1>, scalar_prefetch = 0 : i64, scratch_operands = 0 : i64, tpu.core_type = #tpu.core_type<tc>, window_params = [{transform_indices = @transform_0, window_bounds = array<i64: 40, 28>}, {pipeline_mode = #tpu.pipeline_mode<synchronous>, transform_indices = @transform_1, window_bounds = array<i64: 28, 128>}, {pipeline_mode = #tpu.pipeline_mode<synchronous>, transform_indices = @transform_2, window_bounds = array<i64: 5, 128, 128>}, {pipeline_mode = #tpu.pipeline_mode<synchronous>, transform_indices = @transform_3, window_bounds = array<i64: 16, 128>}, {transform_indices = @transform_4, window_bounds = array<i64: 40, 3>}]} {
    %0 = tpu.iota {dimensions = array<i32: 1>} : vector<1x128xi32>
    %c30_i32 = arith.constant 30 : i32
    %1 = vector.broadcast %c30_i32 : i32 to vector<1x128xi32>
    %2 = arith.cmpi slt, %0, %1 : vector<1x128xi32>
    %c0 = arith.constant 0 : index
    %c0_0 = arith.constant 0 : index
    %3 = vector.load %arg1[%c0, %c0_0] : memref<40x28xf32, #tpu.memory_space<vmem>>, vector<40x28xf32>
    %c0_1 = arith.constant 0 : index
    %c0_2 = arith.constant 0 : index
    %4 = vector.load %arg2[%c0_1, %c0_2] : memref<28x128xf32, #tpu.memory_space<vmem>>, vector<28x128xf32>
    %cst = arith.constant dense<0.000000e+00> : vector<40x128xf32>
    %5 = tpu.matmul %3, %4, %cst {dimension_numbers = #tpu.dot_dimension_numbers<[1], [0], [0], [1], [0, 0, 1, 1], [], []>} : vector<40x28xf32>, vector<28x128xf32>, vector<40x128xf32> -> vector<40x128xf32>
    %c0_3 = arith.constant 0 : index
    %c0_4 = arith.constant 0 : index
    %6 = vector.load %arg4[%c0_3, %c0_4] : memref<16x128xf32, #tpu.memory_space<vmem>>, vector<1x128xf32>
    %7 = vector.broadcast %6 : vector<1x128xf32> to vector<40x128xf32>
    %8 = arith.addf %5, %7 : vector<40x128xf32>
    %cst_5 = arith.constant 0.000000e+00 : f32
    %9 = vector.broadcast %cst_5 : f32 to vector<40x128xf32>
    %10 = arith.maximumf %8, %9 : vector<40x128xf32>
    %c0_6 = arith.constant 0 : index
    %c0_7 = arith.constant 0 : index
    %c0_8 = arith.constant 0 : index
    %11 = vector.load %arg3[%c0_6, %c0_7, %c0_8] : memref<5x128x128xf32, #tpu.memory_space<vmem>>, vector<1x128x128xf32>
    %12 = vector.shape_cast %11 : vector<1x128x128xf32> to vector<128x128xf32>
    %c1 = arith.constant 1 : index
    %c0_9 = arith.constant 0 : index
    %13 = vector.load %arg4[%c1, %c0_9] : memref<16x128xf32, #tpu.memory_space<vmem>>, vector<1x128xf32>
    %c2 = arith.constant 2 : index
    %c0_10 = arith.constant 0 : index
    %14 = vector.load %arg4[%c2, %c0_10] : memref<16x128xf32, #tpu.memory_space<vmem>>, vector<1x128xf32>
    %c3 = arith.constant 3 : index
    %c0_11 = arith.constant 0 : index
    %15 = vector.load %arg4[%c3, %c0_11] : memref<16x128xf32, #tpu.memory_space<vmem>>, vector<1x128xf32>
    %cst_12 = arith.constant dense<0.000000e+00> : vector<40x128xf32>
    %16 = tpu.matmul %10, %12, %cst_12 {dimension_numbers = #tpu.dot_dimension_numbers<[1], [0], [0], [1], [0, 0, 1, 1], [], []>} : vector<40x128xf32>, vector<128x128xf32>, vector<40x128xf32> -> vector<40x128xf32>
    %17 = vector.broadcast %13 : vector<1x128xf32> to vector<40x128xf32>
    %18 = arith.addf %16, %17 : vector<40x128xf32>
    %cst_13 = arith.constant 0.000000e+00 : f32
    %19 = vector.shape_cast %2 : vector<1x128xi1> to vector<1x128xi1>
    %20 = vector.broadcast %19 : vector<1x128xi1> to vector<40x128xi1>
    %21 = vector.broadcast %cst_13 : f32 to vector<40x128xf32>
    %22 = arith.select %20, %18, %21 : vector<40x128xi1>, vector<40x128xf32>
    %cst_14 = arith.constant dense<0.000000e+00> : vector<40xf32>
    %23 = vector.multi_reduction <add>, %22, %cst_14 [1] : vector<40x128xf32> to vector<40xf32>
    %24 = vector.shape_cast %23 : vector<40xf32> to vector<40x1xf32>
    %cst_15 = arith.constant 0.0333333351 : f32
    %25 = vector.broadcast %cst_15 : f32 to vector<40x1xf32>
    %26 = arith.mulf %24, %25 : vector<40x1xf32>
    %27 = vector.broadcast %26 : vector<40x1xf32> to vector<40x128xf32>
    %28 = arith.subf %22, %27 : vector<40x128xf32>
    %cst_16 = arith.constant 0.000000e+00 : f32
    %29 = vector.shape_cast %2 : vector<1x128xi1> to vector<1x128xi1>
    %30 = vector.broadcast %29 : vector<1x128xi1> to vector<40x128xi1>
    %31 = vector.broadcast %cst_16 : f32 to vector<40x128xf32>
    %32 = arith.select %30, %28, %31 : vector<40x128xi1>, vector<40x128xf32>
    %33 = arith.mulf %32, %32 : vector<40x128xf32>
    %cst_17 = arith.constant dense<0.000000e+00> : vector<40xf32>
    %34 = vector.multi_reduction <add>, %33, %cst_17 [1] : vector<40x128xf32> to vector<40xf32>
    %35 = vector.shape_cast %34 : vector<40xf32> to vector<40x1xf32>
    %cst_18 = arith.constant 0.0333333351 : f32
    %36 = vector.broadcast %cst_18 : f32 to vector<40x1xf32>
    %37 = arith.mulf %35, %36 : vector<40x1xf32>
    %cst_19 = arith.constant 9.99999974E-6 : f32
    %38 = vector.broadcast %cst_19 : f32 to vector<40x1xf32>
    %39 = arith.addf %37, %38 : vector<40x1xf32>
    %40 = math.rsqrt %39 : vector<40x1xf32>
    %41 = vector.broadcast %40 : vector<40x1xf32> to vector<40x128xf32>
    %42 = vector.broadcast %14 : vector<1x128xf32> to vector<40x128xf32>
    %43 = arith.mulf %41, %42 : vector<40x128xf32>
    %44 = arith.mulf %32, %43 : vector<40x128xf32>
    %45 = vector.broadcast %15 : vector<1x128xf32> to vector<40x128xf32>
    %46 = arith.addf %44, %45 : vector<40x128xf32>
    %cst_20 = arith.constant 0.000000e+00 : f32
    %47 = vector.broadcast %cst_20 : f32 to vector<40x128xf32>
    %48 = arith.maximumf %46, %47 : vector<40x128xf32>
    %c1_21 = arith.constant 1 : index
    %c0_22 = arith.constant 0 : index
    %c0_23 = arith.constant 0 : index
    %49 = vector.load %arg3[%c1_21, %c0_22, %c0_23] : memref<5x128x128xf32, #tpu.memory_space<vmem>>, vector<1x128x128xf32>
    %50 = vector.shape_cast %49 : vector<1x128x128xf32> to vector<128x128xf32>
    %c4 = arith.constant 4 : index
    %c0_24 = arith.constant 0 : index
    %51 = vector.load %arg4[%c4, %c0_24] : memref<16x128xf32, #tpu.memory_space<vmem>>, vector<1x128xf32>
    %c5 = arith.constant 5 : index
    %c0_25 = arith.constant 0 : index
    %52 = vector.load %arg4[%c5, %c0_25] : memref<16x128xf32, #tpu.memory_space<vmem>>, vector<1x128xf32>
    %c6 = arith.constant 6 : index
    %c0_26 = arith.constant 0 : index
    %53 = vector.load %arg4[%c6, %c0_26] : memref<16x128xf32, #tpu.memory_space<vmem>>, vector<1x128xf32>
    %cst_27 = arith.constant dense<0.000000e+00> : vector<40x128xf32>
    %54 = tpu.matmul %48, %50, %cst_27 {dimension_numbers = #tpu.dot_dimension_numbers<[1], [0], [0], [1], [0, 0, 1, 1], [], []>} : vector<40x128xf32>, vector<128x128xf32>, vector<40x128xf32> -> vector<40x128xf32>
    %55 = vector.broadcast %51 : vector<1x128xf32> to vector<40x128xf32>
    %56 = arith.addf %54, %55 : vector<40x128xf32>
    %cst_28 = arith.constant 0.000000e+00 : f32
    %57 = vector.shape_cast %2 : vector<1x128xi1> to vector<1x128xi1>
    %58 = vector.broadcast %57 : vector<1x128xi1> to vector<40x128xi1>
    %59 = vector.broadcast %cst_28 : f32 to vector<40x128xf32>
    %60 = arith.select %58, %56, %59 : vector<40x128xi1>, vector<40x128xf32>
    %cst_29 = arith.constant dense<0.000000e+00> : vector<40xf32>
    %61 = vector.multi_reduction <add>, %60, %cst_29 [1] : vector<40x128xf32> to vector<40xf32>
    %62 = vector.shape_cast %61 : vector<40xf32> to vector<40x1xf32>
    %cst_30 = arith.constant 0.0333333351 : f32
    %63 = vector.broadcast %cst_30 : f32 to vector<40x1xf32>
    %64 = arith.mulf %62, %63 : vector<40x1xf32>
    %65 = vector.broadcast %64 : vector<40x1xf32> to vector<40x128xf32>
    %66 = arith.subf %60, %65 : vector<40x128xf32>
    %cst_31 = arith.constant 0.000000e+00 : f32
    %67 = vector.shape_cast %2 : vector<1x128xi1> to vector<1x128xi1>
    %68 = vector.broadcast %67 : vector<1x128xi1> to vector<40x128xi1>
    %69 = vector.broadcast %cst_31 : f32 to vector<40x128xf32>
    %70 = arith.select %68, %66, %69 : vector<40x128xi1>, vector<40x128xf32>
    %71 = arith.mulf %70, %70 : vector<40x128xf32>
    %cst_32 = arith.constant dense<0.000000e+00> : vector<40xf32>
    %72 = vector.multi_reduction <add>, %71, %cst_32 [1] : vector<40x128xf32> to vector<40xf32>
    %73 = vector.shape_cast %72 : vector<40xf32> to vector<40x1xf32>
    %cst_33 = arith.constant 0.0333333351 : f32
    %74 = vector.broadcast %cst_33 : f32 to vector<40x1xf32>
    %75 = arith.mulf %73, %74 : vector<40x1xf32>
    %cst_34 = arith.constant 9.99999974E-6 : f32
    %76 = vector.broadcast %cst_34 : f32 to vector<40x1xf32>
    %77 = arith.addf %75, %76 : vector<40x1xf32>
    %78 = math.rsqrt %77 : vector<40x1xf32>
    %79 = vector.broadcast %78 : vector<40x1xf32> to vector<40x128xf32>
    %80 = vector.broadcast %52 : vector<1x128xf32> to vector<40x128xf32>
    %81 = arith.mulf %79, %80 : vector<40x128xf32>
    %82 = arith.mulf %70, %81 : vector<40x128xf32>
    %83 = vector.broadcast %53 : vector<1x128xf32> to vector<40x128xf32>
    %84 = arith.addf %82, %83 : vector<40x128xf32>
    %cst_35 = arith.constant 0.000000e+00 : f32
    %85 = vector.broadcast %cst_35 : f32 to vector<40x128xf32>
    %86 = arith.maximumf %84, %85 : vector<40x128xf32>
    %87 = arith.addf %10, %86 : vector<40x128xf32>
    %c2_36 = arith.constant 2 : index
    %c0_37 = arith.constant 0 : index
    %c0_38 = arith.constant 0 : index
    %88 = vector.load %arg3[%c2_36, %c0_37, %c0_38] : memref<5x128x128xf32, #tpu.memory_space<vmem>>, vector<1x128x128xf32>
    %89 = vector.shape_cast %88 : vector<1x128x128xf32> to vector<128x128xf32>
    %c7 = arith.constant 7 : index
    %c0_39 = arith.constant 0 : index
    %90 = vector.load %arg4[%c7, %c0_39] : memref<16x128xf32, #tpu.memory_space<vmem>>, vector<1x128xf32>
    %c8 = arith.constant 8 : index
    %c0_40 = arith.constant 0 : index
    %91 = vector.load %arg4[%c8, %c0_40] : memref<16x128xf32, #tpu.memory_space<vmem>>, vector<1x128xf32>
    %c9 = arith.constant 9 : index
    %c0_41 = arith.constant 0 : index
    %92 = vector.load %arg4[%c9, %c0_41] : memref<16x128xf32, #tpu.memory_space<vmem>>, vector<1x128xf32>
    %cst_42 = arith.constant dense<0.000000e+00> : vector<40x128xf32>
    %93 = tpu.matmul %87, %89, %cst_42 {dimension_numbers = #tpu.dot_dimension_numbers<[1], [0], [0], [1], [0, 0, 1, 1], [], []>} : vector<40x128xf32>, vector<128x128xf32>, vector<40x128xf32> -> vector<40x128xf32>
    %94 = vector.broadcast %90 : vector<1x128xf32> to vector<40x128xf32>
    %95 = arith.addf %93, %94 : vector<40x128xf32>
    %cst_43 = arith.constant 0.000000e+00 : f32
    %96 = vector.shape_cast %2 : vector<1x128xi1> to vector<1x128xi1>
    %97 = vector.broadcast %96 : vector<1x128xi1> to vector<40x128xi1>
    %98 = vector.broadcast %cst_43 : f32 to vector<40x128xf32>
    %99 = arith.select %97, %95, %98 : vector<40x128xi1>, vector<40x128xf32>
    %cst_44 = arith.constant dense<0.000000e+00> : vector<40xf32>
    %100 = vector.multi_reduction <add>, %99, %cst_44 [1] : vector<40x128xf32> to vector<40xf32>
    %101 = vector.shape_cast %100 : vector<40xf32> to vector<40x1xf32>
    %cst_45 = arith.constant 0.0333333351 : f32
    %102 = vector.broadcast %cst_45 : f32 to vector<40x1xf32>
    %103 = arith.mulf %101, %102 : vector<40x1xf32>
    %104 = vector.broadcast %103 : vector<40x1xf32> to vector<40x128xf32>
    %105 = arith.subf %99, %104 : vector<40x128xf32>
    %cst_46 = arith.constant 0.000000e+00 : f32
    %106 = vector.shape_cast %2 : vector<1x128xi1> to vector<1x128xi1>
    %107 = vector.broadcast %106 : vector<1x128xi1> to vector<40x128xi1>
    %108 = vector.broadcast %cst_46 : f32 to vector<40x128xf32>
    %109 = arith.select %107, %105, %108 : vector<40x128xi1>, vector<40x128xf32>
    %110 = arith.mulf %109, %109 : vector<40x128xf32>
    %cst_47 = arith.constant dense<0.000000e+00> : vector<40xf32>
    %111 = vector.multi_reduction <add>, %110, %cst_47 [1] : vector<40x128xf32> to vector<40xf32>
    %112 = vector.shape_cast %111 : vector<40xf32> to vector<40x1xf32>
    %cst_48 = arith.constant 0.0333333351 : f32
    %113 = vector.broadcast %cst_48 : f32 to vector<40x1xf32>
    %114 = arith.mulf %112, %113 : vector<40x1xf32>
    %cst_49 = arith.constant 9.99999974E-6 : f32
    %115 = vector.broadcast %cst_49 : f32 to vector<40x1xf32>
    %116 = arith.addf %114, %115 : vector<40x1xf32>
    %117 = math.rsqrt %116 : vector<40x1xf32>
    %118 = vector.broadcast %117 : vector<40x1xf32> to vector<40x128xf32>
    %119 = vector.broadcast %91 : vector<1x128xf32> to vector<40x128xf32>
    %120 = arith.mulf %118, %119 : vector<40x128xf32>
    %121 = arith.mulf %109, %120 : vector<40x128xf32>
    %122 = vector.broadcast %92 : vector<1x128xf32> to vector<40x128xf32>
    %123 = arith.addf %121, %122 : vector<40x128xf32>
    %cst_50 = arith.constant 0.000000e+00 : f32
    %124 = vector.broadcast %cst_50 : f32 to vector<40x128xf32>
    %125 = arith.maximumf %123, %124 : vector<40x128xf32>
    %c3_51 = arith.constant 3 : index
    %c0_52 = arith.constant 0 : index
    %c0_53 = arith.constant 0 : index
    %126 = vector.load %arg3[%c3_51, %c0_52, %c0_53] : memref<5x128x128xf32, #tpu.memory_space<vmem>>, vector<1x128x128xf32>
    %127 = vector.shape_cast %126 : vector<1x128x128xf32> to vector<128x128xf32>
    %c10 = arith.constant 10 : index
    %c0_54 = arith.constant 0 : index
    %128 = vector.load %arg4[%c10, %c0_54] : memref<16x128xf32, #tpu.memory_space<vmem>>, vector<1x128xf32>
    %c11 = arith.constant 11 : index
    %c0_55 = arith.constant 0 : index
    %129 = vector.load %arg4[%c11, %c0_55] : memref<16x128xf32, #tpu.memory_space<vmem>>, vector<1x128xf32>
    %c12 = arith.constant 12 : index
    %c0_56 = arith.constant 0 : index
    %130 = vector.load %arg4[%c12, %c0_56] : memref<16x128xf32, #tpu.memory_space<vmem>>, vector<1x128xf32>
    %cst_57 = arith.constant dense<0.000000e+00> : vector<40x128xf32>
    %131 = tpu.matmul %125, %127, %cst_57 {dimension_numbers = #tpu.dot_dimension_numbers<[1], [0], [0], [1], [0, 0, 1, 1], [], []>} : vector<40x128xf32>, vector<128x128xf32>, vector<40x128xf32> -> vector<40x128xf32>
    %132 = vector.broadcast %128 : vector<1x128xf32> to vector<40x128xf32>
    %133 = arith.addf %131, %132 : vector<40x128xf32>
    %cst_58 = arith.constant 0.000000e+00 : f32
    %134 = vector.shape_cast %2 : vector<1x128xi1> to vector<1x128xi1>
    %135 = vector.broadcast %134 : vector<1x128xi1> to vector<40x128xi1>
    %136 = vector.broadcast %cst_58 : f32 to vector<40x128xf32>
    %137 = arith.select %135, %133, %136 : vector<40x128xi1>, vector<40x128xf32>
    %cst_59 = arith.constant dense<0.000000e+00> : vector<40xf32>
    %138 = vector.multi_reduction <add>, %137, %cst_59 [1] : vector<40x128xf32> to vector<40xf32>
    %139 = vector.shape_cast %138 : vector<40xf32> to vector<40x1xf32>
    %cst_60 = arith.constant 0.0333333351 : f32
    %140 = vector.broadcast %cst_60 : f32 to vector<40x1xf32>
    %141 = arith.mulf %139, %140 : vector<40x1xf32>
    %142 = vector.broadcast %141 : vector<40x1xf32> to vector<40x128xf32>
    %143 = arith.subf %137, %142 : vector<40x128xf32>
    %cst_61 = arith.constant 0.000000e+00 : f32
    %144 = vector.shape_cast %2 : vector<1x128xi1> to vector<1x128xi1>
    %145 = vector.broadcast %144 : vector<1x128xi1> to vector<40x128xi1>
    %146 = vector.broadcast %cst_61 : f32 to vector<40x128xf32>
    %147 = arith.select %145, %143, %146 : vector<40x128xi1>, vector<40x128xf32>
    %148 = arith.mulf %147, %147 : vector<40x128xf32>
    %cst_62 = arith.constant dense<0.000000e+00> : vector<40xf32>
    %149 = vector.multi_reduction <add>, %148, %cst_62 [1] : vector<40x128xf32> to vector<40xf32>
    %150 = vector.shape_cast %149 : vector<40xf32> to vector<40x1xf32>
    %cst_63 = arith.constant 0.0333333351 : f32
    %151 = vector.broadcast %cst_63 : f32 to vector<40x1xf32>
    %152 = arith.mulf %150, %151 : vector<40x1xf32>
    %cst_64 = arith.constant 9.99999974E-6 : f32
    %153 = vector.broadcast %cst_64 : f32 to vector<40x1xf32>
    %154 = arith.addf %152, %153 : vector<40x1xf32>
    %155 = math.rsqrt %154 : vector<40x1xf32>
    %156 = vector.broadcast %155 : vector<40x1xf32> to vector<40x128xf32>
    %157 = vector.broadcast %129 : vector<1x128xf32> to vector<40x128xf32>
    %158 = arith.mulf %156, %157 : vector<40x128xf32>
    %159 = arith.mulf %147, %158 : vector<40x128xf32>
    %160 = vector.broadcast %130 : vector<1x128xf32> to vector<40x128xf32>
    %161 = arith.addf %159, %160 : vector<40x128xf32>
    %cst_65 = arith.constant 0.000000e+00 : f32
    %162 = vector.broadcast %cst_65 : f32 to vector<40x128xf32>
    %163 = arith.maximumf %161, %162 : vector<40x128xf32>
    %164 = arith.addf %87, %163 : vector<40x128xf32>
    %c4_66 = arith.constant 4 : index
    %c0_67 = arith.constant 0 : index
    %c0_68 = arith.constant 0 : index
    %165 = vector.load %arg3[%c4_66, %c0_67, %c0_68] : memref<5x128x128xf32, #tpu.memory_space<vmem>>, vector<1x128x128xf32>
    %166 = vector.shape_cast %165 : vector<1x128x128xf32> to vector<128x128xf32>
    %cst_69 = arith.constant dense<0.000000e+00> : vector<40x128xf32>
    %167 = tpu.matmul %164, %166, %cst_69 {dimension_numbers = #tpu.dot_dimension_numbers<[1], [0], [0], [1], [0, 0, 1, 1], [], []>} : vector<40x128xf32>, vector<128x128xf32>, vector<40x128xf32> -> vector<40x128xf32>
    %c13 = arith.constant 13 : index
    %c0_70 = arith.constant 0 : index
    %168 = vector.load %arg4[%c13, %c0_70] : memref<16x128xf32, #tpu.memory_space<vmem>>, vector<1x128xf32>
    %169 = vector.broadcast %168 : vector<1x128xf32> to vector<40x128xf32>
    %170 = arith.addf %167, %169 : vector<40x128xf32>
    %171 = vector.extract_strided_slice %170 {offsets = [0, 0], sizes = [40, 3], strides = [1, 1]} : vector<40x128xf32> to vector<40x3xf32>
    %c0_71 = arith.constant 0 : index
    %c0_72 = arith.constant 0 : index
    %172 = vector.load %arg5[%c0_71, %c0_72] : memref<40x3xf32, #tpu.memory_space<vmem>>, vector<40x3xf32>
    tpu.vector_store %arg5[%c0_71, %c0_72], %171 {strides = array<i32>} : memref<40x3xf32, #tpu.memory_space<vmem>>, vector<40x3xf32>,
    return
  }
  func.func @transform_0(%arg0: i32) -> (i32, i32) {
    %c0_i32 = arith.constant 0 : i32
    %c0_i32_0 = arith.constant 0 : i32
    return %arg0, %c0_i32 : i32, i32
  }
  func.func @transform_1(%arg0: i32) -> (i32, i32) {
    %c0_i32 = arith.constant 0 : i32
    %c0_i32_0 = arith.constant 0 : i32
    %c0_i32_1 = arith.constant 0 : i32
    return %c0_i32, %c0_i32_0 : i32, i32
  }
  func.func @transform_2(%arg0: i32) -> (i32, i32, i32) {
    %c0_i32 = arith.constant 0 : i32
    %c0_i32_0 = arith.constant 0 : i32
    %c0_i32_1 = arith.constant 0 : i32
    %c0_i32_2 = arith.constant 0 : i32
    return %c0_i32, %c0_i32_0, %c0_i32_1 : i32, i32, i32
  }
  func.func @transform_3(%arg0: i32) -> (i32, i32) {
    %c0_i32 = arith.constant 0 : i32
    %c0_i32_0 = arith.constant 0 : i32
    %c0_i32_1 = arith.constant 0 : i32
    return %c0_i32, %c0_i32_0 : i32, i32
  }
  func.func @transform_4(%arg0: i32) -> (i32, i32) {
    %c0_i32 = arith.constant 0 : i32
    %c0_i32_0 = arith.constant 0 : i32
    return %arg0, %c0_i32 : i32, i32
  }
}

</mosaic_0001>

<bundles_post_ra>
// kernel: tpu_custom_call.1
= control target key start
LH: loop header
LB: loop body
LE: loop exit
PB: predicated region body
PF: predicated region fallthrough
CT: control target
= control target key end

     0   :  { %9 = vsyncpa [#allocation3], 0  ;;  %s1711_s15 = smov [#allocation2]   ;;  %s2197_s0 = inlined_call_operand.vmem [shape: f32[40,28], index: 0, kind: input, shape index: {}]   ;;  %s2198_s1 = inlined_call_operand.vmem [shape: f32[28,128], index: 1, kind: input, shape index: {}]   ;;  %s2199_s2 = inlined_call_operand.hbm [shape: f32[5,128,128], index: 2, kind: input, shape index: {}]   ;;  %s2200_s3 = inlined_call_operand.vmem [shape: f32[16,128], index: 3, kind: input, shape index: {}]   ;;  %s2201_s4 = inlined_call_operand.vmem [shape: f32[40,3], index: 4, kind: output, shape index: {}]  }
   0x1   :  { %s19_s16 = sshll.u32 %s1711_s15, 4  ;;  %s1687_s19 = scalar_lea.hbm %s2199_s2, 10240  ;;  %s20_s16 = int_to_ptr.vmem [resolvable:$true] %s19_s16 }
   0x2   :  { %p1688_p0 = scmp.ne.s32.totalorder %s2199_s2, %s1687_s19  ;;  %p1691_p1 = scmp.lt.u32.totalorder %s1687_s19, %s2199_s2 }
   0x4   :  { %p1693_p2 = pnand %p1691_p1, %p1688_p0 }
   0x6   :  { %1696 = shalt.err (!%p1693_p2)
}
   0x7   :  { %s1697_s24 = scalar_lea.vmem %s20_s16, 10240  ;;  %p1702_p4 = scmp.lt.s32.totalorder %s20_s16, %s20_s16 }
   0x8   :  { %p1698_p3 = scmp.ne.s32.totalorder %s20_s16, %s1697_s24  ;;  %p1703_p5 = scmp.lt.s32.totalorder %s1697_s24, %s1697_s24 }
   0xa   :  { %p1704_p6 = por %p1703_p5, %p1702_p4 }
   0xc   :  { %p1705_p7 = pnand %p1704_p6, %p1698_p3 }
   0xe   :  { %1708 = shalt.err (!%p1705_p7)
}
   0xf   :  { %s1712_s25 = smov 128   ;;  %s1713_s26 = smov 8  }
  0x10   :  { %25 = dma.hbm_to_vmem [thread:$0]  %s2199_s2, 10240, %s20_s16, [#allocation3], %s1712_s25, %s1712_s25, %s1713_s26  }
  0x11   :  { %1709 = dma.done.wait [#allocation3], 10240  }
  0x12   :  { %1710 = vsyncadd [#allocation3], 4294957056  ;;  %v1714_v0 = vmov 0.0|0.0   ;;  %vm1715_vm0 = vmmov 0   ;;  %v1716_v1 = vmov 0.0   ;;  %v39_v2 = vld [vmem:[%s2198_s1] sm:$0xff]  ;;  %v31_v58 = vlaneseq }
  0x13   :  { %1497 = vmatprep.subr.bf16.mxu0 %v1714_v0  ;;  %1504 = vmatprep.subr.bf16.mxu1 %v1714_v0  ;;  %v40_v3 = vld [vmem:[%s2198_s1 + $0x8] sm:$0xff]  ;;  %v41_v4 = vld [vmem:[%s2198_s1 + $0x10] sm:$0xff]  ;;  %v42_v6 = vld [vmem:[%s2198_s1 + $0x18] sm:$0xf]  ;;  %vm64_vm1 = vcmask 1043456   ;;  %vm1717_vm2 = vmmov 1  }
  0x14   :  { %1247 = vmatprep.mubr.msk.f32.mxu0 %vm1715_vm0, %v1716_v1  ;;  %1294 = vmatprep.mubr.msk.f32.mxu1 %vm1715_vm0, %v1716_v1  ;;  %v1498_v5 = vpack.c.bf16 %v40_v3, %v39_v2  ;;  %v1501_v7 = vpack.c.bf16 %v42_v6, %v41_v4  ;;  %v163_v8 = vld [vmem:[#allocation2] sm:$0xff]  ;;  %v164_v9 = vld [vmem:[#allocation2 + $0x8] sm:$0xff]  ;;  %v165_v10 = vld [vmem:[#allocation2 + $0x10] sm:$0xff]  ;;  %vm48_vm4 = vcmask 228352   ;;  %v1851_v59 = vand.u32 127, %v31_v58 }
  0x15   :  { %vm1502_vm3 = vmpackc.low %vm64_vm1, %vm1717_vm2  ;;  %v1505_v11 = vpack.c.bf16 %v164_v9, %v163_v8  ;;  %v166_v12 = vld [vmem:[#allocation2 + $0x18] sm:$0xff]  ;;  %v34_v14 = vld [vmem:[%s2197_s0] sm:$0xff]  ;;  %vm1094_vm6 = vcmask 23552  }
  0x16   :  { %1499 = vmatpush3.bf16.msra.mxu0 %v1498_v5  ;;  %v1508_v13 = vpack.c.bf16 %v166_v12, %v165_v10  ;;  %v167_v15 = vld [vmem:[#allocation2 + $0x20] sm:$0xff]  ;;  %v168_v16 = vld [vmem:[#allocation2 + $0x28] sm:$0xff]  ;;  %v169_v19 = vld [vmem:[#allocation2 + $0x30] sm:$0xff]  ;;  %vm33_vm5 = vcmp.lt.s32.totalorder %v1851_v59, 30 }
  0x17   :  { %1500 = vmatprep.subr.bf16.mxu0 %v1714_v0  ;;  %1506 = vmatpush3.bf16.msra.mxu1 %v1505_v11  ;;  %v1511_v17 = vpack.c.bf16 %v168_v16, %v167_v15  ;;  %v35_v18 = vld [vmem:[%s2197_s0 + $0x8] sm:$0xff]  ;;  %v170_v20 = vld [vmem:[#allocation2 + $0x38] sm:$0xff]  ;;  %v36_v22 = vld [vmem:[%s2197_s0 + $0x10] sm:$0xff] }
  0x18   :  { %1507 = vmatprep.subr.bf16.mxu1 %v1714_v0  ;;  %v1514_v21 = vpack.c.bf16 %v170_v20, %v169_v19  ;;  %v171_v23 = vld [vmem:[#allocation2 + $0x40] sm:$0xff]  ;;  %v172_v24 = vld [vmem:[#allocation2 + $0x48] sm:$0xff]  ;;  %v37_v26 = vld [vmem:[%s2197_s0 + $0x18] sm:$0xff] }
  0x19   :  { %v1517_v25 = vpack.c.bf16 %v172_v24, %v171_v23  ;;  %v173_v27 = vld [vmem:[#allocation2 + $0x50] sm:$0xff]  ;;  %v174_v28 = vld [vmem:[#allocation2 + $0x58] sm:$0xff]  ;;  %v38_v30 = vld [vmem:[%s2197_s0 + $0x20] sm:$0xff] }
  0x1a   :  { %1503 = vmatpush3.bf16.msk.msra.mxu0 %vm1502_vm3, %v1501_v7  ;;  %v1520_v29 = vpack.c.bf16 %v174_v28, %v173_v27  ;;  %v175_v31 = vld [vmem:[#allocation2 + $0x60] sm:$0xff]  ;;  %v176_v32 = vld [vmem:[#allocation2 + $0x68] sm:$0xff]  ;;  %v177_v34 = vld [vmem:[#allocation2 + $0x70] sm:$0xff] }
  0x1b   :  { %1528 = vmatprep.subr.bf16.mxu0 %v1714_v0  ;;  %1509 = vmatpush3.bf16.msra.mxu1 %v1508_v13  ;;  %v1523_v33 = vpack.c.bf16 %v176_v32, %v175_v31  ;;  %v178_v35 = vld [vmem:[#allocation2 + $0x78] sm:$0xff]  ;;  %v1105_v37 = vld [vmem:[%s2200_s3] ss:$0 sm:$0xff]  ;;  %v1112_v60 = vld [vmem:[%s2200_s3 + $0x1] ss:$0 sm:$0xff] }
  0x1c   :  { %1510 = vmatprep.subr.bf16.mxu1 %v1714_v0  ;;  %v1526_v36 = vpack.c.bf16 %v178_v35, %v177_v34  ;;  %v367_v19 = vld [vmem:[#allocation2 + $0x80] sm:$0xff]  ;;  %v368_v20 = vld [vmem:[#allocation2 + $0x88] sm:$0xff]  ;;  %v370_v23 = vld [vmem:[#allocation2 + $0x98] sm:$0xff] }
  0x1d   :  { %1248 = vmatmul.mubr.msk.f32.vlgmr.msra.gmra.mrb[0].mxu0 %vm48_vm4, %v34_v14  ;;  %v371_v58 = vld [vmem:[#allocation2 + $0xa0] sm:$0xff] }
  0x1e   :  { %1250 = vmatprep.mubr.msk.f32.mxu0 %vm1715_vm0, %v1716_v1  ;;  %v991_v59 = vld [vmem:[#allocation2 + $0x240] sm:$0xff] }
  0x1f   :  { %1512 = vmatpush3.bf16.msra.mxu1 %v1511_v17 }
  0x20   :  { %1513 = vmatprep.subr.bf16.mxu1 %v1714_v0 }
  0x21   :  { %1251 = vmatmul.mubr.msk.f32.gmra.mrb[2].mxu0 %vm48_vm4, %v35_v18 }
  0x22   :  { %1253 = vmatprep.mubr.msk.f32.mxu0 %vm1715_vm0, %v1716_v1 }
  0x23   :  { %1515 = vmatpush3.bf16.msra.mxu1 %v1514_v21  ;;  %v369_v21 = vld [vmem:[#allocation2 + $0x90] sm:$0xff] }
  0x24   :  { %1516 = vmatprep.subr.bf16.mxu1 %v1714_v0  ;;  %v1532_v24 = vpack.c.bf16 %v370_v23, %v369_v21 }
  0x25   :  { %1254 = vmatmul.mubr.msk.f32.gmra.mrb[4].mxu0 %vm48_vm4, %v36_v22  ;;  %v1529_v22 = vpack.c.bf16 %v368_v20, %v367_v19 }
  0x26   :  { %1256 = vmatprep.mubr.msk.f32.mxu0 %vm1715_vm0, %v1716_v1 }
  0x27   :  { %1518 = vmatpush3.bf16.msra.mxu1 %v1517_v25  ;;  %1530 = vmatpush3.bf16.msra.mxu0 %v1529_v22 }
  0x28   :  { %1519 = vmatprep.subr.bf16.mxu1 %v1714_v0  ;;  %1531 = vmatprep.subr.bf16.mxu0 %v1714_v0 }
  0x29   :  { %1257 = vmatmul.mubr.msk.f32.gmra.mrb[6].mxu0 %vm48_vm4, %v37_v26 }
  0x2a   :  { %1259 = vmatprep.mubr.msk.f32.mxu0 %vm1715_vm0, %v1716_v1 }
  0x2b   :  { %1521 = vmatpush3.bf16.msra.mxu1 %v1520_v29  ;;  %1533 = vmatpush3.bf16.msra.mxu0 %v1532_v24 }
  0x2c   :  { %1522 = vmatprep.subr.bf16.mxu1 %v1714_v0  ;;  %1534 = vmatprep.subr.bf16.mxu0 %v1714_v0 }
  0x2d   :  { %1260 = vmatmul.mubr.msk.f32.gmra.mrb[8].mxu0 %vm48_vm4, %v38_v30 }
  0x2e   :  { %1341 = vmatprep.mubr.msk.f32.mxu0 %vm1715_vm0, %v1716_v1 }
  0x2f   :  { %1524 = vmatpush3.bf16.msra.mxu1 %v1523_v33 }
  0x30   :  { %1525 = vmatprep.subr.bf16.mxu1 %v1714_v0 }
  0x33   :  { %1527 = vmatpush3.bf16.msra.mxu1 %v1526_v36 }
  0x34   :  { %1552 = vmatprep.subr.bf16.mxu1 %v1714_v0 }
  0xf0   :  { %v134_v38 = vpop.f32.mrb[0].mxu0 }
  0xf1   :  { %v1816_v39 = vadd.f32 %v1105_v37, %v134_v38  ;;  %v1249_v40 = vpop.f32.mrb[1].mxu0 }
  0xf3   :  { %v158_v41 = vmax.f32 %v1816_v39, 0.0 }
  0xf4   :  { %v139_v42 = vpop.f32.mrb[2].mxu0 }
  0xf5   :  { %v1819_v43 = vadd.f32 %v1105_v37, %v139_v42  ;;  %v1252_v44 = vpop.f32.mrb[3].mxu0  ;;  %1295 = vmatmul.mubr.f32.vlgmr.msra.gmra.mrb[0].mxu1 %v158_v41 }
  0xf6   :  { %1297 = vmatprep.mubr.msk.f32.mxu1 %vm1715_vm0, %v1716_v1 }
  0xf7   :  { %v159_v45 = vmax.f32 %v1819_v43, 0.0 }
  0xf8   :  { %v144_v46 = vpop.f32.mrb[4].mxu0 }
  0xf9   :  { %v1826_v47 = vadd.f32 %v1105_v37, %v144_v46  ;;  %v1255_v48 = vpop.f32.mrb[5].mxu0  ;;  %1298 = vmatmul.mubr.f32.gmra.mrb[2].mxu1 %v159_v45 }
  0xfa   :  { %1300 = vmatprep.mubr.msk.f32.mxu1 %vm1715_vm0, %v1716_v1 }
  0xfb   :  { %v160_v49 = vmax.f32 %v1826_v47, 0.0 }
  0xfc   :  { %v149_v50 = vpop.f32.mrb[6].mxu0 }
  0xfd   :  { %v1833_v51 = vadd.f32 %v1105_v37, %v149_v50  ;;  %v1258_v52 = vpop.f32.mrb[7].mxu0  ;;  %1301 = vmatmul.mubr.f32.gmra.mrb[4].mxu1 %v160_v49 }
  0xfe   :  { %1303 = vmatprep.mubr.msk.f32.mxu1 %vm1715_vm0, %v1716_v1 }
  0xff   :  { %v161_v53 = vmax.f32 %v1833_v51, 0.0  ;;  %v1118_v51 = vld [vmem:[%s2200_s3 + $0x7] ss:$0 sm:$0xff] }
 0x100   :  { %v154_v54 = vpop.f32.mrb[8].mxu0 }
 0x101   :  { %v1840_v55 = vadd.f32 %v1105_v37, %v154_v54  ;;  %v1261_v56 = vpop.f32.mrb[9].mxu0  ;;  %1304 = vmatmul.mubr.f32.gmra.mrb[6].mxu1 %v161_v53 }
 0x102   :  { %1306 = vmatprep.mubr.msk.f32.mxu1 %vm1715_vm0, %v1716_v1 }
 0x103   :  { %v162_v57 = vmax.f32 %v1840_v55, 0.0 }
 0x105   :  { %1307 = vmatmul.mubr.f32.gmra.mrb[8].mxu1 %v162_v57 }
 0x106   :  { %1388 = vmatprep.mubr.msk.f32.mxu1 %vm1715_vm0, %v1716_v1 }
 0x1c8   :  { %v252_v61 = vpop.f32.mrb[0].mxu1 }
 0x1c9   :  { %v253_v62 = vadd.f32 %v1112_v60, %v252_v61  ;;  %v1296_v63 = vpop.f32.mrb[1].mxu1 }
 0x1cb   :  { %v278_v2 = vsel %vm33_vm5, %v253_v62, 0.0 }
 0x1cc   :  { %283 = vadd.xlane.f32.xlu0 %v278_v2  ;;  %v257_v3 = vpop.f32.mrb[2].mxu1 }
 0x1cd   :  { %v258_v4 = vadd.f32 %v1112_v60, %v257_v3  ;;  %v1299_v5 = vpop.f32.mrb[3].mxu1  ;;  %v374_v3 = vld [vmem:[#allocation2 + $0xb8] sm:$0xff] }
 0x1ce   :  { %v375_v5 = vld [vmem:[#allocation2 + $0xc0] sm:$0xff] }
 0x1cf   :  { %v279_v6 = vsel %vm33_vm5, %v258_v4, 0.0 }
 0x1d0   :  { %285 = vadd.xlane.f32.xlu0 %v279_v6  ;;  %v262_v7 = vpop.f32.mrb[4].mxu1 }
 0x1d1   :  { %v263_v8 = vadd.f32 %v1112_v60, %v262_v7  ;;  %v1302_v9 = vpop.f32.mrb[5].mxu1 }
 0x1d2   :  { %v378_v9 = vld [vmem:[#allocation2 + $0xd8] sm:$0xff] }
 0x1d3   :  { %v280_v10 = vsel %vm33_vm5, %v263_v8, 0.0  ;;  %v377_v8 = vld [vmem:[#allocation2 + $0xd0] sm:$0xff] }
 0x1d4   :  { %287 = vadd.xlane.f32.xlu1 %v280_v10  ;;  %v267_v11 = vpop.f32.mrb[6].mxu1 }
 0x1d5   :  { %v268_v12 = vadd.f32 %v1112_v60, %v267_v11  ;;  %v1305_v13 = vpop.f32.mrb[7].mxu1  ;;  %v379_v11 = vld [vmem:[#allocation2 + $0xe0] sm:$0xff] }
 0x1d7   :  { %v281_v14 = vsel %vm33_vm5, %v268_v12, 0.0  ;;  %v380_v12 = vld [vmem:[#allocation2 + $0xe8] sm:$0xff] }
 0x1d8   :  { %289 = vadd.xlane.f32.xlu1 %v281_v14  ;;  %v272_v15 = vpop.f32.mrb[8].mxu1  ;;  %v1547_v13 = vpack.c.bf16 %v380_v12, %v379_v11 }
 0x1d9   :  { %v273_v16 = vadd.f32 %v1112_v60, %v272_v15  ;;  %v1308_v17 = vpop.f32.mrb[9].mxu1  ;;  %v372_v60 = vld [vmem:[#allocation2 + $0xa8] sm:$0xff]  ;;  %v382_v15 = vld [vmem:[#allocation2 + $0xf8] sm:$0xff] }
 0x1da   :  { %v1535_v61 = vpack.c.bf16 %v372_v60, %v371_v58 }
 0x1db   :  { %v282_v18 = vsel %vm33_vm5, %v273_v16, 0.0 }
 0x1dc   :  { %291 = vadd.xlane.f32.xlu0 %v282_v18  ;;  %1536 = vmatpush3.bf16.msra.mxu0 %v1535_v61 }
 0x1dd   :  { %1537 = vmatprep.subr.bf16.mxu0 %v1714_v0 }
 0x259   :  { %v284_v25 = vpop.xlane.xlu0 %283 }
 0x25a   :  { %v293_v26 = vmul.f32 0.033333335, %v284_v25 }
 0x25c   :  { %v298_v27 = vsub.f32 %v278_v2, %v293_v26  ;;  %v373_v2 = vld [vmem:[#allocation2 + $0xb0] sm:$0xff] }
 0x25d   :  { %v286_v28 = vpop.xlane.xlu0 %285  ;;  %v1538_v4 = vpack.c.bf16 %v374_v3, %v373_v2 }
 0x25e   :  { %v294_v29 = vmul.f32 0.033333335, %v286_v28  ;;  %v1871_v30 = vsel %vm33_vm5, %v298_v27, 0.0  ;;  %v1113_v27 = vld [vmem:[%s2200_s3 + $0x2] ss:$0 sm:$0xff] }
 0x25f   :  { %v308_v31 = vmul.f32 %v1871_v30, %v1871_v30  ;;  %1539 = vmatpush3.bf16.msra.mxu0 %v1538_v4 }
 0x260   :  { %v299_v32 = vsub.f32 %v279_v6, %v294_v29  ;;  %1540 = vmatprep.subr.bf16.mxu0 %v1714_v0  ;;  %v376_v6 = vld [vmem:[#allocation2 + $0xc8] sm:$0xff] }
 0x261   :  { %v288_v33 = vpop.xlane.xlu1 %287  ;;  %313 = vadd.xlane.f32.xlu1 %v308_v31  ;;  %v1541_v7 = vpack.c.bf16 %v376_v6, %v375_v5 }
 0x262   :  { %v295_v34 = vmul.f32 0.033333335, %v288_v33  ;;  %v1877_v35 = vsel %vm33_vm5, %v299_v32, 0.0 }
 0x263   :  { %v309_v36 = vmul.f32 %v1877_v35, %v1877_v35  ;;  %1542 = vmatpush3.bf16.msra.mxu0 %v1541_v7 }
 0x264   :  { %v300_v37 = vsub.f32 %v280_v10, %v295_v34  ;;  %1543 = vmatprep.subr.bf16.mxu0 %v1714_v0  ;;  %v1544_v10 = vpack.c.bf16 %v378_v9, %v377_v8 }
 0x265   :  { %v290_v38 = vpop.xlane.xlu1 %289  ;;  %315 = vadd.xlane.f32.xlu0 %v309_v36  ;;  %v1114_v36 = vld [vmem:[%s2200_s3 + $0x3] ss:$0 sm:$0xff] }
 0x266   :  { %v296_v40 = vmul.f32 0.033333335, %v290_v38  ;;  %v1883_v42 = vsel %vm33_vm5, %v300_v37, 0.0 }
 0x267   :  { %v310_v44 = vmul.f32 %v1883_v42, %v1883_v42  ;;  %1545 = vmatpush3.bf16.msra.mxu0 %v1544_v10 }
 0x268   :  { %v301_v46 = vsub.f32 %v281_v14, %v296_v40  ;;  %1546 = vmatprep.subr.bf16.mxu0 %v1714_v0  ;;  %v381_v14 = vld [vmem:[#allocation2 + $0xf0] sm:$0xff] }
 0x269   :  { %317 = vadd.xlane.f32.xlu1 %v310_v44  ;;  %v292_v48 = vpop.xlane.xlu0 %291  ;;  %v1550_v16 = vpack.c.bf16 %v382_v15, %v381_v14 }
 0x26a   :  { %v297_v50 = vmul.f32 0.033333335, %v292_v48  ;;  %v1889_v52 = vsel %vm33_vm5, %v301_v46, 0.0 }
 0x26b   :  { %v311_v54 = vmul.f32 %v1889_v52, %v1889_v52  ;;  %1548 = vmatpush3.bf16.msra.mxu0 %v1547_v13 }
 0x26c   :  { %v302_v56 = vsub.f32 %v282_v18, %v297_v50  ;;  %1549 = vmatprep.subr.bf16.mxu0 %v1714_v0 }
 0x26d   :  { %319 = vadd.xlane.f32.xlu0 %v311_v54 }
 0x26e   :  { %v1895_v62 = vsel %vm33_vm5, %v302_v56, 0.0 }
 0x26f   :  { %v312_v63 = vmul.f32 %v1895_v62, %v1895_v62  ;;  %1551 = vmatpush3.bf16.msra.mxu0 %v1550_v16 }
 0x270   :  { %1576 = vmatprep.subr.bf16.mxu0 %v1714_v0 }
 0x271   :  { %321 = vadd.xlane.f32.xlu1 %v312_v63 }
 0x2ee   :  { %v314_v17 = vpop.xlane.xlu1 %313 }
 0x2ef   :  { %v323_v18 = vmul.f32 0.033333335, %v314_v17 }
 0x2f1   :  { %v328_v19 = vadd.f32 1e-05, %v323_v18 }
 0x2f2   :  { %v316_v20 = vpop.xlane.xlu0 %315 }
 0x2f3   :  { %1647 = vrsqrt.f32 %v328_v19  ;;  %v324_v21 = vmul.f32 0.033333335, %v316_v20 }
 0x2f5   :  { %v329_v22 = vadd.f32 1e-05, %v324_v21 }
 0x2f6   :  { %v318_v23 = vpop.xlane.xlu1 %317 }
 0x2f7   :  { %1649 = vrsqrt.f32 %v329_v22  ;;  %v325_v24 = vmul.f32 0.033333335, %v318_v23 }
 0x2f9   :  { %v330_v25 = vadd.f32 1e-05, %v325_v24 }
 0x2fa   :  { %v320_v26 = vpop.xlane.xlu0 %319 }
 0x2fb   :  { %1651 = vrsqrt.f32 %v330_v25  ;;  %v326_v28 = vmul.f32 0.033333335, %v320_v26 }
 0x2fd   :  { %v1648_v29 = vpop.eup %1647  ;;  %v331_v31 = vadd.f32 1e-05, %v326_v28 }
 0x2fe   :  { %v342_v32 = vmul.f32 %v1648_v29, %v1113_v27  ;;  %v322_v33 = vpop.xlane.xlu1 %321  ;;  %v574_v29 = vld [vmem:[#allocation2 + $0x100] sm:$0xff] }
 0x2ff   :  { %1653 = vrsqrt.f32 %v331_v31  ;;  %v327_v34 = vmul.f32 0.033333335, %v322_v33  ;;  %v575_v31 = vld [vmem:[#allocation2 + $0x108] sm:$0xff] }
 0x300   :  { %v347_v37 = vmul.f32 %v342_v32, %v1871_v30  ;;  %v576_v32 = vld [vmem:[#allocation2 + $0x110] sm:$0xff]  ;;  %v1553_v33 = vpack.c.bf16 %v575_v31, %v574_v29 }
 0x301   :  { %v1650_v38 = vpop.eup %1649  ;;  %v332_v40 = vadd.f32 1e-05, %v327_v34  ;;  %v577_v34 = vld [vmem:[#allocation2 + $0x118] sm:$0xff] }
 0x302   :  { %v356_v44 = vadd.f32 %v1114_v36, %v347_v37  ;;  %v343_v46 = vmul.f32 %v1650_v38, %v1113_v27  ;;  %1554 = vmatpush3.bf16.msra.mxu1 %v1553_v33 }
 0x303   :  { %1655 = vrsqrt.f32 %v332_v40  ;;  %1555 = vmatprep.subr.bf16.mxu1 %v1714_v0 }
 0x304   :  { %v361_v48 = vmax.f32 %v356_v44, 0.0  ;;  %v348_v50 = vmul.f32 %v343_v46, %v1877_v35 }
 0x305   :  { %v1652_v54 = vpop.eup %1651 }
 0x306   :  { %1342 = vmatmul.mubr.f32.vlgmr.msra.gmra.mrb[10].mxu0 %v361_v48  ;;  %v357_v56 = vadd.f32 %v1114_v36, %v348_v50  ;;  %v344_v58 = vmul.f32 %v1652_v54, %v1113_v27 }
 0x307   :  { %1344 = vmatprep.mubr.msk.f32.mxu0 %vm1715_vm0, %v1716_v1 }
 0x308   :  { %v362_v60 = vmax.f32 %v357_v56, 0.0  ;;  %v349_v61 = vmul.f32 %v344_v58, %v1883_v42 }
 0x309   :  { %v1654_v63 = vpop.eup %1653 }
 0x30a   :  { %1345 = vmatmul.mubr.f32.gmra.mrb[12].mxu0 %v362_v60  ;;  %v358_v30 = vadd.f32 %v1114_v36, %v349_v61  ;;  %v345_v2 = vmul.f32 %v1654_v63, %v1113_v27 }
 0x30b   :  { %1347 = vmatprep.mubr.msk.f32.mxu0 %vm1715_vm0, %v1716_v1 }
 0x30c   :  { %v363_v3 = vmax.f32 %v358_v30, 0.0  ;;  %v350_v35 = vmul.f32 %v345_v2, %v1889_v52  ;;  %v1115_v52 = vld [vmem:[%s2200_s3 + $0x4] ss:$0 sm:$0xff] }
 0x30d   :  { %v1656_v4 = vpop.eup %1655 }
 0x30e   :  { %1348 = vmatmul.mubr.f32.gmra.mrb[14].mxu0 %v363_v3  ;;  %v359_v5 = vadd.f32 %v1114_v36, %v350_v35  ;;  %v346_v6 = vmul.f32 %v1656_v4, %v1113_v27 }
 0x30f   :  { %1350 = vmatprep.mubr.msk.f32.mxu0 %vm1715_vm0, %v1716_v1 }
 0x310   :  { %v364_v7 = vmax.f32 %v359_v5, 0.0  ;;  %v351_v42 = vmul.f32 %v346_v6, %v1895_v62 }
 0x312   :  { %1351 = vmatmul.mubr.f32.gmra.mrb[16].mxu0 %v364_v7  ;;  %v360_v8 = vadd.f32 %v1114_v36, %v351_v42  ;;  %v1556_v36 = vpack.c.bf16 %v577_v34, %v576_v32 }
 0x313   :  { %1353 = vmatprep.mubr.msk.f32.mxu0 %vm1715_vm0, %v1716_v1 }
 0x314   :  { %v365_v9 = vmax.f32 %v360_v8, 0.0  ;;  %1557 = vmatpush3.bf16.msra.mxu1 %v1556_v36 }
 0x315   :  { %1558 = vmatprep.subr.bf16.mxu1 %v1714_v0 }
 0x316   :  { %1354 = vmatmul.mubr.f32.gmra.mrb[18].mxu0 %v365_v9 }
 0x317   :  { %1435 = vmatprep.mubr.msk.f32.mxu0 %vm1715_vm0, %v1716_v1 }
 0x3d9   :  { %v456_v10 = vpop.f32.mrb[10].mxu0 }
 0x3da   :  { %v457_v11 = vadd.f32 %v1115_v52, %v456_v10  ;;  %v1343_v12 = vpop.f32.mrb[11].mxu0  ;;  %v579_v10 = vld [vmem:[#allocation2 + $0x128] sm:$0xff] }
 0x3dc   :  { %v480_v62 = vsel %vm33_vm5, %v457_v11, 0.0 }
 0x3dd   :  { %485 = vadd.xlane.f32.xlu0 %v480_v62  ;;  %v461_v13 = vpop.f32.mrb[12].mxu0 }
 0x3de   :  { %v462_v14 = vadd.f32 %v1115_v52, %v461_v13  ;;  %v1346_v15 = vpop.f32.mrb[13].mxu0  ;;  %v581_v13 = vld [vmem:[#allocation2 + $0x138] sm:$0xff] }
 0x3df   :  { %v582_v15 = vld [vmem:[#allocation2 + $0x140] sm:$0xff] }
 0x3e0   :  { %v481_v16 = vsel %vm33_vm5, %v462_v14, 0.0 }
 0x3e1   :  { %487 = vadd.xlane.f32.xlu1 %v481_v16  ;;  %v466_v17 = vpop.f32.mrb[14].mxu0 }
 0x3e2   :  { %v467_v18 = vadd.f32 %v1115_v52, %v466_v17  ;;  %v1349_v19 = vpop.f32.mrb[15].mxu0 }
 0x3e3   :  { %v585_v19 = vld [vmem:[#allocation2 + $0x158] sm:$0xff] }
 0x3e4   :  { %v482_v20 = vsel %vm33_vm5, %v467_v18, 0.0  ;;  %v584_v18 = vld [vmem:[#allocation2 + $0x150] sm:$0xff] }
 0x3e5   :  { %489 = vadd.xlane.f32.xlu0 %v482_v20  ;;  %v471_v21 = vpop.f32.mrb[16].mxu0 }
 0x3e6   :  { %v472_v22 = vadd.f32 %v1115_v52, %v471_v21  ;;  %v1352_v23 = vpop.f32.mrb[17].mxu0  ;;  %v586_v21 = vld [vmem:[#allocation2 + $0x160] sm:$0xff] }
 0x3e8   :  { %v483_v24 = vsel %vm33_vm5, %v472_v22, 0.0  ;;  %v587_v22 = vld [vmem:[#allocation2 + $0x168] sm:$0xff] }
 0x3e9   :  { %491 = vadd.xlane.f32.xlu1 %v483_v24  ;;  %v476_v25 = vpop.f32.mrb[18].mxu0  ;;  %v1571_v23 = vpack.c.bf16 %v587_v22, %v586_v21 }
 0x3ea   :  { %v477_v26 = vadd.f32 %v1115_v52, %v476_v25  ;;  %v1355_v27 = vpop.f32.mrb[19].mxu0  ;;  %v578_v52 = vld [vmem:[#allocation2 + $0x120] sm:$0xff]  ;;  %v589_v25 = vld [vmem:[#allocation2 + $0x178] sm:$0xff] }
 0x3eb   :  { %v1559_v12 = vpack.c.bf16 %v579_v10, %v578_v52 }
 0x3ec   :  { %v484_v28 = vsel %vm33_vm5, %v477_v26, 0.0 }
 0x3ed   :  { %493 = vadd.xlane.f32.xlu0 %v484_v28  ;;  %1560 = vmatpush3.bf16.msra.mxu1 %v1559_v12 }
 0x3ee   :  { %1561 = vmatprep.subr.bf16.mxu1 %v1714_v0 }
 0x46a   :  { %v486_v37 = vpop.xlane.xlu0 %485 }
 0x46b   :  { %v495_v38 = vmul.f32 0.033333335, %v486_v37 }
 0x46d   :  { %v500_v40 = vsub.f32 %v480_v62, %v495_v38  ;;  %v580_v62 = vld [vmem:[#allocation2 + $0x130] sm:$0xff] }
 0x46e   :  { %v488_v44 = vpop.xlane.xlu1 %487  ;;  %v1562_v14 = vpack.c.bf16 %v581_v13, %v580_v62 }
 0x46f   :  { %v496_v46 = vmul.f32 0.033333335, %v488_v44  ;;  %v1943_v48 = vsel %vm33_vm5, %v500_v40, 0.0  ;;  %v1116_v40 = vld [vmem:[%s2200_s3 + $0x5] ss:$0 sm:$0xff] }
 0x470   :  { %v510_v50 = vmul.f32 %v1943_v48, %v1943_v48  ;;  %1563 = vmatpush3.bf16.msra.mxu1 %v1562_v14 }
 0x471   :  { %v501_v54 = vsub.f32 %v481_v16, %v496_v46  ;;  %1564 = vmatprep.subr.bf16.mxu1 %v1714_v0  ;;  %v583_v16 = vld [vmem:[#allocation2 + $0x148] sm:$0xff] }
 0x472   :  { %v490_v56 = vpop.xlane.xlu0 %489  ;;  %515 = vadd.xlane.f32.xlu1 %v510_v50  ;;  %v1565_v17 = vpack.c.bf16 %v583_v16, %v582_v15 }
 0x473   :  { %v497_v58 = vmul.f32 0.033333335, %v490_v56  ;;  %v1949_v60 = vsel %vm33_vm5, %v501_v54, 0.0 }
 0x474   :  { %v511_v61 = vmul.f32 %v1949_v60, %v1949_v60  ;;  %1566 = vmatpush3.bf16.msra.mxu1 %v1565_v17 }
 0x475   :  { %v502_v63 = vsub.f32 %v482_v20, %v497_v58  ;;  %1567 = vmatprep.subr.bf16.mxu1 %v1714_v0  ;;  %v1568_v20 = vpack.c.bf16 %v585_v19, %v584_v18 }
 0x476   :  { %v492_v30 = vpop.xlane.xlu1 %491  ;;  %517 = vadd.xlane.f32.xlu0 %v511_v61  ;;  %v1117_v61 = vld [vmem:[%s2200_s3 + $0x6] ss:$0 sm:$0xff] }
 0x477   :  { %v498_v2 = vmul.f32 0.033333335, %v492_v30  ;;  %v1955_v3 = vsel %vm33_vm5, %v502_v63, 0.0 }
 0x478   :  { %v512_v35 = vmul.f32 %v1955_v3, %v1955_v3  ;;  %1569 = vmatpush3.bf16.msra.mxu1 %v1568_v20 }
 0x479   :  { %v503_v4 = vsub.f32 %v483_v24, %v498_v2  ;;  %1570 = vmatprep.subr.bf16.mxu1 %v1714_v0  ;;  %v588_v24 = vld [vmem:[#allocation2 + $0x170] sm:$0xff] }
 0x47a   :  { %519 = vadd.xlane.f32.xlu1 %v512_v35  ;;  %v494_v5 = vpop.xlane.xlu0 %493  ;;  %v1574_v26 = vpack.c.bf16 %v589_v25, %v588_v24 }
 0x47b   :  { %v499_v6 = vmul.f32 0.033333335, %v494_v5  ;;  %v1961_v7 = vsel %vm33_vm5, %v503_v4, 0.0 }
 0x47c   :  { %v513_v42 = vmul.f32 %v1961_v7, %v1961_v7  ;;  %1572 = vmatpush3.bf16.msra.mxu1 %v1571_v23 }
 0x47d   :  { %v504_v8 = vsub.f32 %v484_v28, %v499_v6  ;;  %1573 = vmatprep.subr.bf16.mxu1 %v1714_v0 }
 0x47e   :  { %521 = vadd.xlane.f32.xlu0 %v513_v42 }
 0x47f   :  { %v1967_v9 = vsel %vm33_vm5, %v504_v8, 0.0 }
 0x480   :  { %v514_v11 = vmul.f32 %v1967_v9, %v1967_v9  ;;  %1575 = vmatpush3.bf16.msra.mxu1 %v1574_v26 }
 0x481   :  { %1624 = vmatprep.subr.bf16.mxu1 %v1714_v0 }
 0x482   :  { %523 = vadd.xlane.f32.xlu1 %v514_v11 }
 0x4ff   :  { %v516_v27 = vpop.xlane.xlu1 %515 }
 0x500   :  { %v525_v28 = vmul.f32 0.033333335, %v516_v27 }
 0x502   :  { %v530_v29 = vadd.f32 1e-05, %v525_v28 }
 0x503   :  { %v518_v31 = vpop.xlane.xlu0 %517 }
 0x504   :  { %1657 = vrsqrt.f32 %v530_v29  ;;  %v526_v32 = vmul.f32 0.033333335, %v518_v31 }
 0x506   :  { %v531_v33 = vadd.f32 1e-05, %v526_v32 }
 0x507   :  { %v520_v34 = vpop.xlane.xlu1 %519 }
 0x508   :  { %1659 = vrsqrt.f32 %v531_v33  ;;  %v527_v36 = vmul.f32 0.033333335, %v520_v34 }
 0x50a   :  { %v532_v37 = vadd.f32 1e-05, %v527_v36  ;;  %v776_v36 = vld [vmem:[#allocation2 + $0x180] sm:$0xff] }
 0x50b   :  { %v522_v38 = vpop.xlane.xlu0 %521 }
 0x50c   :  { %1661 = vrsqrt.f32 %v532_v37  ;;  %v528_v44 = vmul.f32 0.033333335, %v522_v38  ;;  %v777_v37 = vld [vmem:[#allocation2 + $0x188] sm:$0xff]  ;;  %v778_v38 = vld [vmem:[#allocation2 + $0x190] sm:$0xff] }
 0x50e   :  { %v1658_v46 = vpop.eup %1657  ;;  %v533_v50 = vadd.f32 1e-05, %v528_v44  ;;  %v779_v44 = vld [vmem:[#allocation2 + $0x198] sm:$0xff] }
 0x50f   :  { %v544_v54 = vmul.f32 %v1658_v46, %v1116_v40  ;;  %v524_v56 = vpop.xlane.xlu1 %523  ;;  %v1580_v46 = vpack.c.bf16 %v779_v44, %v778_v38 }
 0x510   :  { %1663 = vrsqrt.f32 %v533_v50  ;;  %v529_v58 = vmul.f32 0.033333335, %v524_v56 }
 0x511   :  { %v549_v63 = vmul.f32 %v544_v54, %v1943_v48 }
 0x512   :  { %v1660_v30 = vpop.eup %1659  ;;  %v534_v2 = vadd.f32 1e-05, %v529_v58 }
 0x513   :  { %v558_v35 = vadd.f32 %v1117_v61, %v549_v63  ;;  %v545_v4 = vmul.f32 %v1660_v30, %v1116_v40 }
 0x514   :  { %1665 = vrsqrt.f32 %v534_v2 }
 0x515   :  { %v563_v5 = vmax.f32 %v558_v35, 0.0  ;;  %v550_v6 = vmul.f32 %v545_v4, %v1949_v60 }
 0x516   :  { %v1662_v42 = vpop.eup %1661 }
 0x517   :  { %v1987_v8 = vadd.f32 %v563_v5, %v158_v41  ;;  %v559_v52 = vadd.f32 %v1117_v61, %v550_v6  ;;  %v546_v10 = vmul.f32 %v1662_v42, %v1116_v40 }
 0x519   :  { %1389 = vmatmul.mubr.f32.vlgmr.msra.gmra.mrb[10].mxu1 %v1987_v8  ;;  %v564_v11 = vmax.f32 %v559_v52, 0.0  ;;  %v551_v48 = vmul.f32 %v546_v10, %v1955_v3 }
 0x51a   :  { %v1664_v12 = vpop.eup %1663  ;;  %1391 = vmatprep.mubr.msk.f32.mxu1 %vm1715_vm0, %v1716_v1 }
 0x51b   :  { %v1995_v62 = vadd.f32 %v564_v11, %v159_v45  ;;  %v560_v60 = vadd.f32 %v1117_v61, %v551_v48  ;;  %v547_v13 = vmul.f32 %v1664_v12, %v1116_v40 }
 0x51d   :  { %1392 = vmatmul.mubr.f32.gmra.mrb[12].mxu1 %v1995_v62  ;;  %v565_v39 = vmax.f32 %v560_v60, 0.0  ;;  %v552_v41 = vmul.f32 %v547_v13, %v1961_v7 }
 0x51e   :  { %v1666_v14 = vpop.eup %1665  ;;  %1394 = vmatprep.mubr.msk.f32.mxu1 %vm1715_vm0, %v1716_v1 }
 0x51f   :  { %v2003_v3 = vadd.f32 %v565_v39, %v160_v49  ;;  %v561_v15 = vadd.f32 %v1117_v61, %v552_v41  ;;  %v548_v16 = vmul.f32 %v1666_v14, %v1116_v40  ;;  %v1577_v40 = vpack.c.bf16 %v777_v37, %v776_v36 }
 0x521   :  { %1395 = vmatmul.mubr.f32.gmra.mrb[14].mxu1 %v2003_v3  ;;  %v566_v43 = vmax.f32 %v561_v15, 0.0  ;;  %v553_v45 = vmul.f32 %v548_v16, %v1967_v9  ;;  %1578 = vmatpush3.bf16.msra.mxu0 %v1577_v40  ;;  %v780_v15 = vld [vmem:[#allocation2 + $0x1a0] sm:$0xff]  ;;  %v781_v16 = vld [vmem:[#allocation2 + $0x1a8] sm:$0xff] }
 0x522   :  { %1397 = vmatprep.mubr.msk.f32.mxu1 %vm1715_vm0, %v1716_v1  ;;  %1579 = vmatprep.subr.bf16.mxu0 %v1714_v0  ;;  %v1119_v40 = vld [vmem:[%s2200_s3 + $0x8] ss:$0 sm:$0xff] }
 0x523   :  { %v2011_v7 = vadd.f32 %v566_v43, %v161_v53  ;;  %v562_v17 = vadd.f32 %v1117_v61, %v553_v45  ;;  %v1583_v43 = vpack.c.bf16 %v781_v16, %v780_v15 }
 0x525   :  { %1398 = vmatmul.mubr.f32.gmra.mrb[16].mxu1 %v2011_v7  ;;  %v567_v47 = vmax.f32 %v562_v17, 0.0  ;;  %1581 = vmatpush3.bf16.msra.mxu0 %v1580_v46 }
 0x526   :  { %1400 = vmatprep.mubr.msk.f32.mxu1 %vm1715_vm0, %v1716_v1  ;;  %1582 = vmatprep.subr.bf16.mxu0 %v1714_v0 }
 0x527   :  { %v2018_v49 = vadd.f32 %v567_v47, %v162_v57  ;;  %v782_v47 = vld [vmem:[#allocation2 + $0x1b0] sm:$0xff] }
 0x529   :  { %1401 = vmatmul.mubr.f32.gmra.mrb[18].mxu1 %v2018_v49  ;;  %1584 = vmatpush3.bf16.msra.mxu0 %v1583_v43 }
 0x52a   :  { %1485 = vmatprep.mubr.msk.f32.mxu1 %vm1715_vm0, %v1716_v1  ;;  %1585 = vmatprep.subr.bf16.mxu0 %v1714_v0 }
 0x5ec   :  { %v663_v53 = vpop.f32.mrb[10].mxu1 }
 0x5ed   :  { %v664_v9 = vadd.f32 %v1118_v51, %v663_v53  ;;  %v1390_v18 = vpop.f32.mrb[11].mxu1 }
 0x5ee   :  { %v785_v18 = vld [vmem:[#allocation2 + $0x1c8] sm:$0xff] }
 0x5ef   :  { %v687_v19 = vsel %vm33_vm5, %v664_v9, 0.0  ;;  %v784_v9 = vld [vmem:[#allocation2 + $0x1c0] sm:$0xff] }
 0x5f0   :  { %692 = vadd.xlane.f32.xlu0 %v687_v19  ;;  %v668_v20 = vpop.f32.mrb[12].mxu1 }
 0x5f1   :  { %v669_v55 = vadd.f32 %v1118_v51, %v668_v20  ;;  %v1393_v57 = vpop.f32.mrb[13].mxu1  ;;  %v786_v20 = vld [vmem:[#allocation2 + $0x1d0] sm:$0xff] }
 0x5f3   :  { %v688_v21 = vsel %vm33_vm5, %v669_v55, 0.0  ;;  %v787_v55 = vld [vmem:[#allocation2 + $0x1d8] sm:$0xff] }
 0x5f4   :  { %694 = vadd.xlane.f32.xlu1 %v688_v21  ;;  %v673_v22 = vpop.f32.mrb[14].mxu1  ;;  %v1592_v57 = vpack.c.bf16 %v787_v55, %v786_v20 }
 0x5f5   :  { %v674_v23 = vadd.f32 %v1118_v51, %v673_v22  ;;  %v1396_v24 = vpop.f32.mrb[15].mxu1  ;;  %v789_v22 = vld [vmem:[#allocation2 + $0x1e8] sm:$0xff] }
 0x5f6   :  { %v790_v24 = vld [vmem:[#allocation2 + $0x1f0] sm:$0xff] }
 0x5f7   :  { %v689_v25 = vsel %vm33_vm5, %v674_v23, 0.0 }
 0x5f8   :  { %696 = vadd.xlane.f32.xlu0 %v689_v25  ;;  %v678_v26 = vpop.f32.mrb[16].mxu1 }
 0x5f9   :  { %v679_v27 = vadd.f32 %v1118_v51, %v678_v26  ;;  %v1399_v28 = vpop.f32.mrb[17].mxu1 }
 0x5fb   :  { %v690_v29 = vsel %vm33_vm5, %v679_v27, 0.0 }
 0x5fc   :  { %698 = vadd.xlane.f32.xlu1 %v690_v29  ;;  %v683_v31 = vpop.f32.mrb[18].mxu1 }
 0x5fd   :  { %v684_v32 = vadd.f32 %v1118_v51, %v683_v31  ;;  %v1402_v33 = vpop.f32.mrb[19].mxu1  ;;  %v783_v51 = vld [vmem:[#allocation2 + $0x1b8] sm:$0xff] }
 0x5fe   :  { %v1586_v53 = vpack.c.bf16 %v783_v51, %v782_v47 }
 0x5ff   :  { %v691_v34 = vsel %vm33_vm5, %v684_v32, 0.0 }
 0x600   :  { %700 = vadd.xlane.f32.xlu0 %v691_v34  ;;  %1587 = vmatpush3.bf16.msra.mxu0 %v1586_v53 }
 0x601   :  { %1588 = vmatprep.subr.bf16.mxu0 %v1714_v0 }
 0x67d   :  { %v693_v50 = vpop.xlane.xlu0 %692 }
 0x67e   :  { %v702_v54 = vmul.f32 0.033333335, %v693_v50 }
 0x680   :  { %v707_v56 = vsub.f32 %v687_v19, %v702_v54  ;;  %v1589_v19 = vpack.c.bf16 %v785_v18, %v784_v9  ;;  %v1121_v18 = vld [vmem:[%s2200_s3 + $0xa] ss:$0 sm:$0xff] }
 0x681   :  { %v695_v58 = vpop.xlane.xlu1 %694 }
 0x682   :  { %v703_v61 = vmul.f32 0.033333335, %v695_v58  ;;  %v2040_v63 = vsel %vm33_vm5, %v707_v56, 0.0  ;;  %1590 = vmatpush3.bf16.msra.mxu0 %v1589_v19 }
 0x683   :  { %v717_v30 = vmul.f32 %v2040_v63, %v2040_v63  ;;  %1591 = vmatprep.subr.bf16.mxu0 %v1714_v0 }
 0x684   :  { %v708_v2 = vsub.f32 %v688_v21, %v703_v61  ;;  %v788_v21 = vld [vmem:[#allocation2 + $0x1e0] sm:$0xff]  ;;  %v1120_v61 = vld [vmem:[%s2200_s3 + $0x9] ss:$0 sm:$0xff] }
 0x685   :  { %722 = vadd.xlane.f32.xlu1 %v717_v30  ;;  %v697_v35 = vpop.xlane.xlu0 %696  ;;  %v1595_v23 = vpack.c.bf16 %v789_v22, %v788_v21 }
 0x686   :  { %v704_v4 = vmul.f32 0.033333335, %v697_v35  ;;  %v2046_v5 = vsel %vm33_vm5, %v708_v2, 0.0  ;;  %1593 = vmatpush3.bf16.msra.mxu0 %v1592_v57 }
 0x687   :  { %v718_v6 = vmul.f32 %v2046_v5, %v2046_v5  ;;  %1594 = vmatprep.subr.bf16.mxu0 %v1714_v0 }
 0x688   :  { %v709_v42 = vsub.f32 %v689_v25, %v704_v4  ;;  %v791_v25 = vld [vmem:[#allocation2 + $0x1f8] sm:$0xff] }
 0x689   :  { %v699_v52 = vpop.xlane.xlu1 %698  ;;  %724 = vadd.xlane.f32.xlu0 %v718_v6  ;;  %v1598_v26 = vpack.c.bf16 %v791_v25, %v790_v24 }
 0x68a   :  { %v705_v10 = vmul.f32 0.033333335, %v699_v52  ;;  %v2052_v11 = vsel %vm33_vm5, %v709_v42, 0.0  ;;  %1596 = vmatpush3.bf16.msra.mxu0 %v1595_v23 }
 0x68b   :  { %v719_v48 = vmul.f32 %v2052_v11, %v2052_v11  ;;  %1597 = vmatprep.subr.bf16.mxu0 %v1714_v0 }
 0x68c   :  { %v710_v12 = vsub.f32 %v690_v29, %v705_v10 }
 0x68d   :  { %726 = vadd.xlane.f32.xlu1 %v719_v48  ;;  %v701_v60 = vpop.xlane.xlu0 %700 }
 0x68e   :  { %v706_v13 = vmul.f32 0.033333335, %v701_v60  ;;  %v2058_v39 = vsel %vm33_vm5, %v710_v12, 0.0  ;;  %1599 = vmatpush3.bf16.msra.mxu0 %v1598_v26 }
 0x68f   :  { %v720_v41 = vmul.f32 %v2058_v39, %v2058_v39  ;;  %1600 = vmatprep.subr.bf16.mxu0 %v1714_v0 }
 0x690   :  { %v711_v14 = vsub.f32 %v691_v34, %v706_v13 }
 0x691   :  { %728 = vadd.xlane.f32.xlu0 %v720_v41 }
 0x692   :  { %v2064_v45 = vsel %vm33_vm5, %v711_v14, 0.0 }
 0x693   :  { %v721_v17 = vmul.f32 %v2064_v45, %v2064_v45 }
 0x695   :  { %730 = vadd.xlane.f32.xlu1 %v721_v17 }
 0x712   :  { %v723_v27 = vpop.xlane.xlu1 %722 }
 0x713   :  { %v732_v28 = vmul.f32 0.033333335, %v723_v27 }
 0x715   :  { %v737_v29 = vadd.f32 1e-05, %v732_v28 }
 0x716   :  { %v725_v31 = vpop.xlane.xlu0 %724 }
 0x717   :  { %1667 = vrsqrt.f32 %v737_v29  ;;  %v733_v32 = vmul.f32 0.033333335, %v725_v31 }
 0x719   :  { %v738_v33 = vadd.f32 1e-05, %v733_v32 }
 0x71a   :  { %v727_v34 = vpop.xlane.xlu1 %726 }
 0x71b   :  { %1669 = vrsqrt.f32 %v738_v33  ;;  %v734_v36 = vmul.f32 0.033333335, %v727_v34 }
 0x71d   :  { %v739_v37 = vadd.f32 1e-05, %v734_v36  ;;  %v983_v36 = vld [vmem:[#allocation2 + $0x200] sm:$0xff] }
 0x71e   :  { %v729_v38 = vpop.xlane.xlu0 %728 }
 0x71f   :  { %1671 = vrsqrt.f32 %v739_v37  ;;  %v735_v44 = vmul.f32 0.033333335, %v729_v38  ;;  %v984_v37 = vld [vmem:[#allocation2 + $0x208] sm:$0xff]  ;;  %v985_v38 = vld [vmem:[#allocation2 + $0x210] sm:$0xff] }
 0x721   :  { %v1668_v46 = vpop.eup %1667  ;;  %v740_v50 = vadd.f32 1e-05, %v735_v44  ;;  %v986_v44 = vld [vmem:[#allocation2 + $0x218] sm:$0xff] }
 0x722   :  { %v751_v54 = vmul.f32 %v1668_v46, %v1119_v40  ;;  %v731_v56 = vpop.xlane.xlu1 %730  ;;  %v1604_v46 = vpack.c.bf16 %v986_v44, %v985_v38 }
 0x723   :  { %1673 = vrsqrt.f32 %v740_v50  ;;  %v736_v58 = vmul.f32 0.033333335, %v731_v56 }
 0x724   :  { %v756_v30 = vmul.f32 %v751_v54, %v2040_v63 }
 0x725   :  { %v1670_v2 = vpop.eup %1669  ;;  %v741_v35 = vadd.f32 1e-05, %v736_v58 }
 0x726   :  { %v765_v4 = vadd.f32 %v1120_v61, %v756_v30  ;;  %v752_v6 = vmul.f32 %v1670_v2, %v1119_v40 }
 0x727   :  { %1675 = vrsqrt.f32 %v741_v35 }
 0x728   :  { %v770_v42 = vmax.f32 %v765_v4, 0.0  ;;  %v757_v52 = vmul.f32 %v752_v6, %v2046_v5 }
 0x729   :  { %v1672_v10 = vpop.eup %1671 }
 0x72a   :  { %1436 = vmatmul.mubr.f32.vlgmr.msra.gmra.mrb[20].mxu0 %v770_v42  ;;  %v766_v48 = vadd.f32 %v1120_v61, %v757_v52  ;;  %v753_v12 = vmul.f32 %v1672_v10, %v1119_v40 }
 0x72b   :  { %1438 = vmatprep.mubr.msk.f32.mxu0 %vm1715_vm0, %v1716_v1 }
 0x72c   :  { %v771_v60 = vmax.f32 %v766_v48, 0.0  ;;  %v758_v13 = vmul.f32 %v753_v12, %v2052_v11 }
 0x72d   :  { %v1674_v41 = vpop.eup %1673 }
 0x72e   :  { %1439 = vmatmul.mubr.f32.gmra.mrb[22].mxu0 %v771_v60  ;;  %v767_v63 = vadd.f32 %v1120_v61, %v758_v13  ;;  %v754_v14 = vmul.f32 %v1674_v41, %v1119_v40 }
 0x72f   :  { %1441 = vmatprep.mubr.msk.f32.mxu0 %vm1715_vm0, %v1716_v1 }
 0x730   :  { %v772_v15 = vmax.f32 %v767_v63, 0.0  ;;  %v759_v5 = vmul.f32 %v754_v14, %v2058_v39 }
 0x731   :  { %v1676_v16 = vpop.eup %1675 }
 0x732   :  { %1442 = vmatmul.mubr.f32.gmra.mrb[24].mxu0 %v772_v15  ;;  %v768_v43 = vadd.f32 %v1120_v61, %v759_v5  ;;  %v755_v17 = vmul.f32 %v1676_v16, %v1119_v40  ;;  %v1601_v40 = vpack.c.bf16 %v984_v37, %v983_v36 }
 0x733   :  { %1444 = vmatprep.mubr.msk.f32.mxu0 %vm1715_vm0, %v1716_v1 }
 0x734   :  { %v773_v47 = vmax.f32 %v768_v43, 0.0  ;;  %v760_v11 = vmul.f32 %v755_v17, %v2064_v45  ;;  %1632 = vmatpush3.bf16.msra.mxu1 %v1601_v40  ;;  %1602 = vmatpush3.bf16.msra.mxu0 %v1601_v40 }
 0x735   :  { %1625 = vmatprep.subr.bf16.mxu1 %v1714_v0  ;;  %1603 = vmatprep.subr.bf16.mxu0 %v1714_v0 }
 0x736   :  { %1445 = vmatmul.mubr.f32.gmra.mrb[26].mxu0 %v773_v47  ;;  %v769_v51 = vadd.f32 %v1120_v61, %v760_v11  ;;  %v987_v47 = vld [vmem:[#allocation2 + $0x220] sm:$0xff]  ;;  %v988_v11 = vld [vmem:[#allocation2 + $0x228] sm:$0xff] }
 0x737   :  { %1447 = vmatprep.mubr.msk.f32.mxu0 %vm1715_vm0, %v1716_v1 }
 0x738   :  { %v774_v53 = vmax.f32 %v769_v51, 0.0  ;;  %1633 = vmatpush3.bf16.msra.mxu1 %v1604_v46  ;;  %1605 = vmatpush3.bf16.msra.mxu0 %v1604_v46  ;;  %v1607_v51 = vpack.c.bf16 %v988_v11, %v987_v47 }
 0x739   :  { %1626 = vmatprep.subr.bf16.mxu1 %v1714_v0  ;;  %1606 = vmatprep.subr.bf16.mxu0 %v1714_v0 }
 0x73a   :  { %1448 = vmatmul.mubr.f32.gmra.mrb[28].mxu0 %v774_v53  ;;  %v989_v53 = vld [vmem:[#allocation2 + $0x230] sm:$0xff] }
 0x73b   :  { %1482 = vmatprep.mubr.msk.f32.mxu0 %vm1715_vm0, %v1716_v1 }
 0x73c   :  { %1634 = vmatpush3.bf16.msra.mxu1 %v1607_v51  ;;  %1608 = vmatpush3.bf16.msra.mxu0 %v1607_v51 }
 0x73d   :  { %1627 = vmatprep.subr.bf16.mxu1 %v1714_v0  ;;  %1609 = vmatprep.subr.bf16.mxu0 %v1714_v0 }
 0x7fd   :  { %v865_v39 = vpop.f32.mrb[20].mxu0 }
 0x7fe   :  { %v1437_v9 = vpop.f32.mrb[21].mxu0  ;;  %v866_v23 = vadd.f32 %v1121_v18, %v865_v39  ;;  %v990_v39 = vld [vmem:[#allocation2 + $0x238] sm:$0xff] }
 0x7ff   :  { %v1610_v9 = vpack.c.bf16 %v990_v39, %v989_v53 }
 0x800   :  { %v889_v28 = vsel %vm33_vm5, %v866_v23, 0.0  ;;  %v997_v23 = vld [vmem:[#allocation2 + $0x270] sm:$0xff] }
 0x801   :  { %v870_v19 = vpop.f32.mrb[22].mxu0  ;;  %1635 = vmatpush3.bf16.msra.mxu1 %v1610_v9  ;;  %1611 = vmatpush3.bf16.msra.mxu0 %v1610_v9 }
 0x802   :  { %v871_v20 = vadd.f32 %v1121_v18, %v870_v19  ;;  %v1440_v55 = vpop.f32.mrb[23].mxu0  ;;  %1628 = vmatprep.subr.bf16.mxu1 %v1714_v0  ;;  %1612 = vmatprep.subr.bf16.mxu0 %v1714_v0 }
 0x803   :  { %v994_v55 = vld [vmem:[#allocation2 + $0x258] sm:$0xff] }
 0x804   :  { %v890_v45 = vsel %vm33_vm5, %v871_v20, 0.0  ;;  %v993_v20 = vld [vmem:[#allocation2 + $0x250] sm:$0xff] }
 0x805   :  { %896 = vadd.xlane.f32.xlu0 %v890_v45  ;;  %v875_v57 = vpop.f32.mrb[24].mxu0 }
 0x806   :  { %v876_v21 = vadd.f32 %v1121_v18, %v875_v57  ;;  %v1443_v22 = vpop.f32.mrb[25].mxu0  ;;  %v995_v57 = vld [vmem:[#allocation2 + $0x260] sm:$0xff] }
 0x808   :  { %v891_v24 = vsel %vm33_vm5, %v876_v21, 0.0  ;;  %v996_v21 = vld [vmem:[#allocation2 + $0x268] sm:$0xff] }
 0x809   :  { %898 = vadd.xlane.f32.xlu1 %v891_v24  ;;  %v880_v25 = vpop.f32.mrb[26].mxu0  ;;  %v1619_v22 = vpack.c.bf16 %v996_v21, %v995_v57 }
 0x80a   :  { %v881_v26 = vadd.f32 %v1121_v18, %v880_v25  ;;  %v1446_v27 = vpop.f32.mrb[27].mxu0 }
 0x80c   :  { %v892_v29 = vsel %vm33_vm5, %v881_v26, 0.0 }
 0x80d   :  { %894 = vadd.xlane.f32.xlu1 %v889_v28  ;;  %900 = vadd.xlane.f32.xlu0 %v892_v29  ;;  %v885_v31 = vpop.f32.mrb[28].mxu0 }
 0x80e   :  { %v886_v32 = vadd.f32 %v1121_v18, %v885_v31  ;;  %v1449_v33 = vpop.f32.mrb[29].mxu0  ;;  %v992_v18 = vld [vmem:[#allocation2 + $0x248] sm:$0xff] }
 0x80f   :  { %v1613_v19 = vpack.c.bf16 %v992_v18, %v991_v59 }
 0x810   :  { %v893_v34 = vsel %vm33_vm5, %v886_v32, 0.0 }
 0x811   :  { %902 = vadd.xlane.f32.xlu0 %v893_v34  ;;  %1636 = vmatpush3.bf16.msra.mxu1 %v1613_v19 }
 0x812   :  { %1614 = vmatpush3.bf16.msra.mxu0 %v1613_v19  ;;  %1629 = vmatprep.subr.bf16.mxu1 %v1714_v0 }
 0x813   :  { %1615 = vmatprep.subr.bf16.mxu0 %v1714_v0 }
 0x892   :  { %v897_v50 = vpop.xlane.xlu0 %896 }
 0x893   :  { %v905_v54 = vmul.f32 0.033333335, %v897_v50 }
 0x895   :  { %v910_v56 = vsub.f32 %v890_v45, %v905_v54  ;;  %v1616_v45 = vpack.c.bf16 %v994_v55, %v993_v20 }
 0x896   :  { %v899_v58 = vpop.xlane.xlu1 %898 }
 0x897   :  { %v906_v61 = vmul.f32 0.033333335, %v899_v58  ;;  %v2114_v30 = vsel %vm33_vm5, %v910_v56, 0.0  ;;  %1637 = vmatpush3.bf16.msra.mxu1 %v1616_v45  ;;  %1617 = vmatpush3.bf16.msra.mxu0 %v1616_v45  ;;  %v1123_v58 = vld [vmem:[%s2200_s3 + $0xc] ss:$0 sm:$0xff] }
 0x898   :  { %v920_v2 = vmul.f32 %v2114_v30, %v2114_v30  ;;  %1630 = vmatprep.subr.bf16.mxu1 %v1714_v0  ;;  %1618 = vmatprep.subr.bf16.mxu0 %v1714_v0 }
 0x899   :  { %v911_v35 = vsub.f32 %v891_v24, %v906_v61  ;;  %v998_v24 = vld [vmem:[#allocation2 + $0x278] sm:$0xff] }
 0x89a   :  { %926 = vadd.xlane.f32.xlu1 %v920_v2  ;;  %v895_v4 = vpop.xlane.xlu1 %894  ;;  %v901_v6 = vpop.xlane.xlu0 %900  ;;  %v1622_v25 = vpack.c.bf16 %v998_v24, %v997_v23 }
 0x89b   :  { %v904_v42 = vmul.f32 0.033333335, %v895_v4  ;;  %v907_v52 = vmul.f32 0.033333335, %v901_v6  ;;  %v2120_v10 = vsel %vm33_vm5, %v911_v35, 0.0  ;;  %1638 = vmatpush3.bf16.msra.mxu1 %v1619_v22  ;;  %1620 = vmatpush3.bf16.msra.mxu0 %v1619_v22 }
 0x89c   :  { %v921_v48 = vmul.f32 %v2120_v10, %v2120_v10  ;;  %1631 = vmatprep.subr.bf16.mxu1 %v1714_v0  ;;  %1621 = vmatprep.subr.bf16.mxu0 %v1714_v0  ;;  %v1122_v0 = vld [vmem:[%s2200_s3 + $0xb] ss:$0 sm:$0xff] }
 0x89d   :  { %v909_v12 = vsub.f32 %v889_v28, %v904_v42  ;;  %v912_v60 = vsub.f32 %v892_v29, %v907_v52 }
 0x89e   :  { %928 = vadd.xlane.f32.xlu0 %v921_v48  ;;  %v903_v13 = vpop.xlane.xlu0 %902 }
 0x89f   :  { %v908_v41 = vmul.f32 0.033333335, %v903_v13  ;;  %v2126_v63 = vsel %vm33_vm5, %v912_v60, 0.0  ;;  %v2130_v14 = vsel %vm33_vm5, %v909_v12, 0.0  ;;  %1639 = vmatpush3.bf16.msra.mxu1 %v1622_v25  ;;  %1623 = vmatpush3.bf16.msra.mxu0 %v1622_v25 }
 0x8a0   :  { %v922_v15 = vmul.f32 %v2126_v63, %v2126_v63  ;;  %v919_v5 = vmul.f32 %v2130_v14, %v2130_v14 }
 0x8a1   :  { %v913_v16 = vsub.f32 %v893_v34, %v908_v41 }
 0x8a2   :  { %930 = vadd.xlane.f32.xlu1 %v922_v15  ;;  %924 = vadd.xlane.f32.xlu0 %v919_v5 }
 0x8a3   :  { %v2138_v43 = vsel %vm33_vm5, %v913_v16, 0.0 }
 0x8a4   :  { %v923_v17 = vmul.f32 %v2138_v43, %v2138_v43 }
 0x8a6   :  { %932 = vadd.xlane.f32.xlu1 %v923_v17 }
 0x927   :  { %v927_v26 = vpop.xlane.xlu1 %926 }
 0x928   :  { %v935_v27 = vmul.f32 0.033333335, %v927_v26 }
 0x92a   :  { %v940_v28 = vadd.f32 1e-05, %v935_v27 }
 0x92b   :  { %v929_v29 = vpop.xlane.xlu0 %928 }
 0x92c   :  { %1677 = vrsqrt.f32 %v940_v28  ;;  %v936_v31 = vmul.f32 0.033333335, %v929_v29 }
 0x92e   :  { %v941_v32 = vadd.f32 1e-05, %v936_v31 }
 0x92f   :  { %v931_v33 = vpop.xlane.xlu1 %930  ;;  %v925_v34 = vpop.xlane.xlu0 %924 }
 0x930   :  { %1679 = vrsqrt.f32 %v941_v32  ;;  %v937_v36 = vmul.f32 0.033333335, %v931_v33  ;;  %v934_v37 = vmul.f32 0.033333335, %v925_v34 }
 0x932   :  { %v942_v38 = vadd.f32 1e-05, %v937_v36  ;;  %v939_v40 = vadd.f32 1e-05, %v934_v37 }
 0x933   :  { %v933_v44 = vpop.xlane.xlu1 %932 }
 0x934   :  { %1681 = vrsqrt.f32 %v942_v38  ;;  %v938_v46 = vmul.f32 0.033333335, %v933_v44 }
 0x935   :  { %1683 = vrsqrt.f32 %v939_v40 }
 0x936   :  { %v1678_v50 = vpop.eup %1677  ;;  %v943_v54 = vadd.f32 1e-05, %v938_v46 }
 0x937   :  { %v954_v56 = vmul.f32 %v1678_v50, %v1122_v0 }
 0x938   :  { %1685 = vrsqrt.f32 %v943_v54 }
 0x939   :  { %v959_v61 = vmul.f32 %v954_v56, %v2114_v30 }
 0x93a   :  { %v1680_v2 = vpop.eup %1679 }
 0x93b   :  { %v968_v35 = vadd.f32 %v1123_v58, %v959_v61  ;;  %v955_v4 = vmul.f32 %v1680_v2, %v1122_v0 }
 0x93d   :  { %v973_v6 = vmax.f32 %v968_v35, 0.0  ;;  %v960_v42 = vmul.f32 %v955_v4, %v2120_v10 }
 0x93e   :  { %v1682_v52 = vpop.eup %1681 }
 0x93f   :  { %v1684_v48 = vpop.eup %1683  ;;  %v978_v12 = vadd.f32 %v973_v6, %v1995_v62  ;;  %v969_v60 = vadd.f32 %v1123_v58, %v960_v42  ;;  %v956_v13 = vmul.f32 %v1682_v52, %v1122_v0 }
 0x940   :  { %v953_v41 = vmul.f32 %v1684_v48, %v1122_v0 }
 0x941   :  { %1486 = vmatmul.mubr.f32.vlgmr.msra.gmra.mrb[20].mxu1 %v978_v12  ;;  %v974_v15 = vmax.f32 %v969_v60, 0.0  ;;  %v961_v5 = vmul.f32 %v956_v13, %v2126_v63 }
 0x942   :  { %v1686_v16 = vpop.eup %1685  ;;  %v958_v30 = vmul.f32 %v953_v41, %v2130_v14  ;;  %1488 = vmatprep.mubr.msk.f32.mxu1 %vm1715_vm0, %v1716_v1 }
 0x943   :  { %v979_v17 = vadd.f32 %v974_v15, %v2003_v3  ;;  %v970_v10 = vadd.f32 %v1123_v58, %v961_v5  ;;  %v957_v47 = vmul.f32 %v1686_v16, %v1122_v0 }
 0x944   :  { %v967_v11 = vadd.f32 %v1123_v58, %v958_v30 }
 0x945   :  { %1489 = vmatmul.mubr.f32.gmra.mrb[22].mxu1 %v979_v17  ;;  %v975_v62 = vmax.f32 %v970_v10, 0.0  ;;  %v962_v51 = vmul.f32 %v957_v47, %v2138_v43  ;;  %v1124_v43 = vld [vmem:[%s2200_s3 + $0xd] ss:$0 sm:$0xff] }
 0x946   :  { %1491 = vmatprep.mubr.msk.f32.mxu1 %vm1715_vm0, %v1716_v1  ;;  %v972_v53 = vmax.f32 %v967_v11, 0.0 }
 0x947   :  { %v980_v63 = vadd.f32 %v975_v62, %v2011_v7  ;;  %v971_v39 = vadd.f32 %v1123_v58, %v962_v51 }
 0x948   :  { %v977_v14 = vadd.f32 %v972_v53, %v1987_v8 }
 0x949   :  { %1492 = vmatmul.mubr.f32.gmra.mrb[24].mxu1 %v980_v63  ;;  %v976_v9 = vmax.f32 %v971_v39, 0.0 }
 0x94a   :  { %1483 = vmatmul.mubr.f32.vlgmr.msra.gmra.mrb[30].mxu0 %v977_v14  ;;  %1494 = vmatprep.mubr.msk.f32.mxu1 %vm1715_vm0, %v1716_v1 }
 0x94b   :  { %v981_v3 = vadd.f32 %v976_v9, %v2018_v49 }
 0x94d   :  { %1495 = vmatmul.mubr.f32.gmra.mrb[26].mxu1 %v981_v3 }
 0xa14   :  { %v1075_v59 = vpop.f32.mrb[20].mxu1 }
 0xa15   :  { %v1076_v18 = vadd.f32 %v1124_v43, %v1075_v59  ;;  %v1487_v7 = vpop.f32.mrb[21].mxu1 }
 0xa17   :  { %1096 = vst.msk [vmem:[%s2201_s4 + $0x8] sm:$0xff] %vm1094_vm6, %v1076_v18 }
 0xa18   :  { %v1080_v8 = vpop.f32.mrb[22].mxu1 }
 0xa19   :  { %v1081_v19 = vadd.f32 %v1124_v43, %v1080_v8  ;;  %v1490_v20 = vpop.f32.mrb[23].mxu1 }
 0xa1b   :  { %1097 = vst.msk [vmem:[%s2201_s4 + $0x10] sm:$0xff] %vm1094_vm6, %v1081_v19 }
 0xa1c   :  { %v1085_v1 = vpop.f32.mrb[24].mxu1 }
 0xa1d   :  { %v1070_v49 = vpop.f32.mrb[30].mxu0  ;;  %v1086_v55 = vadd.f32 %v1124_v43, %v1085_v1  ;;  %v1493_v45 = vpop.f32.mrb[25].mxu1 }
 0xa1e   :  { %v1071_v57 = vadd.f32 %v1124_v43, %v1070_v49  ;;  %v1484_v21 = vpop.f32.mrb[31].mxu0 }
 0xa1f   :  { %1098 = vst.msk [vmem:[%s2201_s4 + $0x18] sm:$0xff] %vm1094_vm6, %v1086_v55 }
 0xa20   :  { %1095 = vst.msk [vmem:[%s2201_s4] sm:$0xff] %vm1094_vm6, %v1071_v57  ;;  %v1090_v22 = vpop.f32.mrb[26].mxu1 }
 0xa21   :  { %v1091_v23 = vadd.f32 %v1124_v43, %v1090_v22  ;;  %v1496_v24 = vpop.f32.mrb[27].mxu1 }
 0xa23   :  { %1099 = vst.msk [vmem:[%s2201_s4 + $0x20] sm:$0xff] %vm1094_vm6, %v1091_v23 }
 0xa24   :  { %1104 = vsyncpa [#allocation3], 1 }

// kernel: tpu_custom_call.1
= control target key start
LH: loop header
LB: loop body
LE: loop exit
PB: predicated region body
PF: predicated region fallthrough
CT: control target
= control target key end

     0   :  { %9 = vsyncpa [#allocation3], 0  ;;  %s1711_s15 = smov [#allocation2]   ;;  %s2197_s0 = inlined_call_operand.vmem [shape: f32[40,28], index: 0, kind: input, shape index: {}]   ;;  %s2198_s1 = inlined_call_operand.vmem [shape: f32[28,128], index: 1, kind: input, shape index: {}]   ;;  %s2199_s2 = inlined_call_operand.hbm [shape: f32[5,128,128], index: 2, kind: input, shape index: {}]   ;;  %s2200_s3 = inlined_call_operand.vmem [shape: f32[16,128], index: 3, kind: input, shape index: {}]   ;;  %s2201_s4 = inlined_call_operand.vmem [shape: f32[40,3], index: 4, kind: output, shape index: {}]  }
   0x1   :  { %s19_s16 = sshll.u32 %s1711_s15, 4  ;;  %s1687_s19 = scalar_lea.hbm %s2199_s2, 10240  ;;  %s20_s16 = int_to_ptr.vmem [resolvable:$true] %s19_s16 }
   0x2   :  { %p1688_p0 = scmp.ne.s32.totalorder %s2199_s2, %s1687_s19  ;;  %p1691_p1 = scmp.lt.u32.totalorder %s1687_s19, %s2199_s2 }
   0x4   :  { %p1693_p2 = pnand %p1691_p1, %p1688_p0 }
   0x6   :  { %1696 = shalt.err (!%p1693_p2)
}
   0x7   :  { %s1697_s24 = scalar_lea.vmem %s20_s16, 10240  ;;  %p1702_p4 = scmp.lt.s32.totalorder %s20_s16, %s20_s16 }
   0x8   :  { %p1698_p3 = scmp.ne.s32.totalorder %s20_s16, %s1697_s24  ;;  %p1703_p5 = scmp.lt.s32.totalorder %s1697_s24, %s1697_s24 }
   0xa   :  { %p1704_p6 = por %p1703_p5, %p1702_p4 }
   0xc   :  { %p1705_p7 = pnand %p1704_p6, %p1698_p3 }
   0xe   :  { %1708 = shalt.err (!%p1705_p7)
}
   0xf   :  { %s1712_s25 = smov 128   ;;  %s1713_s26 = smov 8  }
  0x10   :  { %25 = dma.hbm_to_vmem [thread:$0]  %s2199_s2, 10240, %s20_s16, [#allocation3], %s1712_s25, %s1712_s25, %s1713_s26  }
  0x11   :  { %1709 = dma.done.wait [#allocation3], 10240  }
  0x12   :  { %1710 = vsyncadd [#allocation3], 4294957056  ;;  %v1714_v0 = vmov 0.0|0.0   ;;  %vm1715_vm0 = vmmov 0   ;;  %v1716_v1 = vmov 0.0   ;;  %v39_v2 = vld [vmem:[%s2198_s1] sm:$0xff]  ;;  %v31_v58 = vlaneseq }
  0x13   :  { %1497 = vmatprep.subr.bf16.mxu0 %v1714_v0  ;;  %1504 = vmatprep.subr.bf16.mxu1 %v1714_v0  ;;  %v40_v3 = vld [vmem:[%s2198_s1 + $0x8] sm:$0xff]  ;;  %v41_v4 = vld [vmem:[%s2198_s1 + $0x10] sm:$0xff]  ;;  %v42_v6 = vld [vmem:[%s2198_s1 + $0x18] sm:$0xf]  ;;  %vm64_vm1 = vcmask 1043456   ;;  %vm1717_vm2 = vmmov 1  }
  0x14   :  { %1247 = vmatprep.mubr.msk.f32.mxu0 %vm1715_vm0, %v1716_v1  ;;  %1294 = vmatprep.mubr.msk.f32.mxu1 %vm1715_vm0, %v1716_v1  ;;  %v1498_v5 = vpack.c.bf16 %v40_v3, %v39_v2  ;;  %v1501_v7 = vpack.c.bf16 %v42_v6, %v41_v4  ;;  %v163_v8 = vld [vmem:[#allocation2] sm:$0xff]  ;;  %v164_v9 = vld [vmem:[#allocation2 + $0x8] sm:$0xff]  ;;  %v165_v10 = vld [vmem:[#allocation2 + $0x10] sm:$0xff]  ;;  %vm48_vm4 = vcmask 228352   ;;  %v1851_v59 = vand.u32 127, %v31_v58 }
  0x15   :  { %vm1502_vm3 = vmpackc.low %vm64_vm1, %vm1717_vm2  ;;  %v1505_v11 = vpack.c.bf16 %v164_v9, %v163_v8  ;;  %v166_v12 = vld [vmem:[#allocation2 + $0x18] sm:$0xff]  ;;  %v34_v14 = vld [vmem:[%s2197_s0] sm:$0xff]  ;;  %vm1094_vm6 = vcmask 23552  }
  0x16   :  { %1499 = vmatpush3.bf16.msra.mxu0 %v1498_v5  ;;  %v1508_v13 = vpack.c.bf16 %v166_v12, %v165_v10  ;;  %v167_v15 = vld [vmem:[#allocation2 + $0x20] sm:$0xff]  ;;  %v168_v16 = vld [vmem:[#allocation2 + $0x28] sm:$0xff]  ;;  %v169_v19 = vld [vmem:[#allocation2 + $0x30] sm:$0xff]  ;;  %vm33_vm5 = vcmp.lt.s32.totalorder %v1851_v59, 30 }
  0x17   :  { %1500 = vmatprep.subr.bf16.mxu0 %v1714_v0  ;;  %1506 = vmatpush3.bf16.msra.mxu1 %v1505_v11  ;;  %v1511_v17 = vpack.c.bf16 %v168_v16, %v167_v15  ;;  %v35_v18 = vld [vmem:[%s2197_s0 + $0x8] sm:$0xff]  ;;  %v170_v20 = vld [vmem:[#allocation2 + $0x38] sm:$0xff]  ;;  %v36_v22 = vld [vmem:[%s2197_s0 + $0x10] sm:$0xff] }
  0x18   :  { %1507 = vmatprep.subr.bf16.mxu1 %v1714_v0  ;;  %v1514_v21 = vpack.c.bf16 %v170_v20, %v169_v19  ;;  %v171_v23 = vld [vmem:[#allocation2 + $0x40] sm:$0xff]  ;;  %v172_v24 = vld [vmem:[#allocation2 + $0x48] sm:$0xff]  ;;  %v37_v26 = vld [vmem:[%s2197_s0 + $0x18] sm:$0xff] }
  0x19   :  { %v1517_v25 = vpack.c.bf16 %v172_v24, %v171_v23  ;;  %v173_v27 = vld [vmem:[#allocation2 + $0x50] sm:$0xff]  ;;  %v174_v28 = vld [vmem:[#allocation2 + $0x58] sm:$0xff]  ;;  %v38_v30 = vld [vmem:[%s2197_s0 + $0x20] sm:$0xff] }
  0x1a   :  { %1503 = vmatpush3.bf16.msk.msra.mxu0 %vm1502_vm3, %v1501_v7  ;;  %v1520_v29 = vpack.c.bf16 %v174_v28, %v173_v27  ;;  %v175_v31 = vld [vmem:[#allocation2 + $0x60] sm:$0xff]  ;;  %v176_v32 = vld [vmem:[#allocation2 + $0x68] sm:$0xff]  ;;  %v177_v34 = vld [vmem:[#allocation2 + $0x70] sm:$0xff] }
  0x1b   :  { %1528 = vmatprep.subr.bf16.mxu0 %v1714_v0  ;;  %1509 = vmatpush3.bf16.msra.mxu1 %v1508_v13  ;;  %v1523_v33 = vpack.c.bf16 %v176_v32, %v175_v31  ;;  %v178_v35 = vld [vmem:[#allocation2 + $0x78] sm:$0xff]  ;;  %v1105_v37 = vld [vmem:[%s2200_s3] ss:$0 sm:$0xff]  ;;  %v1112_v60 = vld [vmem:[%s2200_s3 + $0x1] ss:$0 sm:$0xff] }
  0x1c   :  { %1510 = vmatprep.subr.bf16.mxu1 %v1714_v0  ;;  %v1526_v36 = vpack.c.bf16 %v178_v35, %v177_v34  ;;  %v367_v19 = vld [vmem:[#allocation2 + $0x80] sm:$0xff]  ;;  %v368_v20 = vld [vmem:[#allocation2 + $0x88] sm:$0xff]  ;;  %v370_v23 = vld [vmem:[#allocation2 + $0x98] sm:$0xff] }
  0x1d   :  { %1248 = vmatmul.mubr.msk.f32.vlgmr.msra.gmra.mrb[0].mxu0 %vm48_vm4, %v34_v14  ;;  %v371_v58 = vld [vmem:[#allocation2 + $0xa0] sm:$0xff] }
  0x1e   :  { %1250 = vmatprep.mubr.msk.f32.mxu0 %vm1715_vm0, %v1716_v1  ;;  %v991_v59 = vld [vmem:[#allocation2 + $0x240] sm:$0xff] }
  0x1f   :  { %1512 = vmatpush3.bf16.msra.mxu1 %v1511_v17 }
  0x20   :  { %1513 = vmatprep.subr.bf16.mxu1 %v1714_v0 }
  0x21   :  { %1251 = vmatmul.mubr.msk.f32.gmra.mrb[2].mxu0 %vm48_vm4, %v35_v18 }
  0x22   :  { %1253 = vmatprep.mubr.msk.f32.mxu0 %vm1715_vm0, %v1716_v1 }
  0x23   :  { %1515 = vmatpush3.bf16.msra.mxu1 %v1514_v21  ;;  %v369_v21 = vld [vmem:[#allocation2 + $0x90] sm:$0xff] }
  0x24   :  { %1516 = vmatprep.subr.bf16.mxu1 %v1714_v0  ;;  %v1532_v24 = vpack.c.bf16 %v370_v23, %v369_v21 }
  0x25   :  { %1254 = vmatmul.mubr.msk.f32.gmra.mrb[4].mxu0 %vm48_vm4, %v36_v22  ;;  %v1529_v22 = vpack.c.bf16 %v368_v20, %v367_v19 }
  0x26   :  { %1256 = vmatprep.mubr.msk.f32.mxu0 %vm1715_vm0, %v1716_v1 }
  0x27   :  { %1518 = vmatpush3.bf16.msra.mxu1 %v1517_v25  ;;  %1530 = vmatpush3.bf16.msra.mxu0 %v1529_v22 }
  0x28   :  { %1519 = vmatprep.subr.bf16.mxu1 %v1714_v0  ;;  %1531 = vmatprep.subr.bf16.mxu0 %v1714_v0 }
  0x29   :  { %1257 = vmatmul.mubr.msk.f32.gmra.mrb[6].mxu0 %vm48_vm4, %v37_v26 }
  0x2a   :  { %1259 = vmatprep.mubr.msk.f32.mxu0 %vm1715_vm0, %v1716_v1 }
  0x2b   :  { %1521 = vmatpush3.bf16.msra.mxu1 %v1520_v29  ;;  %1533 = vmatpush3.bf16.msra.mxu0 %v1532_v24 }
  0x2c   :  { %1522 = vmatprep.subr.bf16.mxu1 %v1714_v0  ;;  %1534 = vmatprep.subr.bf16.mxu0 %v1714_v0 }
  0x2d   :  { %1260 = vmatmul.mubr.msk.f32.gmra.mrb[8].mxu0 %vm48_vm4, %v38_v30 }
  0x2e   :  { %1341 = vmatprep.mubr.msk.f32.mxu0 %vm1715_vm0, %v1716_v1 }
  0x2f   :  { %1524 = vmatpush3.bf16.msra.mxu1 %v1523_v33 }
  0x30   :  { %1525 = vmatprep.subr.bf16.mxu1 %v1714_v0 }
  0x33   :  { %1527 = vmatpush3.bf16.msra.mxu1 %v1526_v36 }
  0x34   :  { %1552 = vmatprep.subr.bf16.mxu1 %v1714_v0 }
  0xf0   :  { %v134_v38 = vpop.f32.mrb[0].mxu0 }
  0xf1   :  { %v1816_v39 = vadd.f32 %v1105_v37, %v134_v38  ;;  %v1249_v40 = vpop.f32.mrb[1].mxu0 }
  0xf3   :  { %v158_v41 = vmax.f32 %v1816_v39, 0.0 }
  0xf4   :  { %v139_v42 = vpop.f32.mrb[2].mxu0 }
  0xf5   :  { %v1819_v43 = vadd.f32 %v1105_v37, %v139_v42  ;;  %v1252_v44 = vpop.f32.mrb[3].mxu0  ;;  %1295 = vmatmul.mubr.f32.vlgmr.msra.gmra.mrb[0].mxu1 %v158_v41 }
  0xf6   :  { %1297 = vmatprep.mubr.msk.f32.mxu1 %vm1715_vm0, %v1716_v1 }
  0xf7   :  { %v159_v45 = vmax.f32 %v1819_v43, 0.0 }
  0xf8   :  { %v144_v46 = vpop.f32.mrb[4].mxu0 }
  0xf9   :  { %v1826_v47 = vadd.f32 %v1105_v37, %v144_v46  ;;  %v1255_v48 = vpop.f32.mrb[5].mxu0  ;;  %1298 = vmatmul.mubr.f32.gmra.mrb[2].mxu1 %v159_v45 }
  0xfa   :  { %1300 = vmatprep.mubr.msk.f32.mxu1 %vm1715_vm0, %v1716_v1 }
  0xfb   :  { %v160_v49 = vmax.f32 %v1826_v47, 0.0 }
  0xfc   :  { %v149_v50 = vpop.f32.mrb[6].mxu0 }
  0xfd   :  { %v1833_v51 = vadd.f32 %v1105_v37, %v149_v50  ;;  %v1258_v52 = vpop.f32.mrb[7].mxu0  ;;  %1301 = vmatmul.mubr.f32.gmra.mrb[4].mxu1 %v160_v49 }
  0xfe   :  { %1303 = vmatprep.mubr.msk.f32.mxu1 %vm1715_vm0, %v1716_v1 }
  0xff   :  { %v161_v53 = vmax.f32 %v1833_v51, 0.0  ;;  %v1118_v51 = vld [vmem:[%s2200_s3 + $0x7] ss:$0 sm:$0xff] }
 0x100   :  { %v154_v54 = vpop.f32.mrb[8].mxu0 }
 0x101   :  { %v1840_v55 = vadd.f32 %v1105_v37, %v154_v54  ;;  %v1261_v56 = vpop.f32.mrb[9].mxu0  ;;  %1304 = vmatmul.mubr.f32.gmra.mrb[6].mxu1 %v161_v53 }
 0x102   :  { %1306 = vmatprep.mubr.msk.f32.mxu1 %vm1715_vm0, %v1716_v1 }
 0x103   :  { %v162_v57 = vmax.f32 %v1840_v55, 0.0 }
 0x105   :  { %1307 = vmatmul.mubr.f32.gmra.mrb[8].mxu1 %v162_v57 }
 0x106   :  { %1388 = vmatprep.mubr.msk.f32.mxu1 %vm1715_vm0, %v1716_v1 }
 0x1c8   :  { %v252_v61 = vpop.f32.mrb[0].mxu1 }
 0x1c9   :  { %v253_v62 = vadd.f32 %v1112_v60, %v252_v61  ;;  %v1296_v63 = vpop.f32.mrb[1].mxu1 }
 0x1cb   :  { %v278_v2 = vsel %vm33_vm5, %v253_v62, 0.0 }
 0x1cc   :  { %283 = vadd.xlane.f32.xlu0 %v278_v2  ;;  %v257_v3 = vpop.f32.mrb[2].mxu1 }
 0x1cd   :  { %v258_v4 = vadd.f32 %v1112_v60, %v257_v3  ;;  %v1299_v5 = vpop.f32.mrb[3].mxu1  ;;  %v374_v3 = vld [vmem:[#allocation2 + $0xb8] sm:$0xff] }
 0x1ce   :  { %v375_v5 = vld [vmem:[#allocation2 + $0xc0] sm:$0xff] }
 0x1cf   :  { %v279_v6 = vsel %vm33_vm5, %v258_v4, 0.0 }
 0x1d0   :  { %285 = vadd.xlane.f32.xlu0 %v279_v6  ;;  %v262_v7 = vpop.f32.mrb[4].mxu1 }
 0x1d1   :  { %v263_v8 = vadd.f32 %v1112_v60, %v262_v7  ;;  %v1302_v9 = vpop.f32.mrb[5].mxu1 }
 0x1d2   :  { %v378_v9 = vld [vmem:[#allocation2 + $0xd8] sm:$0xff] }
 0x1d3   :  { %v280_v10 = vsel %vm33_vm5, %v263_v8, 0.0  ;;  %v377_v8 = vld [vmem:[#allocation2 + $0xd0] sm:$0xff] }
 0x1d4   :  { %287 = vadd.xlane.f32.xlu1 %v280_v10  ;;  %v267_v11 = vpop.f32.mrb[6].mxu1 }
 0x1d5   :  { %v268_v12 = vadd.f32 %v1112_v60, %v267_v11  ;;  %v1305_v13 = vpop.f32.mrb[7].mxu1  ;;  %v379_v11 = vld [vmem:[#allocation2 + $0xe0] sm:$0xff] }
 0x1d7   :  { %v281_v14 = vsel %vm33_vm5, %v268_v12, 0.0  ;;  %v380_v12 = vld [vmem:[#allocation2 + $0xe8] sm:$0xff] }
 0x1d8   :  { %289 = vadd.xlane.f32.xlu1 %v281_v14  ;;  %v272_v15 = vpop.f32.mrb[8].mxu1  ;;  %v1547_v13 = vpack.c.bf16 %v380_v12, %v379_v11 }
 0x1d9   :  { %v273_v16 = vadd.f32 %v1112_v60, %v272_v15  ;;  %v1308_v17 = vpop.f32.mrb[9].mxu1  ;;  %v372_v60 = vld [vmem:[#allocation2 + $0xa8] sm:$0xff]  ;;  %v382_v15 = vld [vmem:[#allocation2 + $0xf8] sm:$0xff] }
 0x1da   :  { %v1535_v61 = vpack.c.bf16 %v372_v60, %v371_v58 }
 0x1db   :  { %v282_v18 = vsel %vm33_vm5, %v273_v16, 0.0 }
 0x1dc   :  { %291 = vadd.xlane.f32.xlu0 %v282_v18  ;;  %1536 = vmatpush3.bf16.msra.mxu0 %v1535_v61 }
 0x1dd   :  { %1537 = vmatprep.subr.bf16.mxu0 %v1714_v0 }
 0x259   :  { %v284_v25 = vpop.xlane.xlu0 %283 }
 0x25a   :  { %v293_v26 = vmul.f32 0.033333335, %v284_v25 }
 0x25c   :  { %v298_v27 = vsub.f32 %v278_v2, %v293_v26  ;;  %v373_v2 = vld [vmem:[#allocation2 + $0xb0] sm:$0xff] }
 0x25d   :  { %v286_v28 = vpop.xlane.xlu0 %285  ;;  %v1538_v4 = vpack.c.bf16 %v374_v3, %v373_v2 }
 0x25e   :  { %v294_v29 = vmul.f32 0.033333335, %v286_v28  ;;  %v1871_v30 = vsel %vm33_vm5, %v298_v27, 0.0  ;;  %v1113_v27 = vld [vmem:[%s2200_s3 + $0x2] ss:$0 sm:$0xff] }
 0x25f   :  { %v308_v31 = vmul.f32 %v1871_v30, %v1871_v30  ;;  %1539 = vmatpush3.bf16.msra.mxu0 %v1538_v4 }
 0x260   :  { %v299_v32 = vsub.f32 %v279_v6, %v294_v29  ;;  %1540 = vmatprep.subr.bf16.mxu0 %v1714_v0  ;;  %v376_v6 = vld [vmem:[#allocation2 + $0xc8] sm:$0xff] }
 0x261   :  { %v288_v33 = vpop.xlane.xlu1 %287  ;;  %313 = vadd.xlane.f32.xlu1 %v308_v31  ;;  %v1541_v7 = vpack.c.bf16 %v376_v6, %v375_v5 }
 0x262   :  { %v295_v34 = vmul.f32 0.033333335, %v288_v33  ;;  %v1877_v35 = vsel %vm33_vm5, %v299_v32, 0.0 }
 0x263   :  { %v309_v36 = vmul.f32 %v1877_v35, %v1877_v35  ;;  %1542 = vmatpush3.bf16.msra.mxu0 %v1541_v7 }
 0x264   :  { %v300_v37 = vsub.f32 %v280_v10, %v295_v34  ;;  %1543 = vmatprep.subr.bf16.mxu0 %v1714_v0  ;;  %v1544_v10 = vpack.c.bf16 %v378_v9, %v377_v8 }
 0x265   :  { %v290_v38 = vpop.xlane.xlu1 %289  ;;  %315 = vadd.xlane.f32.xlu0 %v309_v36  ;;  %v1114_v36 = vld [vmem:[%s2200_s3 + $0x3] ss:$0 sm:$0xff] }
 0x266   :  { %v296_v40 = vmul.f32 0.033333335, %v290_v38  ;;  %v1883_v42 = vsel %vm33_vm5, %v300_v37, 0.0 }
 0x267   :  { %v310_v44 = vmul.f32 %v1883_v42, %v1883_v42  ;;  %1545 = vmatpush3.bf16.msra.mxu0 %v1544_v10 }
 0x268   :  { %v301_v46 = vsub.f32 %v281_v14, %v296_v40  ;;  %1546 = vmatprep.subr.bf16.mxu0 %v1714_v0  ;;  %v381_v14 = vld [vmem:[#allocation2 + $0xf0] sm:$0xff] }
 0x269   :  { %317 = vadd.xlane.f32.xlu1 %v310_v44  ;;  %v292_v48 = vpop.xlane.xlu0 %291  ;;  %v1550_v16 = vpack.c.bf16 %v382_v15, %v381_v14 }
 0x26a   :  { %v297_v50 = vmul.f32 0.033333335, %v292_v48  ;;  %v1889_v52 = vsel %vm33_vm5, %v301_v46, 0.0 }
 0x26b   :  { %v311_v54 = vmul.f32 %v1889_v52, %v1889_v52  ;;  %1548 = vmatpush3.bf16.msra.mxu0 %v1547_v13 }
 0x26c   :  { %v302_v56 = vsub.f32 %v282_v18, %v297_v50  ;;  %1549 = vmatprep.subr.bf16.mxu0 %v1714_v0 }
 0x26d   :  { %319 = vadd.xlane.f32.xlu0 %v311_v54 }
 0x26e   :  { %v1895_v62 = vsel %vm33_vm5, %v302_v56, 0.0 }
 0x26f   :  { %v312_v63 = vmul.f32 %v1895_v62, %v1895_v62  ;;  %1551 = vmatpush3.bf16.msra.mxu0 %v1550_v16 }
 0x270   :  { %1576 = vmatprep.subr.bf16.mxu0 %v1714_v0 }
 0x271   :  { %321 = vadd.xlane.f32.xlu1 %v312_v63 }
 0x2ee   :  { %v314_v17 = vpop.xlane.xlu1 %313 }
 0x2ef   :  { %v323_v18 = vmul.f32 0.033333335, %v314_v17 }
 0x2f1   :  { %v328_v19 = vadd.f32 1e-05, %v323_v18 }
 0x2f2   :  { %v316_v20 = vpop.xlane.xlu0 %315 }
 0x2f3   :  { %1647 = vrsqrt.f32 %v328_v19  ;;  %v324_v21 = vmul.f32 0.033333335, %v316_v20 }
 0x2f5   :  { %v329_v22 = vadd.f32 1e-05, %v324_v21 }
 0x2f6   :  { %v318_v23 = vpop.xlane.xlu1 %317 }
 0x2f7   :  { %1649 = vrsqrt.f32 %v329_v22  ;;  %v325_v24 = vmul.f32 0.033333335, %v318_v23 }
 0x2f9   :  { %v330_v25 = vadd.f32 1e-05, %v325_v24 }
 0x2fa   :  { %v320_v26 = vpop.xlane.xlu0 %319 }
 0x2fb   :  { %1651 = vrsqrt.f32 %v330_v25  ;;  %v326_v28 = vmul.f32 0.033333335, %v320_v26 }
 0x2fd   :  { %v1648_v29 = vpop.eup %1647  ;;  %v331_v31 = vadd.f32 1e-05, %v326_v28 }
 0x2fe   :  { %v342_v32 = vmul.f32 %v1648_v29, %v1113_v27  ;;  %v322_v33 = vpop.xlane.xlu1 %321  ;;  %v574_v29 = vld [vmem:[#allocation2 + $0x100] sm:$0xff] }
 0x2ff   :  { %1653 = vrsqrt.f32 %v331_v31  ;;  %v327_v34 = vmul.f32 0.033333335, %v322_v33  ;;  %v575_v31 = vld [vmem:[#allocation2 + $0x108] sm:$0xff] }
 0x300   :  { %v347_v37 = vmul.f32 %v342_v32, %v1871_v30  ;;  %v576_v32 = vld [vmem:[#allocation2 + $0x110] sm:$0xff]  ;;  %v1553_v33 = vpack.c.bf16 %v575_v31, %v574_v29 }
 0x301   :  { %v1650_v38 = vpop.eup %1649  ;;  %v332_v40 = vadd.f32 1e-05, %v327_v34  ;;  %v577_v34 = vld [vmem:[#allocation2 + $0x118] sm:$0xff] }
 0x302   :  { %v356_v44 = vadd.f32 %v1114_v36, %v347_v37  ;;  %v343_v46 = vmul.f32 %v1650_v38, %v1113_v27  ;;  %1554 = vmatpush3.bf16.msra.mxu1 %v1553_v33 }
 0x303   :  { %1655 = vrsqrt.f32 %v332_v40  ;;  %1555 = vmatprep.subr.bf16.mxu1 %v1714_v0 }
 0x304   :  { %v361_v48 = vmax.f32 %v356_v44, 0.0  ;;  %v348_v50 = vmul.f32 %v343_v46, %v1877_v35 }
 0x305   :  { %v1652_v54 = vpop.eup %1651 }
 0x306   :  { %1342 = vmatmul.mubr.f32.vlgmr.msra.gmra.mrb[10].mxu0 %v361_v48  ;;  %v357_v56 = vadd.f32 %v1114_v36, %v348_v50  ;;  %v344_v58 = vmul.f32 %v1652_v54, %v1113_v27 }
 0x307   :  { %1344 = vmatprep.mubr.msk.f32.mxu0 %vm1715_vm0, %v1716_v1 }
 0x308   :  { %v362_v60 = vmax.f32 %v357_v56, 0.0  ;;  %v349_v61 = vmul.f32 %v344_v58, %v1883_v42 }
 0x309   :  { %v1654_v63 = vpop.eup %1653 }
 0x30a   :  { %1345 = vmatmul.mubr.f32.gmra.mrb[12].mxu0 %v362_v60  ;;  %v358_v30 = vadd.f32 %v1114_v36, %v349_v61  ;;  %v345_v2 = vmul.f32 %v1654_v63, %v1113_v27 }
 0x30b   :  { %1347 = vmatprep.mubr.msk.f32.mxu0 %vm1715_vm0, %v1716_v1 }
 0x30c   :  { %v363_v3 = vmax.f32 %v358_v30, 0.0  ;;  %v350_v35 = vmul.f32 %v345_v2, %v1889_v52  ;;  %v1115_v52 = vld [vmem:[%s2200_s3 + $0x4] ss:$0 sm:$0xff] }
 0x30d   :  { %v1656_v4 = vpop.eup %1655 }
 0x30e   :  { %1348 = vmatmul.mubr.f32.gmra.mrb[14].mxu0 %v363_v3  ;;  %v359_v5 = vadd.f32 %v1114_v36, %v350_v35  ;;  %v346_v6 = vmul.f32 %v1656_v4, %v1113_v27 }
 0x30f   :  { %1350 = vmatprep.mubr.msk.f32.mxu0 %vm1715_vm0, %v1716_v1 }
 0x310   :  { %v364_v7 = vmax.f32 %v359_v5, 0.0  ;;  %v351_v42 = vmul.f32 %v346_v6, %v1895_v62 }
 0x312   :  { %1351 = vmatmul.mubr.f32.gmra.mrb[16].mxu0 %v364_v7  ;;  %v360_v8 = vadd.f32 %v1114_v36, %v351_v42  ;;  %v1556_v36 = vpack.c.bf16 %v577_v34, %v576_v32 }
 0x313   :  { %1353 = vmatprep.mubr.msk.f32.mxu0 %vm1715_vm0, %v1716_v1 }
 0x314   :  { %v365_v9 = vmax.f32 %v360_v8, 0.0  ;;  %1557 = vmatpush3.bf16.msra.mxu1 %v1556_v36 }
 0x315   :  { %1558 = vmatprep.subr.bf16.mxu1 %v1714_v0 }
 0x316   :  { %1354 = vmatmul.mubr.f32.gmra.mrb[18].mxu0 %v365_v9 }
 0x317   :  { %1435 = vmatprep.mubr.msk.f32.mxu0 %vm1715_vm0, %v1716_v1 }
 0x3d9   :  { %v456_v10 = vpop.f32.mrb[10].mxu0 }
 0x3da   :  { %v457_v11 = vadd.f32 %v1115_v52, %v456_v10  ;;  %v1343_v12 = vpop.f32.mrb[11].mxu0  ;;  %v579_v10 = vld [vmem:[#allocation2 + $0x128] sm:$0xff] }
 0x3dc   :  { %v480_v62 = vsel %vm33_vm5, %v457_v11, 0.0 }
 0x3dd   :  { %485 = vadd.xlane.f32.xlu0 %v480_v62  ;;  %v461_v13 = vpop.f32.mrb[12].mxu0 }
 0x3de   :  { %v462_v14 = vadd.f32 %v1115_v52, %v461_v13  ;;  %v1346_v15 = vpop.f32.mrb[13].mxu0  ;;  %v581_v13 = vld [vmem:[#allocation2 + $0x138] sm:$0xff] }
 0x3df   :  { %v582_v15 = vld [vmem:[#allocation2 + $0x140] sm:$0xff] }
 0x3e0   :  { %v481_v16 = vsel %vm33_vm5, %v462_v14, 0.0 }
 0x3e1   :  { %487 = vadd.xlane.f32.xlu1 %v481_v16  ;;  %v466_v17 = vpop.f32.mrb[14].mxu0 }
 0x3e2   :  { %v467_v18 = vadd.f32 %v1115_v52, %v466_v17  ;;  %v1349_v19 = vpop.f32.mrb[15].mxu0 }
 0x3e3   :  { %v585_v19 = vld [vmem:[#allocation2 + $0x158] sm:$0xff] }
 0x3e4   :  { %v482_v20 = vsel %vm33_vm5, %v467_v18, 0.0  ;;  %v584_v18 = vld [vmem:[#allocation2 + $0x150] sm:$0xff] }
 0x3e5   :  { %489 = vadd.xlane.f32.xlu0 %v482_v20  ;;  %v471_v21 = vpop.f32.mrb[16].mxu0 }
 0x3e6   :  { %v472_v22 = vadd.f32 %v1115_v52, %v471_v21  ;;  %v1352_v23 = vpop.f32.mrb[17].mxu0  ;;  %v586_v21 = vld [vmem:[#allocation2 + $0x160] sm:$0xff] }
 0x3e8   :  { %v483_v24 = vsel %vm33_vm5, %v472_v22, 0.0  ;;  %v587_v22 = vld [vmem:[#allocation2 + $0x168] sm:$0xff] }
 0x3e9   :  { %491 = vadd.xlane.f32.xlu1 %v483_v24  ;;  %v476_v25 = vpop.f32.mrb[18].mxu0  ;;  %v1571_v23 = vpack.c.bf16 %v587_v22, %v586_v21 }
 0x3ea   :  { %v477_v26 = vadd.f32 %v1115_v52, %v476_v25  ;;  %v1355_v27 = vpop.f32.mrb[19].mxu0  ;;  %v578_v52 = vld [vmem:[#allocation2 + $0x120] sm:$0xff]  ;;  %v589_v25 = vld [vmem:[#allocation2 + $0x178] sm:$0xff] }
 0x3eb   :  { %v1559_v12 = vpack.c.bf16 %v579_v10, %v578_v52 }
 0x3ec   :  { %v484_v28 = vsel %vm33_vm5, %v477_v26, 0.0 }
 0x3ed   :  { %493 = vadd.xlane.f32.xlu0 %v484_v28  ;;  %1560 = vmatpush3.bf16.msra.mxu1 %v1559_v12 }
 0x3ee   :  { %1561 = vmatprep.subr.bf16.mxu1 %v1714_v0 }
 0x46a   :  { %v486_v37 = vpop.xlane.xlu0 %485 }
 0x46b   :  { %v495_v38 = vmul.f32 0.033333335, %v486_v37 }
 0x46d   :  { %v500_v40 = vsub.f32 %v480_v62, %v495_v38  ;;  %v580_v62 = vld [vmem:[#allocation2 + $0x130] sm:$0xff] }
 0x46e   :  { %v488_v44 = vpop.xlane.xlu1 %487  ;;  %v1562_v14 = vpack.c.bf16 %v581_v13, %v580_v62 }
 0x46f   :  { %v496_v46 = vmul.f32 0.033333335, %v488_v44  ;;  %v1943_v48 = vsel %vm33_vm5, %v500_v40, 0.0  ;;  %v1116_v40 = vld [vmem:[%s2200_s3 + $0x5] ss:$0 sm:$0xff] }
 0x470   :  { %v510_v50 = vmul.f32 %v1943_v48, %v1943_v48  ;;  %1563 = vmatpush3.bf16.msra.mxu1 %v1562_v14 }
 0x471   :  { %v501_v54 = vsub.f32 %v481_v16, %v496_v46  ;;  %1564 = vmatprep.subr.bf16.mxu1 %v1714_v0  ;;  %v583_v16 = vld [vmem:[#allocation2 + $0x148] sm:$0xff] }
 0x472   :  { %v490_v56 = vpop.xlane.xlu0 %489  ;;  %515 = vadd.xlane.f32.xlu1 %v510_v50  ;;  %v1565_v17 = vpack.c.bf16 %v583_v16, %v582_v15 }
 0x473   :  { %v497_v58 = vmul.f32 0.033333335, %v490_v56  ;;  %v1949_v60 = vsel %vm33_vm5, %v501_v54, 0.0 }
 0x474   :  { %v511_v61 = vmul.f32 %v1949_v60, %v1949_v60  ;;  %1566 = vmatpush3.bf16.msra.mxu1 %v1565_v17 }
 0x475   :  { %v502_v63 = vsub.f32 %v482_v20, %v497_v58  ;;  %1567 = vmatprep.subr.bf16.mxu1 %v1714_v0  ;;  %v1568_v20 = vpack.c.bf16 %v585_v19, %v584_v18 }
 0x476   :  { %v492_v30 = vpop.xlane.xlu1 %491  ;;  %517 = vadd.xlane.f32.xlu0 %v511_v61  ;;  %v1117_v61 = vld [vmem:[%s2200_s3 + $0x6] ss:$0 sm:$0xff] }
 0x477   :  { %v498_v2 = vmul.f32 0.033333335, %v492_v30  ;;  %v1955_v3 = vsel %vm33_vm5, %v502_v63, 0.0 }
 0x478   :  { %v512_v35 = vmul.f32 %v1955_v3, %v1955_v3  ;;  %1569 = vmatpush3.bf16.msra.mxu1 %v1568_v20 }
 0x479   :  { %v503_v4 = vsub.f32 %v483_v24, %v498_v2  ;;  %1570 = vmatprep.subr.bf16.mxu1 %v1714_v0  ;;  %v588_v24 = vld [vmem:[#allocation2 + $0x170] sm:$0xff] }
 0x47a   :  { %519 = vadd.xlane.f32.xlu1 %v512_v35  ;;  %v494_v5 = vpop.xlane.xlu0 %493  ;;  %v1574_v26 = vpack.c.bf16 %v589_v25, %v588_v24 }
 0x47b   :  { %v499_v6 = vmul.f32 0.033333335, %v494_v5  ;;  %v1961_v7 = vsel %vm33_vm5, %v503_v4, 0.0 }
 0x47c   :  { %v513_v42 = vmul.f32 %v1961_v7, %v1961_v7  ;;  %1572 = vmatpush3.bf16.msra.mxu1 %v1571_v23 }
 0x47d   :  { %v504_v8 = vsub.f32 %v484_v28, %v499_v6  ;;  %1573 = vmatprep.subr.bf16.mxu1 %v1714_v0 }
 0x47e   :  { %521 = vadd.xlane.f32.xlu0 %v513_v42 }
 0x47f   :  { %v1967_v9 = vsel %vm33_vm5, %v504_v8, 0.0 }
 0x480   :  { %v514_v11 = vmul.f32 %v1967_v9, %v1967_v9  ;;  %1575 = vmatpush3.bf16.msra.mxu1 %v1574_v26 }
 0x481   :  { %1624 = vmatprep.subr.bf16.mxu1 %v1714_v0 }
 0x482   :  { %523 = vadd.xlane.f32.xlu1 %v514_v11 }
 0x4ff   :  { %v516_v27 = vpop.xlane.xlu1 %515 }
 0x500   :  { %v525_v28 = vmul.f32 0.033333335, %v516_v27 }
 0x502   :  { %v530_v29 = vadd.f32 1e-05, %v525_v28 }
 0x503   :  { %v518_v31 = vpop.xlane.xlu0 %517 }
 0x504   :  { %1657 = vrsqrt.f32 %v530_v29  ;;  %v526_v32 = vmul.f32 0.033333335, %v518_v31 }
 0x506   :  { %v531_v33 = vadd.f32 1e-05, %v526_v32 }
 0x507   :  { %v520_v34 = vpop.xlane.xlu1 %519 }
 0x508   :  { %1659 = vrsqrt.f32 %v531_v33  ;;  %v527_v36 = vmul.f32 0.033333335, %v520_v34 }
 0x50a   :  { %v532_v37 = vadd.f32 1e-05, %v527_v36  ;;  %v776_v36 = vld [vmem:[#allocation2 + $0x180] sm:$0xff] }
 0x50b   :  { %v522_v38 = vpop.xlane.xlu0 %521 }
 0x50c   :  { %1661 = vrsqrt.f32 %v532_v37  ;;  %v528_v44 = vmul.f32 0.033333335, %v522_v38  ;;  %v777_v37 = vld [vmem:[#allocation2 + $0x188] sm:$0xff]  ;;  %v778_v38 = vld [vmem:[#allocation2 + $0x190] sm:$0xff] }
 0x50e   :  { %v1658_v46 = vpop.eup %1657  ;;  %v533_v50 = vadd.f32 1e-05, %v528_v44  ;;  %v779_v44 = vld [vmem:[#allocation2 + $0x198] sm:$0xff] }
 0x50f   :  { %v544_v54 = vmul.f32 %v1658_v46, %v1116_v40  ;;  %v524_v56 = vpop.xlane.xlu1 %523  ;;  %v1580_v46 = vpack.c.bf16 %v779_v44, %v778_v38 }
 0x510   :  { %1663 = vrsqrt.f32 %v533_v50  ;;  %v529_v58 = vmul.f32 0.033333335, %v524_v56 }
 0x511   :  { %v549_v63 = vmul.f32 %v544_v54, %v1943_v48 }
 0x512   :  { %v1660_v30 = vpop.eup %1659  ;;  %v534_v2 = vadd.f32 1e-05, %v529_v58 }
 0x513   :  { %v558_v35 = vadd.f32 %v1117_v61, %v549_v63  ;;  %v545_v4 = vmul.f32 %v1660_v30, %v1116_v40 }
 0x514   :  { %1665 = vrsqrt.f32 %v534_v2 }
 0x515   :  { %v563_v5 = vmax.f32 %v558_v35, 0.0  ;;  %v550_v6 = vmul.f32 %v545_v4, %v1949_v60 }
 0x516   :  { %v1662_v42 = vpop.eup %1661 }
 0x517   :  { %v1987_v8 = vadd.f32 %v563_v5, %v158_v41  ;;  %v559_v52 = vadd.f32 %v1117_v61, %v550_v6  ;;  %v546_v10 = vmul.f32 %v1662_v42, %v1116_v40 }
 0x519   :  { %1389 = vmatmul.mubr.f32.vlgmr.msra.gmra.mrb[10].mxu1 %v1987_v8  ;;  %v564_v11 = vmax.f32 %v559_v52, 0.0  ;;  %v551_v48 = vmul.f32 %v546_v10, %v1955_v3 }
 0x51a   :  { %v1664_v12 = vpop.eup %1663  ;;  %1391 = vmatprep.mubr.msk.f32.mxu1 %vm1715_vm0, %v1716_v1 }
 0x51b   :  { %v1995_v62 = vadd.f32 %v564_v11, %v159_v45  ;;  %v560_v60 = vadd.f32 %v1117_v61, %v551_v48  ;;  %v547_v13 = vmul.f32 %v1664_v12, %v1116_v40 }
 0x51d   :  { %1392 = vmatmul.mubr.f32.gmra.mrb[12].mxu1 %v1995_v62  ;;  %v565_v39 = vmax.f32 %v560_v60, 0.0  ;;  %v552_v41 = vmul.f32 %v547_v13, %v1961_v7 }
 0x51e   :  { %v1666_v14 = vpop.eup %1665  ;;  %1394 = vmatprep.mubr.msk.f32.mxu1 %vm1715_vm0, %v1716_v1 }
 0x51f   :  { %v2003_v3 = vadd.f32 %v565_v39, %v160_v49  ;;  %v561_v15 = vadd.f32 %v1117_v61, %v552_v41  ;;  %v548_v16 = vmul.f32 %v1666_v14, %v1116_v40  ;;  %v1577_v40 = vpack.c.bf16 %v777_v37, %v776_v36 }
 0x521   :  { %1395 = vmatmul.mubr.f32.gmra.mrb[14].mxu1 %v2003_v3  ;;  %v566_v43 = vmax.f32 %v561_v15, 0.0  ;;  %v553_v45 = vmul.f32 %v548_v16, %v1967_v9  ;;  %1578 = vmatpush3.bf16.msra.mxu0 %v1577_v40  ;;  %v780_v15 = vld [vmem:[#allocation2 + $0x1a0] sm:$0xff]  ;;  %v781_v16 = vld [vmem:[#allocation2 + $0x1a8] sm:$0xff] }
 0x522   :  { %1397 = vmatprep.mubr.msk.f32.mxu1 %vm1715_vm0, %v1716_v1  ;;  %1579 = vmatprep.subr.bf16.mxu0 %v1714_v0  ;;  %v1119_v40 = vld [vmem:[%s2200_s3 + $0x8] ss:$0 sm:$0xff] }
 0x523   :  { %v2011_v7 = vadd.f32 %v566_v43, %v161_v53  ;;  %v562_v17 = vadd.f32 %v1117_v61, %v553_v45  ;;  %v1583_v43 = vpack.c.bf16 %v781_v16, %v780_v15 }
 0x525   :  { %1398 = vmatmul.mubr.f32.gmra.mrb[16].mxu1 %v2011_v7  ;;  %v567_v47 = vmax.f32 %v562_v17, 0.0  ;;  %1581 = vmatpush3.bf16.msra.mxu0 %v1580_v46 }
 0x526   :  { %1400 = vmatprep.mubr.msk.f32.mxu1 %vm1715_vm0, %v1716_v1  ;;  %1582 = vmatprep.subr.bf16.mxu0 %v1714_v0 }
 0x527   :  { %v2018_v49 = vadd.f32 %v567_v47, %v162_v57  ;;  %v782_v47 = vld [vmem:[#allocation2 + $0x1b0] sm:$0xff] }
 0x529   :  { %1401 = vmatmul.mubr.f32.gmra.mrb[18].mxu1 %v2018_v49  ;;  %1584 = vmatpush3.bf16.msra.mxu0 %v1583_v43 }
 0x52a   :  { %1485 = vmatprep.mubr.msk.f32.mxu1 %vm1715_vm0, %v1716_v1  ;;  %1585 = vmatprep.subr.bf16.mxu0 %v1714_v0 }
 0x5ec   :  { %v663_v53 = vpop.f32.mrb[10].mxu1 }
 0x5ed   :  { %v664_v9 = vadd.f32 %v1118_v51, %v663_v53  ;;  %v1390_v18 = vpop.f32.mrb[11].mxu1 }
 0x5ee   :  { %v785_v18 = vld [vmem:[#allocation2 + $0x1c8] sm:$0xff] }
 0x5ef   :  { %v687_v19 = vsel %vm33_vm5, %v664_v9, 0.0  ;;  %v784_v9 = vld [vmem:[#allocation2 + $0x1c0] sm:$0xff] }
 0x5f0   :  { %692 = vadd.xlane.f32.xlu0 %v687_v19  ;;  %v668_v20 = vpop.f32.mrb[12].mxu1 }
 0x5f1   :  { %v669_v55 = vadd.f32 %v1118_v51, %v668_v20  ;;  %v1393_v57 = vpop.f32.mrb[13].mxu1  ;;  %v786_v20 = vld [vmem:[#allocation2 + $0x1d0] sm:$0xff] }
 0x5f3   :  { %v688_v21 = vsel %vm33_vm5, %v669_v55, 0.0  ;;  %v787_v55 = vld [vmem:[#allocation2 + $0x1d8] sm:$0xff] }
 0x5f4   :  { %694 = vadd.xlane.f32.xlu1 %v688_v21  ;;  %v673_v22 = vpop.f32.mrb[14].mxu1  ;;  %v1592_v57 = vpack.c.bf16 %v787_v55, %v786_v20 }
 0x5f5   :  { %v674_v23 = vadd.f32 %v1118_v51, %v673_v22  ;;  %v1396_v24 = vpop.f32.mrb[15].mxu1  ;;  %v789_v22 = vld [vmem:[#allocation2 + $0x1e8] sm:$0xff] }
 0x5f6   :  { %v790_v24 = vld [vmem:[#allocation2 + $0x1f0] sm:$0xff] }
 0x5f7   :  { %v689_v25 = vsel %vm33_vm5, %v674_v23, 0.0 }
 0x5f8   :  { %696 = vadd.xlane.f32.xlu0 %v689_v25  ;;  %v678_v26 = vpop.f32.mrb[16].mxu1 }
 0x5f9   :  { %v679_v27 = vadd.f32 %v1118_v51, %v678_v26  ;;  %v1399_v28 = vpop.f32.mrb[17].mxu1 }
 0x5fb   :  { %v690_v29 = vsel %vm33_vm5, %v679_v27, 0.0 }
 0x5fc   :  { %698 = vadd.xlane.f32.xlu1 %v690_v29  ;;  %v683_v31 = vpop.f32.mrb[18].mxu1 }
 0x5fd   :  { %v684_v32 = vadd.f32 %v1118_v51, %v683_v31  ;;  %v1402_v33 = vpop.f32.mrb[19].mxu1  ;;  %v783_v51 = vld [vmem:[#allocation2 + $0x1b8] sm:$0xff] }
 0x5fe   :  { %v1586_v53 = vpack.c.bf16 %v783_v51, %v782_v47 }
 0x5ff   :  { %v691_v34 = vsel %vm33_vm5, %v684_v32, 0.0 }
 0x600   :  { %700 = vadd.xlane.f32.xlu0 %v691_v34  ;;  %1587 = vmatpush3.bf16.msra.mxu0 %v1586_v53 }
 0x601   :  { %1588 = vmatprep.subr.bf16.mxu0 %v1714_v0 }
 0x67d   :  { %v693_v50 = vpop.xlane.xlu0 %692 }
 0x67e   :  { %v702_v54 = vmul.f32 0.033333335, %v693_v50 }
 0x680   :  { %v707_v56 = vsub.f32 %v687_v19, %v702_v54  ;;  %v1589_v19 = vpack.c.bf16 %v785_v18, %v784_v9  ;;  %v1121_v18 = vld [vmem:[%s2200_s3 + $0xa] ss:$0 sm:$0xff] }
 0x681   :  { %v695_v58 = vpop.xlane.xlu1 %694 }
 0x682   :  { %v703_v61 = vmul.f32 0.033333335, %v695_v58  ;;  %v2040_v63 = vsel %vm33_vm5, %v707_v56, 0.0  ;;  %1590 = vmatpush3.bf16.msra.mxu0 %v1589_v19 }
 0x683   :  { %v717_v30 = vmul.f32 %v2040_v63, %v2040_v63  ;;  %1591 = vmatprep.subr.bf16.mxu0 %v1714_v0 }
 0x684   :  { %v708_v2 = vsub.f32 %v688_v21, %v703_v61  ;;  %v788_v21 = vld [vmem:[#allocation2 + $0x1e0] sm:$0xff]  ;;  %v1120_v61 = vld [vmem:[%s2200_s3 + $0x9] ss:$0 sm:$0xff] }
 0x685   :  { %722 = vadd.xlane.f32.xlu1 %v717_v30  ;;  %v697_v35 = vpop.xlane.xlu0 %696  ;;  %v1595_v23 = vpack.c.bf16 %v789_v22, %v788_v21 }
 0x686   :  { %v704_v4 = vmul.f32 0.033333335, %v697_v35  ;;  %v2046_v5 = vsel %vm33_vm5, %v708_v2, 0.0  ;;  %1593 = vmatpush3.bf16.msra.mxu0 %v1592_v57 }
 0x687   :  { %v718_v6 = vmul.f32 %v2046_v5, %v2046_v5  ;;  %1594 = vmatprep.subr.bf16.mxu0 %v1714_v0 }
 0x688   :  { %v709_v42 = vsub.f32 %v689_v25, %v704_v4  ;;  %v791_v25 = vld [vmem:[#allocation2 + $0x1f8] sm:$0xff] }
 0x689   :  { %v699_v52 = vpop.xlane.xlu1 %698  ;;  %724 = vadd.xlane.f32.xlu0 %v718_v6  ;;  %v1598_v26 = vpack.c.bf16 %v791_v25, %v790_v24 }
 0x68a   :  { %v705_v10 = vmul.f32 0.033333335, %v699_v52  ;;  %v2052_v11 = vsel %vm33_vm5, %v709_v42, 0.0  ;;  %1596 = vmatpush3.bf16.msra.mxu0 %v1595_v23 }
 0x68b   :  { %v719_v48 = vmul.f32 %v2052_v11, %v2052_v11  ;;  %1597 = vmatprep.subr.bf16.mxu0 %v1714_v0 }
 0x68c   :  { %v710_v12 = vsub.f32 %v690_v29, %v705_v10 }
 0x68d   :  { %726 = vadd.xlane.f32.xlu1 %v719_v48  ;;  %v701_v60 = vpop.xlane.xlu0 %700 }
 0x68e   :  { %v706_v13 = vmul.f32 0.033333335, %v701_v60  ;;  %v2058_v39 = vsel %vm33_vm5, %v710_v12, 0.0  ;;  %1599 = vmatpush3.bf16.msra.mxu0 %v1598_v26 }
 0x68f   :  { %v720_v41 = vmul.f32 %v2058_v39, %v2058_v39  ;;  %1600 = vmatprep.subr.bf16.mxu0 %v1714_v0 }
 0x690   :  { %v711_v14 = vsub.f32 %v691_v34, %v706_v13 }
 0x691   :  { %728 = vadd.xlane.f32.xlu0 %v720_v41 }
 0x692   :  { %v2064_v45 = vsel %vm33_vm5, %v711_v14, 0.0 }
 0x693   :  { %v721_v17 = vmul.f32 %v2064_v45, %v2064_v45 }
 0x695   :  { %730 = vadd.xlane.f32.xlu1 %v721_v17 }
 0x712   :  { %v723_v27 = vpop.xlane.xlu1 %722 }
 0x713   :  { %v732_v28 = vmul.f32 0.033333335, %v723_v27 }
 0x715   :  { %v737_v29 = vadd.f32 1e-05, %v732_v28 }
 0x716   :  { %v725_v31 = vpop.xlane.xlu0 %724 }
 0x717   :  { %1667 = vrsqrt.f32 %v737_v29  ;;  %v733_v32 = vmul.f32 0.033333335, %v725_v31 }
 0x719   :  { %v738_v33 = vadd.f32 1e-05, %v733_v32 }
 0x71a   :  { %v727_v34 = vpop.xlane.xlu1 %726 }
 0x71b   :  { %1669 = vrsqrt.f32 %v738_v33  ;;  %v734_v36 = vmul.f32 0.033333335, %v727_v34 }
 0x71d   :  { %v739_v37 = vadd.f32 1e-05, %v734_v36  ;;  %v983_v36 = vld [vmem:[#allocation2 + $0x200] sm:$0xff] }
 0x71e   :  { %v729_v38 = vpop.xlane.xlu0 %728 }
 0x71f   :  { %1671 = vrsqrt.f32 %v739_v37  ;;  %v735_v44 = vmul.f32 0.033333335, %v729_v38  ;;  %v984_v37 = vld [vmem:[#allocation2 + $0x208] sm:$0xff]  ;;  %v985_v38 = vld [vmem:[#allocation2 + $0x210] sm:$0xff] }
 0x721   :  { %v1668_v46 = vpop.eup %1667  ;;  %v740_v50 = vadd.f32 1e-05, %v735_v44  ;;  %v986_v44 = vld [vmem:[#allocation2 + $0x218] sm:$0xff] }
 0x722   :  { %v751_v54 = vmul.f32 %v1668_v46, %v1119_v40  ;;  %v731_v56 = vpop.xlane.xlu1 %730  ;;  %v1604_v46 = vpack.c.bf16 %v986_v44, %v985_v38 }
 0x723   :  { %1673 = vrsqrt.f32 %v740_v50  ;;  %v736_v58 = vmul.f32 0.033333335, %v731_v56 }
 0x724   :  { %v756_v30 = vmul.f32 %v751_v54, %v2040_v63 }
 0x725   :  { %v1670_v2 = vpop.eup %1669  ;;  %v741_v35 = vadd.f32 1e-05, %v736_v58 }
 0x726   :  { %v765_v4 = vadd.f32 %v1120_v61, %v756_v30  ;;  %v752_v6 = vmul.f32 %v1670_v2, %v1119_v40 }
 0x727   :  { %1675 = vrsqrt.f32 %v741_v35 }
 0x728   :  { %v770_v42 = vmax.f32 %v765_v4, 0.0  ;;  %v757_v52 = vmul.f32 %v752_v6, %v2046_v5 }
 0x729   :  { %v1672_v10 = vpop.eup %1671 }
 0x72a   :  { %1436 = vmatmul.mubr.f32.vlgmr.msra.gmra.mrb[20].mxu0 %v770_v42  ;;  %v766_v48 = vadd.f32 %v1120_v61, %v757_v52  ;;  %v753_v12 = vmul.f32 %v1672_v10, %v1119_v40 }
 0x72b   :  { %1438 = vmatprep.mubr.msk.f32.mxu0 %vm1715_vm0, %v1716_v1 }
 0x72c   :  { %v771_v60 = vmax.f32 %v766_v48, 0.0  ;;  %v758_v13 = vmul.f32 %v753_v12, %v2052_v11 }
 0x72d   :  { %v1674_v41 = vpop.eup %1673 }
 0x72e   :  { %1439 = vmatmul.mubr.f32.gmra.mrb[22].mxu0 %v771_v60  ;;  %v767_v63 = vadd.f32 %v1120_v61, %v758_v13  ;;  %v754_v14 = vmul.f32 %v1674_v41, %v1119_v40 }
 0x72f   :  { %1441 = vmatprep.mubr.msk.f32.mxu0 %vm1715_vm0, %v1716_v1 }
 0x730   :  { %v772_v15 = vmax.f32 %v767_v63, 0.0  ;;  %v759_v5 = vmul.f32 %v754_v14, %v2058_v39 }
 0x731   :  { %v1676_v16 = vpop.eup %1675 }
 0x732   :  { %1442 = vmatmul.mubr.f32.gmra.mrb[24].mxu0 %v772_v15  ;;  %v768_v43 = vadd.f32 %v1120_v61, %v759_v5  ;;  %v755_v17 = vmul.f32 %v1676_v16, %v1119_v40  ;;  %v1601_v40 = vpack.c.bf16 %v984_v37, %v983_v36 }
 0x733   :  { %1444 = vmatprep.mubr.msk.f32.mxu0 %vm1715_vm0, %v1716_v1 }
 0x734   :  { %v773_v47 = vmax.f32 %v768_v43, 0.0  ;;  %v760_v11 = vmul.f32 %v755_v17, %v2064_v45  ;;  %1632 = vmatpush3.bf16.msra.mxu1 %v1601_v40  ;;  %1602 = vmatpush3.bf16.msra.mxu0 %v1601_v40 }
 0x735   :  { %1625 = vmatprep.subr.bf16.mxu1 %v1714_v0  ;;  %1603 = vmatprep.subr.bf16.mxu0 %v1714_v0 }
 0x736   :  { %1445 = vmatmul.mubr.f32.gmra.mrb[26].mxu0 %v773_v47  ;;  %v769_v51 = vadd.f32 %v1120_v61, %v760_v11  ;;  %v987_v47 = vld [vmem:[#allocation2 + $0x220] sm:$0xff]  ;;  %v988_v11 = vld [vmem:[#allocation2 + $0x228] sm:$0xff] }
 0x737   :  { %1447 = vmatprep.mubr.msk.f32.mxu0 %vm1715_vm0, %v1716_v1 }
 0x738   :  { %v774_v53 = vmax.f32 %v769_v51, 0.0  ;;  %1633 = vmatpush3.bf16.msra.mxu1 %v1604_v46  ;;  %1605 = vmatpush3.bf16.msra.mxu0 %v1604_v46  ;;  %v1607_v51 = vpack.c.bf16 %v988_v11, %v987_v47 }
 0x739   :  { %1626 = vmatprep.subr.bf16.mxu1 %v1714_v0  ;;  %1606 = vmatprep.subr.bf16.mxu0 %v1714_v0 }
 0x73a   :  { %1448 = vmatmul.mubr.f32.gmra.mrb[28].mxu0 %v774_v53  ;;  %v989_v53 = vld [vmem:[#allocation2 + $0x230] sm:$0xff] }
 0x73b   :  { %1482 = vmatprep.mubr.msk.f32.mxu0 %vm1715_vm0, %v1716_v1 }
 0x73c   :  { %1634 = vmatpush3.bf16.msra.mxu1 %v1607_v51  ;;  %1608 = vmatpush3.bf16.msra.mxu0 %v1607_v51 }
 0x73d   :  { %1627 = vmatprep.subr.bf16.mxu1 %v1714_v0  ;;  %1609 = vmatprep.subr.bf16.mxu0 %v1714_v0 }
 0x7fd   :  { %v865_v39 = vpop.f32.mrb[20].mxu0 }
 0x7fe   :  { %v1437_v9 = vpop.f32.mrb[21].mxu0  ;;  %v866_v23 = vadd.f32 %v1121_v18, %v865_v39  ;;  %v990_v39 = vld [vmem:[#allocation2 + $0x238] sm:$0xff] }
 0x7ff   :  { %v1610_v9 = vpack.c.bf16 %v990_v39, %v989_v53 }
 0x800   :  { %v889_v28 = vsel %vm33_vm5, %v866_v23, 0.0  ;;  %v997_v23 = vld [vmem:[#allocation2 + $0x270] sm:$0xff] }
 0x801   :  { %v870_v19 = vpop.f32.mrb[22].mxu0  ;;  %1635 = vmatpush3.bf16.msra.mxu1 %v1610_v9  ;;  %1611 = vmatpush3.bf16.msra.mxu0 %v1610_v9 }
 0x802   :  { %v871_v20 = vadd.f32 %v1121_v18, %v870_v19  ;;  %v1440_v55 = vpop.f32.mrb[23].mxu0  ;;  %1628 = vmatprep.subr.bf16.mxu1 %v1714_v0  ;;  %1612 = vmatprep.subr.bf16.mxu0 %v1714_v0 }
 0x803   :  { %v994_v55 = vld [vmem:[#allocation2 + $0x258] sm:$0xff] }
 0x804   :  { %v890_v45 = vsel %vm33_vm5, %v871_v20, 0.0  ;;  %v993_v20 = vld [vmem:[#allocation2 + $0x250] sm:$0xff] }
 0x805   :  { %896 = vadd.xlane.f32.xlu0 %v890_v45  ;;  %v875_v57 = vpop.f32.mrb[24].mxu0 }
 0x806   :  { %v876_v21 = vadd.f32 %v1121_v18, %v875_v57  ;;  %v1443_v22 = vpop.f32.mrb[25].mxu0  ;;  %v995_v57 = vld [vmem:[#allocation2 + $0x260] sm:$0xff] }
 0x808   :  { %v891_v24 = vsel %vm33_vm5, %v876_v21, 0.0  ;;  %v996_v21 = vld [vmem:[#allocation2 + $0x268] sm:$0xff] }
 0x809   :  { %898 = vadd.xlane.f32.xlu1 %v891_v24  ;;  %v880_v25 = vpop.f32.mrb[26].mxu0  ;;  %v1619_v22 = vpack.c.bf16 %v996_v21, %v995_v57 }
 0x80a   :  { %v881_v26 = vadd.f32 %v1121_v18, %v880_v25  ;;  %v1446_v27 = vpop.f32.mrb[27].mxu0 }
 0x80c   :  { %v892_v29 = vsel %vm33_vm5, %v881_v26, 0.0 }
 0x80d   :  { %894 = vadd.xlane.f32.xlu1 %v889_v28  ;;  %900 = vadd.xlane.f32.xlu0 %v892_v29  ;;  %v885_v31 = vpop.f32.mrb[28].mxu0 }
 0x80e   :  { %v886_v32 = vadd.f32 %v1121_v18, %v885_v31  ;;  %v1449_v33 = vpop.f32.mrb[29].mxu0  ;;  %v992_v18 = vld [vmem:[#allocation2 + $0x248] sm:$0xff] }
 0x80f   :  { %v1613_v19 = vpack.c.bf16 %v992_v18, %v991_v59 }
 0x810   :  { %v893_v34 = vsel %vm33_vm5, %v886_v32, 0.0 }
 0x811   :  { %902 = vadd.xlane.f32.xlu0 %v893_v34  ;;  %1636 = vmatpush3.bf16.msra.mxu1 %v1613_v19 }
 0x812   :  { %1614 = vmatpush3.bf16.msra.mxu0 %v1613_v19  ;;  %1629 = vmatprep.subr.bf16.mxu1 %v1714_v0 }
 0x813   :  { %1615 = vmatprep.subr.bf16.mxu0 %v1714_v0 }
 0x892   :  { %v897_v50 = vpop.xlane.xlu0 %896 }
 0x893   :  { %v905_v54 = vmul.f32 0.033333335, %v897_v50 }
 0x895   :  { %v910_v56 = vsub.f32 %v890_v45, %v905_v54  ;;  %v1616_v45 = vpack.c.bf16 %v994_v55, %v993_v20 }
 0x896   :  { %v899_v58 = vpop.xlane.xlu1 %898 }
 0x897   :  { %v906_v61 = vmul.f32 0.033333335, %v899_v58  ;;  %v2114_v30 = vsel %vm33_vm5, %v910_v56, 0.0  ;;  %1637 = vmatpush3.bf16.msra.mxu1 %v1616_v45  ;;  %1617 = vmatpush3.bf16.msra.mxu0 %v1616_v45  ;;  %v1123_v58 = vld [vmem:[%s2200_s3 + $0xc] ss:$0 sm:$0xff] }
 0x898   :  { %v920_v2 = vmul.f32 %v2114_v30, %v2114_v30  ;;  %1630 = vmatprep.subr.bf16.mxu1 %v1714_v0  ;;  %1618 = vmatprep.subr.bf16.mxu0 %v1714_v0 }
 0x899   :  { %v911_v35 = vsub.f32 %v891_v24, %v906_v61  ;;  %v998_v24 = vld [vmem:[#allocation2 + $0x278] sm:$0xff] }
 0x89a   :  { %926 = vadd.xlane.f32.xlu1 %v920_v2  ;;  %v895_v4 = vpop.xlane.xlu1 %894  ;;  %v901_v6 = vpop.xlane.xlu0 %900  ;;  %v1622_v25 = vpack.c.bf16 %v998_v24, %v997_v23 }
 0x89b   :  { %v904_v42 = vmul.f32 0.033333335, %v895_v4  ;;  %v907_v52 = vmul.f32 0.033333335, %v901_v6  ;;  %v2120_v10 = vsel %vm33_vm5, %v911_v35, 0.0  ;;  %1638 = vmatpush3.bf16.msra.mxu1 %v1619_v22  ;;  %1620 = vmatpush3.bf16.msra.mxu0 %v1619_v22 }
 0x89c   :  { %v921_v48 = vmul.f32 %v2120_v10, %v2120_v10  ;;  %1631 = vmatprep.subr.bf16.mxu1 %v1714_v0  ;;  %1621 = vmatprep.subr.bf16.mxu0 %v1714_v0  ;;  %v1122_v0 = vld [vmem:[%s2200_s3 + $0xb] ss:$0 sm:$0xff] }
 0x89d   :  { %v909_v12 = vsub.f32 %v889_v28, %v904_v42  ;;  %v912_v60 = vsub.f32 %v892_v29, %v907_v52 }
 0x89e   :  { %928 = vadd.xlane.f32.xlu0 %v921_v48  ;;  %v903_v13 = vpop.xlane.xlu0 %902 }
 0x89f   :  { %v908_v41 = vmul.f32 0.033333335, %v903_v13  ;;  %v2126_v63 = vsel %vm33_vm5, %v912_v60, 0.0  ;;  %v2130_v14 = vsel %vm33_vm5, %v909_v12, 0.0  ;;  %1639 = vmatpush3.bf16.msra.mxu1 %v1622_v25  ;;  %1623 = vmatpush3.bf16.msra.mxu0 %v1622_v25 }
 0x8a0   :  { %v922_v15 = vmul.f32 %v2126_v63, %v2126_v63  ;;  %v919_v5 = vmul.f32 %v2130_v14, %v2130_v14 }
 0x8a1   :  { %v913_v16 = vsub.f32 %v893_v34, %v908_v41 }
 0x8a2   :  { %930 = vadd.xlane.f32.xlu1 %v922_v15  ;;  %924 = vadd.xlane.f32.xlu0 %v919_v5 }
 0x8a3   :  { %v2138_v43 = vsel %vm33_vm5, %v913_v16, 0.0 }
 0x8a4   :  { %v923_v17 = vmul.f32 %v2138_v43, %v2138_v43 }
 0x8a6   :  { %932 = vadd.xlane.f32.xlu1 %v923_v17 }
 0x927   :  { %v927_v26 = vpop.xlane.xlu1 %926 }
 0x928   :  { %v935_v27 = vmul.f32 0.033333335, %v927_v26 }
 0x92a   :  { %v940_v28 = vadd.f32 1e-05, %v935_v27 }
 0x92b   :  { %v929_v29 = vpop.xlane.xlu0 %928 }
 0x92c   :  { %1677 = vrsqrt.f32 %v940_v28  ;;  %v936_v31 = vmul.f32 0.033333335, %v929_v29 }
 0x92e   :  { %v941_v32 = vadd.f32 1e-05, %v936_v31 }
 0x92f   :  { %v931_v33 = vpop.xlane.xlu1 %930  ;;  %v925_v34 = vpop.xlane.xlu0 %924 }
 0x930   :  { %1679 = vrsqrt.f32 %v941_v32  ;;  %v937_v36 = vmul.f32 0.033333335, %v931_v33  ;;  %v934_v37 = vmul.f32 0.033333335, %v925_v34 }
 0x932   :  { %v942_v38 = vadd.f32 1e-05, %v937_v36  ;;  %v939_v40 = vadd.f32 1e-05, %v934_v37 }
 0x933   :  { %v933_v44 = vpop.xlane.xlu1 %932 }
 0x934   :  { %1681 = vrsqrt.f32 %v942_v38  ;;  %v938_v46 = vmul.f32 0.033333335, %v933_v44 }
 0x935   :  { %1683 = vrsqrt.f32 %v939_v40 }
 0x936   :  { %v1678_v50 = vpop.eup %1677  ;;  %v943_v54 = vadd.f32 1e-05, %v938_v46 }
 0x937   :  { %v954_v56 = vmul.f32 %v1678_v50, %v1122_v0 }
 0x938   :  { %1685 = vrsqrt.f32 %v943_v54 }
 0x939   :  { %v959_v61 = vmul.f32 %v954_v56, %v2114_v30 }
 0x93a   :  { %v1680_v2 = vpop.eup %1679 }
 0x93b   :  { %v968_v35 = vadd.f32 %v1123_v58, %v959_v61  ;;  %v955_v4 = vmul.f32 %v1680_v2, %v1122_v0 }
 0x93d   :  { %v973_v6 = vmax.f32 %v968_v35, 0.0  ;;  %v960_v42 = vmul.f32 %v955_v4, %v2120_v10 }
 0x93e   :  { %v1682_v52 = vpop.eup %1681 }
 0x93f   :  { %v1684_v48 = vpop.eup %1683  ;;  %v978_v12 = vadd.f32 %v973_v6, %v1995_v62  ;;  %v969_v60 = vadd.f32 %v1123_v58, %v960_v42  ;;  %v956_v13 = vmul.f32 %v1682_v52, %v1122_v0 }
 0x940   :  { %v953_v41 = vmul.f32 %v1684_v48, %v1122_v0 }
 0x941   :  { %1486 = vmatmul.mubr.f32.vlgmr.msra.gmra.mrb[20].mxu1 %v978_v12  ;;  %v974_v15 = vmax.f32 %v969_v60, 0.0  ;;  %v961_v5 = vmul.f32 %v956_v13, %v2126_v63 }
 0x942   :  { %v1686_v16 = vpop.eup %1685  ;;  %v958_v30 = vmul.f32 %v953_v41, %v2130_v14  ;;  %1488 = vmatprep.mubr.msk.f32.mxu1 %vm1715_vm0, %v1716_v1 }
 0x943   :  { %v979_v17 = vadd.f32 %v974_v15, %v2003_v3  ;;  %v970_v10 = vadd.f32 %v1123_v58, %v961_v5  ;;  %v957_v47 = vmul.f32 %v1686_v16, %v1122_v0 }
 0x944   :  { %v967_v11 = vadd.f32 %v1123_v58, %v958_v30 }
 0x945   :  { %1489 = vmatmul.mubr.f32.gmra.mrb[22].mxu1 %v979_v17  ;;  %v975_v62 = vmax.f32 %v970_v10, 0.0  ;;  %v962_v51 = vmul.f32 %v957_v47, %v2138_v43  ;;  %v1124_v43 = vld [vmem:[%s2200_s3 + $0xd] ss:$0 sm:$0xff] }
 0x946   :  { %1491 = vmatprep.mubr.msk.f32.mxu1 %vm1715_vm0, %v1716_v1  ;;  %v972_v53 = vmax.f32 %v967_v11, 0.0 }
 0x947   :  { %v980_v63 = vadd.f32 %v975_v62, %v2011_v7  ;;  %v971_v39 = vadd.f32 %v1123_v58, %v962_v51 }
 0x948   :  { %v977_v14 = vadd.f32 %v972_v53, %v1987_v8 }
 0x949   :  { %1492 = vmatmul.mubr.f32.gmra.mrb[24].mxu1 %v980_v63  ;;  %v976_v9 = vmax.f32 %v971_v39, 0.0 }
 0x94a   :  { %1483 = vmatmul.mubr.f32.vlgmr.msra.gmra.mrb[30].mxu0 %v977_v14  ;;  %1494 = vmatprep.mubr.msk.f32.mxu1 %vm1715_vm0, %v1716_v1 }
 0x94b   :  { %v981_v3 = vadd.f32 %v976_v9, %v2018_v49 }
 0x94d   :  { %1495 = vmatmul.mubr.f32.gmra.mrb[26].mxu1 %v981_v3 }
 0xa14   :  { %v1075_v59 = vpop.f32.mrb[20].mxu1 }
 0xa15   :  { %v1076_v18 = vadd.f32 %v1124_v43, %v1075_v59  ;;  %v1487_v7 = vpop.f32.mrb[21].mxu1 }
 0xa17   :  { %1096 = vst.msk [vmem:[%s2201_s4 + $0x8] sm:$0xff] %vm1094_vm6, %v1076_v18 }
 0xa18   :  { %v1080_v8 = vpop.f32.mrb[22].mxu1 }
 0xa19   :  { %v1081_v19 = vadd.f32 %v1124_v43, %v1080_v8  ;;  %v1490_v20 = vpop.f32.mrb[23].mxu1 }
 0xa1b   :  { %1097 = vst.msk [vmem:[%s2201_s4 + $0x10] sm:$0xff] %vm1094_vm6, %v1081_v19 }
 0xa1c   :  { %v1085_v1 = vpop.f32.mrb[24].mxu1 }
 0xa1d   :  { %v1070_v49 = vpop.f32.mrb[30].mxu0  ;;  %v1086_v55 = vadd.f32 %v1124_v43, %v1085_v1  ;;  %v1493_v45 = vpop.f32.mrb[25].mxu1 }
 0xa1e   :  { %v1071_v57 = vadd.f32 %v1124_v43, %v1070_v49  ;;  %v1484_v21 = vpop.f32.mrb[31].mxu0 }
 0xa1f   :  { %1098 = vst.msk [vmem:[%s2201_s4 + $0x18] sm:$0xff] %vm1094_vm6, %v1086_v55 }
 0xa20   :  { %1095 = vst.msk [vmem:[%s2201_s4] sm:$0xff] %vm1094_vm6, %v1071_v57  ;;  %v1090_v22 = vpop.f32.mrb[26].mxu1 }
 0xa21   :  { %v1091_v23 = vadd.f32 %v1124_v43, %v1090_v22  ;;  %v1496_v24 = vpop.f32.mrb[27].mxu1 }
 0xa23   :  { %1099 = vst.msk [vmem:[%s2201_s4 + $0x20] sm:$0xff] %vm1094_vm6, %v1091_v23 }
 0xa24   :  { %1104 = vsyncpa [#allocation3], 1 }

</bundles_post_ra>
